<compile_context>
chip_gen: v7x
topology: tpu7x:2x2x1
jax: 0.10.0
libtpu: 0.0.40
codegen_flags: <defaults>
</compile_context>

<pallas_src>
import math
import functools

import jax
import jax.numpy as jnp
import numpy as np
from jax import lax
from jax.experimental import pallas as pl
from jax.experimental.pallas import tpu as pltpu

LOG2PI = math.log(2.0 * math.pi)
GATE_PAD = 128   # each GRU gate block padded to one full 128-lane vreg
HEAD_PAD = 128   # mean at lanes 0:128, logvar at lanes 128:256 of fused heads


# ----------------------------------------------------------------------------
# The Pallas kernel: entire TMAE forward pass (single invocation, VMEM resident)
# ----------------------------------------------------------------------------
def tmae_kernel(x2_ref, actions_ref, eps_ref,
                x_wih_ref, x_bih_ref,          # bf16 (S+A, 9*HP + h), f32 (1, same)
                whh_hbm, bhh_ref,              # HBM bf16 (3,HROW,3HP), f32 (3,1,3HP)
                hproj_hbm, smallw_hbm,         # HBM bf16 (3,HROW,h), (rows,256)
                bias_ref,                      # f32 (8, 256)
                scalars_ref, zmean_ref,        # outputs
                whh_vmem, hproj_vmem, smallw_vmem, dma_sem,   # scratch
                *, free_bits):
    T, B, A = actions_ref.shape
    Z = eps_ref.shape[1]
    HROW = whh_vmem.shape[1]          # real-hidden rows (H rounded up to 8)
    G3 = whh_vmem.shape[2]            # 3 * HP
    HP = G3 // 3                      # padded gate width (128)
    Hd = hproj_vmem.shape[2]          # h_dim
    HEAD = bias_ref.shape[1] // 2     # 128: logvar column offset in fused heads
    bf16 = jnp.bfloat16

    # --- start the weight DMAs not needed by the hoisted input projection;
    #     they overlap with the gi_all matmul below -------------------------
    cps = (pltpu.make_async_copy(whh_hbm, whh_vmem, dma_sem.at[0]),
           pltpu.make_async_copy(hproj_hbm, hproj_vmem, dma_sem.at[1]),
           pltpu.make_async_copy(smallw_hbm, smallw_vmem, dma_sem.at[2]))
    for cp in cps:
        cp.start()

    # --- hoisted input projections: ONE matmul covers every timestep of the
    #     three GRUs plus the state part of dec_action_fc[0] (+ its bias) ----
    gi_all = (jnp.dot(x2_ref[...], x_wih_ref[...],
                      preferred_element_type=jnp.float32) + x_bih_ref[...])
    gi_f = gi_all[:, 0:G3]
    gi_b = gi_all[:, G3:2 * G3]
    gi_d = gi_all[:, 2 * G3:3 * G3]
    dfs = gi_all[:, 3 * G3:3 * G3 + Hd]       # s_t @ df1_w[:S] + df1_b, all t

    for cp in cps:
        cp.wait()

    # --- weights (static slices of packed slabs) ----------------------------
    ef_whh, eb_whh, dr_whh = whh_vmem[0], whh_vmem[1], whh_vmem[2]
    ef_bhh, eb_bhh, dr_bhh = bhh_ref[0], bhh_ref[1], bhh_ref[2]
    fc1_wf, fc1_wb, df1_wh = hproj_vmem[0], hproj_vmem[1], hproj_vmem[2]
    fc2_w = smallw_vmem[0:Hd, 0:Hd]
    df2_w = smallw_vmem[Hd:2 * Hd, 0:Hd]
    eml_w = smallw_vmem[2 * Hd:3 * Hd, :]     # enc_mean | enc_logvar (lane 0 / 128)
    dml_w = smallw_vmem[3 * Hd:4 * Hd, :]     # dec_mean | dec_logvar (lane 0 / 128)
    df1_wz = smallw_vmem[4 * Hd:4 * Hd + Z, 0:Hd]
    fc1_b = bias_ref[0:1, 0:Hd]
    fc2_b = bias_ref[1:2, 0:Hd]
    df2_b = bias_ref[2:3, 0:Hd]
    eml_b = bias_ref[3:4, :]
    dml_b = bias_ref[4:5, :]

    def gru_step(gi, h, whh, bhh):
        """PyTorch GRU cell; input projection gi precomputed.  The h->h matmul
        contracts over only HROW (=32) real rows; gate blocks are 128-lane
        aligned so every slice starts on a vreg boundary."""
        gh = jnp.dot(h.astype(bf16), whh, preferred_element_type=jnp.float32) + bhh
        r = jax.nn.sigmoid(gi[:, 0:HROW] + gh[:, 0:HROW])
        u = jax.nn.sigmoid(gi[:, HP:HP + HROW] + gh[:, HP:HP + HROW])
        n = jnp.tanh(gi[:, 2 * HP:2 * HP + HROW] + r * gh[:, 2 * HP:2 * HP + HROW])
        return (1.0 - u) * n + u * h

    h0 = jnp.zeros((B, HROW), jnp.float32)

    # --- encoder: the two independent directions are interleaved so their
    #     MXU/EUP latencies overlap; time-mean pool accumulated in f32 --------
    hf, hb, sum_f, sum_b = h0, h0, h0, h0
    for t in range(T):
        hf = gru_step(gi_f[t * B:(t + 1) * B, :], hf, ef_whh, ef_bhh)
        hb = gru_step(gi_b[(T - 1 - t) * B:(T - t) * B, :], hb, eb_whh, eb_bhh)
        sum_f = sum_f + hf
        sum_b = sum_b + hb

    inv_t = 1.0 / T
    e1 = jnp.maximum(
        jnp.dot((sum_f * inv_t).astype(bf16), fc1_wf, preferred_element_type=jnp.float32)
        + jnp.dot((sum_b * inv_t).astype(bf16), fc1_wb, preferred_element_type=jnp.float32)
        + fc1_b, 0.0)
    e2 = jnp.maximum(
        jnp.dot(e1.astype(bf16), fc2_w, preferred_element_type=jnp.float32) + fc2_b, 0.0)
    enc_out = jnp.dot(e2.astype(bf16), eml_w, preferred_element_type=jnp.float32) + eml_b
    z_mean = enc_out[:, 0:Z]
    z_logvar = enc_out[:, HEAD:HEAD + Z]

    # KL( N(mean, exp(logvar)) || N(0, I) ); kl_elem >= 0 so kl_true needs no clamp.
    kl_elem = 0.5 * (jnp.exp(z_logvar) + z_mean * z_mean - 1.0 - z_logvar)
    kl_true = jnp.sum(kl_elem)
    kl = jnp.sum(jnp.maximum(kl_elem, free_bits))
    # lanes Z:128 of enc_out are exactly zero (zero-padded head weights/bias),
    # so this is an unmasked lane-dense store; wrapper slices [:, :Z].
    zmean_ref[...] = enc_out[:, 0:HEAD]

    # Reparameterized sample and loop-invariant z projection of dec_action_fc[0].
    z = z_mean + jnp.exp(0.5 * z_logvar) * eps_ref[...]
    zbase = jnp.dot(z.astype(bf16), df1_wz, preferred_element_type=jnp.float32)

    # --- decoder: teacher-forced Gaussian NLL + dec_rnn update (unrolled) ----
    hidden = h0
    nll = jnp.float32(0.0)
    for t in range(T):
        r0 = t * B
        d1 = jnp.maximum(
            dfs[r0:r0 + B, :] + zbase
            + jnp.dot(hidden.astype(bf16), df1_wh, preferred_element_type=jnp.float32),
            0.0)
        d2 = jnp.maximum(
            jnp.dot(d1.astype(bf16), df2_w, preferred_element_type=jnp.float32) + df2_b,
            0.0)
        out = jnp.dot(d2.astype(bf16), dml_w, preferred_element_type=jnp.float32) + dml_b
        a_mean = out[:, 0:A]               # lanes 0:A   (vreg 0, offset 0)
        a_logvar = out[:, HEAD:HEAD + A]   # lanes 128:..  (vreg 1, offset 0)
        a = actions_ref[t]
        nll_elem = (a - a_mean) ** 2 * jnp.exp(-a_logvar) + a_logvar + LOG2PI
        nll = nll + 0.5 * jnp.sum(nll_elem)
        hidden = gru_step(gi_d[r0:r0 + B, :], hidden, dr_whh, dr_bhh)

    # Pack the three scalar losses into one lane-dense output row.
    lane = lax.broadcasted_iota(jnp.int32, scalars_ref.shape, 1)
    scalars_ref[...] = jnp.where(
        lane == 0, kl_true, jnp.where(lane == 1, kl, jnp.where(lane == 2, nll, 0.0)))


# ----------------------------------------------------------------------------
# Host-side weight packing: run ONCE at parameter-load time (not per call).
# Layout plumbing only; math unchanged.
# ----------------------------------------------------------------------------
def pack_weights(weights, state_dim, action_dim, z_dim, h_dim, rnn_dim):
    (ef_wih, ef_whh, ef_bih, ef_bhh,
     eb_wih, eb_whh, eb_bih, eb_bhh,
     fc1_w, fc1_b, fc2_w, fc2_b,
     em_w, em_b, el_w, el_b,
     df1_w, df1_b, df2_w, df2_b,
     dm_w, dm_b, dl_w, dl_b,
     dr_wih, dr_whh, dr_bih, dr_bhh) = weights

    H, Hd, S, A, Z = rnn_dim, h_dim, state_dim, action_dim, z_dim
    SA = S + A
    HP = GATE_PAD
    HROW = ((H + 7) // 8) * 8            # real-hidden contraction rows
    W = 2 * HEAD_PAD                      # fused-head width (mean | logvar)
    assert H <= HP, "rnn_dim must fit in one 128-lane gate block"
    assert Z <= HEAD_PAD and A <= HEAD_PAD and Hd <= W

    def pad_to(w, rows, cols):
        return jnp.pad(w, ((0, rows - w.shape[0]), (0, cols - w.shape[1])))

    def gate_pad(w):  # (rows, 3H) -> (rows, 3*HP), each gate lane-aligned
        return jnp.concatenate(
            [pad_to(w[:, g * H:(g + 1) * H], w.shape[0], HP) for g in range(3)], axis=1)

    def head_pack(mw, lw):  # mean at lanes 0:HEAD_PAD, logvar at HEAD_PAD:W
        return jnp.concatenate([pad_to(mw, mw.shape[0], HEAD_PAD),
                                pad_to(lw, lw.shape[0], HEAD_PAD)], axis=1)

    # split dec_action_fc[0] weight by input block: [state | z | hidden]
    df1_ws = pad_to(df1_w[:S], SA, Hd)           # state part, padded to S+A rows
    df1_wz = pad_to(df1_w[S:S + Z], ((Z + 7) // 8) * 8, Hd)
    df1_wh = pad_to(df1_w[S + Z:], HROW, Hd)

    # slab 1/2: fused input->hidden projection for all three GRUs + df1 state part
    x_wih = jnp.concatenate(
        [gate_pad(ef_wih), gate_pad(eb_wih), gate_pad(dr_wih), df1_ws],
        axis=1).astype(jnp.bfloat16)
    x_bih = jnp.concatenate(
        [gate_pad(ef_bih), gate_pad(eb_bih), gate_pad(dr_bih), df1_b], axis=1)

    # slab 3/4: hidden->hidden GRU weights (only HROW real contraction rows) / biases
    whh_all = jnp.stack([pad_to(gate_pad(ef_whh), HROW, 3 * HP),
                         pad_to(gate_pad(eb_whh), HROW, 3 * HP),
                         pad_to(gate_pad(dr_whh), HROW, 3 * HP)]).astype(jnp.bfloat16)
    bhh_all = jnp.stack([gate_pad(ef_bhh), gate_pad(eb_bhh), gate_pad(dr_bhh)])

    # slab 5: hidden -> h_dim projections (fc1 fwd half, fc1 bwd half, df1 hidden)
    hproj_all = jnp.stack([pad_to(fc1_w[:H], HROW, Hd),
                           pad_to(fc1_w[H:2 * H], HROW, Hd),
                           df1_wh]).astype(jnp.bfloat16)

    # slab 6: small matrices (bf16), uniform width 256, heads vreg-aligned
    small_w = jnp.concatenate(
        [pad_to(fc2_w, Hd, W), pad_to(df2_w, Hd, W),
         head_pack(em_w, el_w), head_pack(dm_w, dl_w),
         pad_to(df1_wz, df1_wz.shape[0], W)], axis=0)
    rows = small_w.shape[0]
    small_w = pad_to(small_w, ((rows + 15) // 16) * 16, W).astype(jnp.bfloat16)

    # slab 7: biases (f32): fc1 | fc2 | df2 | enc-head | dec-head, padded to 8 rows
    bias = jnp.concatenate(
        [pad_to(fc1_b, 1, W), pad_to(fc2_b, 1, W), pad_to(df2_b, 1, W),
         head_pack(em_b, el_b), head_pack(dm_b, dl_b),
         jnp.zeros((3, W), jnp.float32)], axis=0)

    return (x_wih, x_bih, whh_all, bhh_all, hproj_all, small_w, bias)


# ----------------------------------------------------------------------------
# Wrapper (packed slabs are prepared once, outside this jitted call)
# ----------------------------------------------------------------------------
@jax.jit
def tmae_forward(packed, states, actions, eps):
    """states: (T+1, B, S) f32, actions: (T, B, A) f32, eps: (B, Z) f32 (time-major)."""
    x_wih, x_bih, whh_all, bhh_all, hproj_all, small_w, bias = packed
    Tp1, B, S = states.shape
    T = Tp1 - 1
    A = actions.shape[-1]
    Z = eps.shape[-1]
    free_bits = 1.0 / float(Z)

    # Fuse [state, action] once, flatten to a lane-dense (T*B, S+A) slab, bf16
    # for the MXU (f32 accumulation inside the kernel).
    x2 = jnp.concatenate([states[:T], actions], axis=-1)
    x2 = x2.reshape(T * B, S + A).astype(jnp.bfloat16)

    kernel = functools.partial(tmae_kernel, free_bits=free_bits)
    vmem = pl.BlockSpec(memory_space=pltpu.MemorySpace.VMEM)
    hbm = pl.BlockSpec(memory_space=pl.ANY)     # manual DMA inside the kernel
    out_shape = (
        jax.ShapeDtypeStruct((1, 128), jnp.float32),        # [kl_true, kl, nll]
        jax.ShapeDtypeStruct((B, HEAD_PAD), jnp.float32),   # posterior mean (padded)
    )
    scratch = [
        pltpu.VMEM(whh_all.shape, jnp.bfloat16),
        pltpu.VMEM(hproj_all.shape, jnp.bfloat16),
        pltpu.VMEM(small_w.shape, jnp.bfloat16),
        pltpu.SemaphoreType.DMA((3,)),
    ]
    scalars, zmean = pl.pallas_call(
        kernel,
        out_shape=out_shape,
        in_specs=[vmem, vmem, vmem,            # x2, actions, eps
                  vmem, vmem,                  # x_wih, x_bih (needed immediately)
                  hbm, vmem, hbm, hbm, vmem],  # whh, bhh, hproj, small_w, bias
        out_specs=(vmem, vmem),
        scratch_shapes=scratch,
    )(x2, actions, eps, x_wih, x_bih, whh_all, bhh_all, hproj_all, small_w, bias)
    return scalars[0, 0], scalars[0, 1], scalars[0, 2], zmean[:, :Z]


# ----------------------------------------------------------------------------
# Deterministic parameter init (shapes per TMAE._construct_model, num_layers=1)
# Weight matrices are stored TRANSPOSED (in_features, out_features).
# ----------------------------------------------------------------------------
def init_weights(key, state_dim, action_dim, z_dim, h_dim, rnn_dim):
    def uni(k, shape, bound):
        return jax.random.uniform(k, shape, jnp.float32, -bound, bound)

    def linear(k, fan_in, fan_out):
        k1, k2 = jax.random.split(k)
        b = 1.0 / math.sqrt(fan_in)
        return uni(k1, (fan_in, fan_out), b), uni(k2, (1, fan_out), b)

    def gru(k, in_dim, hid):
        k1, k2, k3, k4 = jax.random.split(k, 4)
        b = 1.0 / math.sqrt(hid)
        return (uni(k1, (in_dim, 3 * hid), b),   # weight_ih (transposed)
                uni(k2, (hid, 3 * hid), b),      # weight_hh (transposed)
                uni(k3, (1, 3 * hid), b),        # bias_ih
                uni(k4, (1, 3 * hid), b))        # bias_hh

    ks = jax.random.split(key, 11)
    sa = state_dim + action_dim
    ef = gru(ks[0], sa, rnn_dim)                 # enc_birnn forward direction
    eb = gru(ks[1], sa, rnn_dim)                 # enc_birnn backward direction
    fc1 = linear(ks[2], 2 * rnn_dim, h_dim)      # enc_fc[0]
    fc2 = linear(ks[3], h_dim, h_dim)            # enc_fc[2]
    em = linear(ks[4], h_dim, z_dim)             # enc_mean
    el = linear(ks[5], h_dim, z_dim)             # enc_logvar
    df1 = linear(ks[6], state_dim + z_dim + rnn_dim, h_dim)  # dec_action_fc[0]
    df2 = linear(ks[7], h_dim, h_dim)            # dec_action_fc[2]
    dm = linear(ks[8], h_dim, action_dim)        # dec_action_mean
    dl = linear(ks[9], h_dim, action_dim)        # dec_action_logvar
    dr = gru(ks[10], sa, rnn_dim)                # dec_rnn

    weights = (list(ef) + list(eb) + list(fc1) + list(fc2) + list(em) + list(el)
               + list(df1) + list(df2) + list(dm) + list(dl) + list(dr))
    return tuple(weights)


# ----------------------------------------------------------------------------
# Pure-JAX reference (same math, natural weight layout, f32) for correctness
# ----------------------------------------------------------------------------
def tmae_reference(weights, states, actions, eps, z_dim):
    (ef_wih, ef_whh, ef_bih, ef_bhh,
     eb_wih, eb_whh, eb_bih, eb_bhh,
     fc1_w, fc1_b, fc2_w, fc2_b,
     em_w, em_b, el_w, el_b,
     df1_w, df1_b, df2_w, df2_b,
     dm_w, dm_b, dl_w, dl_b,
     dr_wih, dr_whh, dr_bih, dr_bhh) = weights

    T, B, _ = actions.shape
    H = ef_whh.shape[0]
    free_bits = 1.0 / float(z_dim)

    def gru(x, h, wih, whh, bih, bhh):
        gi = x @ wih + bih
        gh = h @ whh + bhh
        r = jax.nn.sigmoid(gi[:, :H] + gh[:, :H])
        z = jax.nn.sigmoid(gi[:, H:2 * H] + gh[:, H:2 * H])
        n = jnp.tanh(gi[:, 2 * H:] + r * gh[:, 2 * H:])
        return (1 - z) * n + z * h

    h = jnp.zeros((B, H)); sum_f = jnp.zeros((B, H))
    for t in range(T):
        x = jnp.concatenate([states[t], actions[t]], -1)
        h = gru(x, h, ef_wih, ef_whh, ef_bih, ef_bhh)
        sum_f = sum_f + h
    h = jnp.zeros((B, H)); sum_b = jnp.zeros((B, H))
    for t in range(T - 1, -1, -1):
        x = jnp.concatenate([states[t], actions[t]], -1)
        h = gru(x, h, eb_wih, eb_whh, eb_bih, eb_bhh)
        sum_b = sum_b + h
    avg = jnp.concatenate([sum_f, sum_b], -1) / T
    e1 = jnp.maximum(avg @ fc1_w + fc1_b, 0.0)
    e2 = jnp.maximum(e1 @ fc2_w + fc2_b, 0.0)
    z_mean = e2 @ em_w + em_b
    z_logvar = e2 @ el_w + el_b
    kl_elem = 0.5 * (jnp.exp(z_logvar) + z_mean ** 2 - 1.0 - z_logvar)
    kl_true = jnp.sum(kl_elem)
    kl = jnp.sum(jnp.maximum(kl_elem, free_bits))
    z = z_mean + jnp.exp(0.5 * z_logvar) * eps

    hidden = jnp.zeros((B, H)); nll = 0.0
    for t in range(T):
        s, a = states[t], actions[t]
        inp = jnp.concatenate([s, z, hidden], -1)
        d1 = jnp.maximum(inp @ df1_w + df1_b, 0.0)
        d2 = jnp.maximum(d1 @ df2_w + df2_b, 0.0)
        a_mean = d2 @ dm_w + dm_b
        a_logvar = d2 @ dl_w + dl_b
        nll_elem = (a - a_mean) ** 2 / jnp.exp(a_logvar) + a_logvar + LOG2PI
        nll = nll + 0.5 * jnp.sum(nll_elem)
        hidden = gru(jnp.concatenate([s, a], -1), hidden, dr_wih, dr_whh, dr_bih, dr_bhh)
    return kl_true, kl, nll, z_mean


# ----------------------------------------------------------------------------
if __name__ == "__main__":
    # model_config (small): recurrent, num_layers=1
    STATE_DIM, ACTION_DIM = 4, 4
    Z_DIM, H_DIM, RNN_DIM = 8, 32, 32
    T, B = 8, 8   # B=8 fills one sublane tile; any B works (bigger B amortizes)

    key = jax.random.PRNGKey(0)
    kw, ks, ka, ke = jax.random.split(key, 4)
    weights = init_weights(kw, STATE_DIM, ACTION_DIM, Z_DIM, H_DIM, RNN_DIM)

    # Pack the weight slabs ONCE at load time (outside the jitted per-call path).
    packed = pack_weights(weights, STATE_DIM, ACTION_DIM, Z_DIM, H_DIM, RNN_DIM)
    packed = tuple(jax.device_put(p) for p in packed)

    # Batch-major inputs (as the nn.Module receives them), then transpose to
    # time-major exactly like TMAE.forward does.
    states_bt = jax.random.normal(ks, (B, T + 1, STATE_DIM), jnp.float32)
    actions_bt = jax.random.normal(ka, (B, T, ACTION_DIM), jnp.float32)
    eps = jax.random.normal(ke, (B, Z_DIM), jnp.float32)   # posterior.sample() noise

    states = jnp.transpose(states_bt, (1, 0, 2))   # (T+1, B, S)
    actions = jnp.transpose(actions_bt, (1, 0, 2)) # (T, B, A)

    kl_true, kl, nll, zmean = jax.block_until_ready(
        tmae_forward(packed, states, actions, eps))

    with jax.default_matmul_precision("float32"):
        r_kl_true, r_kl, r_nll, r_zmean = tmae_reference(
            weights, states, actions, eps, Z_DIM)

    # Tolerances reflect bf16 MXU operands (f32 accumulation) in the kernel.
    TOL = dict(rtol=2e-2, atol=2e-2)
    np.testing.assert_allclose(np.array(kl_true), np.array(r_kl_true), **TOL)
    np.testing.assert_allclose(np.array(kl), np.array(r_kl), **TOL)
    np.testing.assert_allclose(np.array(nll), np.array(r_nll), **TOL)
    np.testing.assert_allclose(np.array(zmean), np.array(r_zmean), **TOL)

    print("KERNEL_OK")
</pallas_src>

<mosaic_0001>
module attributes {stable_mosaic.version = 11 : i64} {
  func.func @tmae_kernel(%arg0: memref<64x8xbf16, #tpu.memory_space<vmem>>, %arg1: memref<8x8x4xf32, #tpu.memory_space<vmem>>, %arg2: memref<8x8xf32, #tpu.memory_space<vmem>>, %arg3: memref<8x1184xbf16, #tpu.memory_space<vmem>>, %arg4: memref<1x1184xf32, #tpu.memory_space<vmem>>, %arg5: memref<3x32x384xbf16, #tpu.memory_space<any>>, %arg6: memref<3x1x384xf32, #tpu.memory_space<vmem>>, %arg7: memref<3x32x32xbf16, #tpu.memory_space<any>>, %arg8: memref<144x256xbf16, #tpu.memory_space<any>>, %arg9: memref<8x256xf32, #tpu.memory_space<vmem>>, %arg10: memref<1x128xf32, #tpu.memory_space<vmem>>, %arg11: memref<8x128xf32, #tpu.memory_space<vmem>>, %arg12: memref<3x32x384xbf16, #tpu.memory_space<vmem>>, %arg13: memref<3x32x32xbf16, #tpu.memory_space<vmem>>, %arg14: memref<144x256xbf16, #tpu.memory_space<vmem>>, %arg15: memref<3x!tpu.dma_semaphore, #tpu.memory_space<semaphore_mem>>) attributes {dimension_semantics = [], scalar_prefetch = 0 : i64, scratch_operands = 4 : i64, tpu.core_type = #tpu.core_type<tc>} {
    %c0_i32 = arith.constant 0 : i32
    %0 = tpu.memref_slice %arg15[%c0_i32] : memref<3x!tpu.dma_semaphore, #tpu.memory_space<semaphore_mem>> -> memref<1x!tpu.dma_semaphore, #tpu.memory_space<semaphore_mem>>
    %1 = tpu.memref_squeeze %0 : memref<1x!tpu.dma_semaphore, #tpu.memory_space<semaphore_mem>> -> memref<!tpu.dma_semaphore, #tpu.memory_space<semaphore_mem>>
    tpu.enqueue_dma source(%arg5 : memref<3x32x384xbf16, #tpu.memory_space<any>>) target(%arg12 : memref<3x32x384xbf16, #tpu.memory_space<vmem>>) target_semaphore(%1 : memref<!tpu.dma_semaphore, #tpu.memory_space<semaphore_mem>>)
    %c1_i32 = arith.constant 1 : i32
    %2 = tpu.memref_slice %arg15[%c1_i32] : memref<3x!tpu.dma_semaphore, #tpu.memory_space<semaphore_mem>> -> memref<1x!tpu.dma_semaphore, #tpu.memory_space<semaphore_mem>>
    %3 = tpu.memref_squeeze %2 : memref<1x!tpu.dma_semaphore, #tpu.memory_space<semaphore_mem>> -> memref<!tpu.dma_semaphore, #tpu.memory_space<semaphore_mem>>
    tpu.enqueue_dma source(%arg7 : memref<3x32x32xbf16, #tpu.memory_space<any>>) target(%arg13 : memref<3x32x32xbf16, #tpu.memory_space<vmem>>) target_semaphore(%3 : memref<!tpu.dma_semaphore, #tpu.memory_space<semaphore_mem>>)
    %c2_i32 = arith.constant 2 : i32
    %4 = tpu.memref_slice %arg15[%c2_i32] : memref<3x!tpu.dma_semaphore, #tpu.memory_space<semaphore_mem>> -> memref<1x!tpu.dma_semaphore, #tpu.memory_space<semaphore_mem>>
    %5 = tpu.memref_squeeze %4 : memref<1x!tpu.dma_semaphore, #tpu.memory_space<semaphore_mem>> -> memref<!tpu.dma_semaphore, #tpu.memory_space<semaphore_mem>>
    tpu.enqueue_dma source(%arg8 : memref<144x256xbf16, #tpu.memory_space<any>>) target(%arg14 : memref<144x256xbf16, #tpu.memory_space<vmem>>) target_semaphore(%5 : memref<!tpu.dma_semaphore, #tpu.memory_space<semaphore_mem>>)
    %c0 = arith.constant 0 : index
    %c0_0 = arith.constant 0 : index
    %6 = vector.load %arg0[%c0, %c0_0] : memref<64x8xbf16, #tpu.memory_space<vmem>>, vector<64x8xbf16>
    %c0_1 = arith.constant 0 : index
    %c0_2 = arith.constant 0 : index
    %7 = vector.load %arg3[%c0_1, %c0_2] : memref<8x1184xbf16, #tpu.memory_space<vmem>>, vector<8x1184xbf16>
    %cst = arith.constant dense<0.000000e+00> : vector<64x1184xf32>
    %8 = tpu.matmul %6, %7, %cst {dimension_numbers = #tpu.dot_dimension_numbers<[1], [0], [0], [1], [0, 0, 1, 1], [], []>} : vector<64x8xbf16>, vector<8x1184xbf16>, vector<64x1184xf32> -> vector<64x1184xf32>
    %c0_3 = arith.constant 0 : index
    %c0_4 = arith.constant 0 : index
    %9 = vector.load %arg4[%c0_3, %c0_4] : memref<1x1184xf32, #tpu.memory_space<vmem>>, vector<1x1184xf32>
    %10 = vector.broadcast %9 : vector<1x1184xf32> to vector<64x1184xf32>
    %11 = arith.addf %8, %10 : vector<64x1184xf32>
    %12 = vector.extract_strided_slice %11 {offsets = [0, 0], sizes = [64, 384], strides = [1, 1]} : vector<64x1184xf32> to vector<64x384xf32>
    %13 = vector.extract_strided_slice %11 {offsets = [0, 384], sizes = [64, 384], strides = [1, 1]} : vector<64x1184xf32> to vector<64x384xf32>
    %14 = vector.extract_strided_slice %11 {offsets = [0, 768], sizes = [64, 384], strides = [1, 1]} : vector<64x1184xf32> to vector<64x384xf32>
    %15 = vector.extract_strided_slice %11 {offsets = [0, 1152], sizes = [64, 32], strides = [1, 1]} : vector<64x1184xf32> to vector<64x32xf32>
    %c0_i32_5 = arith.constant 0 : i32
    %16 = tpu.memref_slice %arg15[%c0_i32_5] : memref<3x!tpu.dma_semaphore, #tpu.memory_space<semaphore_mem>> -> memref<1x!tpu.dma_semaphore, #tpu.memory_space<semaphore_mem>>
    %17 = tpu.memref_squeeze %16 : memref<1x!tpu.dma_semaphore, #tpu.memory_space<semaphore_mem>> -> memref<!tpu.dma_semaphore, #tpu.memory_space<semaphore_mem>>
    tpu.wait_dma2 semaphore(%17 : memref<!tpu.dma_semaphore, #tpu.memory_space<semaphore_mem>>) src(%arg5 : memref<3x32x384xbf16, #tpu.memory_space<any>>) dst(%arg12 : memref<3x32x384xbf16, #tpu.memory_space<vmem>>)
    %c1_i32_6 = arith.constant 1 : i32
    %18 = tpu.memref_slice %arg15[%c1_i32_6] : memref<3x!tpu.dma_semaphore, #tpu.memory_space<semaphore_mem>> -> memref<1x!tpu.dma_semaphore, #tpu.memory_space<semaphore_mem>>
    %19 = tpu.memref_squeeze %18 : memref<1x!tpu.dma_semaphore, #tpu.memory_space<semaphore_mem>> -> memref<!tpu.dma_semaphore, #tpu.memory_space<semaphore_mem>>
    tpu.wait_dma2 semaphore(%19 : memref<!tpu.dma_semaphore, #tpu.memory_space<semaphore_mem>>) src(%arg7 : memref<3x32x32xbf16, #tpu.memory_space<any>>) dst(%arg13 : memref<3x32x32xbf16, #tpu.memory_space<vmem>>)
    %c2_i32_7 = arith.constant 2 : i32
    %20 = tpu.memref_slice %arg15[%c2_i32_7] : memref<3x!tpu.dma_semaphore, #tpu.memory_space<semaphore_mem>> -> memref<1x!tpu.dma_semaphore, #tpu.memory_space<semaphore_mem>>
    %21 = tpu.memref_squeeze %20 : memref<1x!tpu.dma_semaphore, #tpu.memory_space<semaphore_mem>> -> memref<!tpu.dma_semaphore, #tpu.memory_space<semaphore_mem>>
    tpu.wait_dma2 semaphore(%21 : memref<!tpu.dma_semaphore, #tpu.memory_space<semaphore_mem>>) src(%arg8 : memref<144x256xbf16, #tpu.memory_space<any>>) dst(%arg14 : memref<144x256xbf16, #tpu.memory_space<vmem>>)
    %c0_8 = arith.constant 0 : index
    %c0_9 = arith.constant 0 : index
    %c0_10 = arith.constant 0 : index
    %22 = vector.load %arg12[%c0_8, %c0_9, %c0_10] : memref<3x32x384xbf16, #tpu.memory_space<vmem>>, vector<1x32x384xbf16>
    %23 = vector.shape_cast %22 : vector<1x32x384xbf16> to vector<32x384xbf16>
    %c1 = arith.constant 1 : index
    %c0_11 = arith.constant 0 : index
    %c0_12 = arith.constant 0 : index
    %24 = vector.load %arg12[%c1, %c0_11, %c0_12] : memref<3x32x384xbf16, #tpu.memory_space<vmem>>, vector<1x32x384xbf16>
    %25 = vector.shape_cast %24 : vector<1x32x384xbf16> to vector<32x384xbf16>
    %c2 = arith.constant 2 : index
    %c0_13 = arith.constant 0 : index
    %c0_14 = arith.constant 0 : index
    %26 = vector.load %arg12[%c2, %c0_13, %c0_14] : memref<3x32x384xbf16, #tpu.memory_space<vmem>>, vector<1x32x384xbf16>
    %27 = vector.shape_cast %26 : vector<1x32x384xbf16> to vector<32x384xbf16>
    %c0_15 = arith.constant 0 : index
    %c0_16 = arith.constant 0 : index
    %c0_17 = arith.constant 0 : index
    %28 = vector.load %arg6[%c0_15, %c0_16, %c0_17] : memref<3x1x384xf32, #tpu.memory_space<vmem>>, vector<1x1x384xf32>
    %29 = vector.shape_cast %28 : vector<1x1x384xf32> to vector<1x384xf32>
    %c1_18 = arith.constant 1 : index
    %c0_19 = arith.constant 0 : index
    %c0_20 = arith.constant 0 : index
    %30 = vector.load %arg6[%c1_18, %c0_19, %c0_20] : memref<3x1x384xf32, #tpu.memory_space<vmem>>, vector<1x1x384xf32>
    %31 = vector.shape_cast %30 : vector<1x1x384xf32> to vector<1x384xf32>
    %c2_21 = arith.constant 2 : index
    %c0_22 = arith.constant 0 : index
    %c0_23 = arith.constant 0 : index
    %32 = vector.load %arg6[%c2_21, %c0_22, %c0_23] : memref<3x1x384xf32, #tpu.memory_space<vmem>>, vector<1x1x384xf32>
    %33 = vector.shape_cast %32 : vector<1x1x384xf32> to vector<1x384xf32>
    %c0_24 = arith.constant 0 : index
    %c0_25 = arith.constant 0 : index
    %c0_26 = arith.constant 0 : index
    %34 = vector.load %arg13[%c0_24, %c0_25, %c0_26] : memref<3x32x32xbf16, #tpu.memory_space<vmem>>, vector<1x32x32xbf16>
    %35 = vector.shape_cast %34 : vector<1x32x32xbf16> to vector<32x32xbf16>
    %c1_27 = arith.constant 1 : index
    %c0_28 = arith.constant 0 : index
    %c0_29 = arith.constant 0 : index
    %36 = vector.load %arg13[%c1_27, %c0_28, %c0_29] : memref<3x32x32xbf16, #tpu.memory_space<vmem>>, vector<1x32x32xbf16>
    %37 = vector.shape_cast %36 : vector<1x32x32xbf16> to vector<32x32xbf16>
    %c2_30 = arith.constant 2 : index
    %c0_31 = arith.constant 0 : index
    %c0_32 = arith.constant 0 : index
    %38 = vector.load %arg13[%c2_30, %c0_31, %c0_32] : memref<3x32x32xbf16, #tpu.memory_space<vmem>>, vector<1x32x32xbf16>
    %39 = vector.shape_cast %38 : vector<1x32x32xbf16> to vector<32x32xbf16>
    %c0_33 = arith.constant 0 : index
    %c0_34 = arith.constant 0 : index
    %40 = vector.load %arg14[%c0_33, %c0_34] : memref<144x256xbf16, #tpu.memory_space<vmem>>, vector<32x32xbf16>
    %c32 = arith.constant 32 : index
    %c0_35 = arith.constant 0 : index
    %41 = vector.load %arg14[%c32, %c0_35] : memref<144x256xbf16, #tpu.memory_space<vmem>>, vector<32x32xbf16>
    %c64 = arith.constant 64 : index
    %c0_36 = arith.constant 0 : index
    %42 = vector.load %arg14[%c64, %c0_36] : memref<144x256xbf16, #tpu.memory_space<vmem>>, vector<32x256xbf16>
    %c96 = arith.constant 96 : index
    %c0_37 = arith.constant 0 : index
    %43 = vector.load %arg14[%c96, %c0_37] : memref<144x256xbf16, #tpu.memory_space<vmem>>, vector<32x256xbf16>
    %c128 = arith.constant 128 : index
    %c0_38 = arith.constant 0 : index
    %44 = vector.load %arg14[%c128, %c0_38] : memref<144x256xbf16, #tpu.memory_space<vmem>>, vector<8x32xbf16>
    %c0_39 = arith.constant 0 : index
    %c0_40 = arith.constant 0 : index
    %45 = vector.load %arg9[%c0_39, %c0_40] : memref<8x256xf32, #tpu.memory_space<vmem>>, vector<1x32xf32>
    %c1_41 = arith.constant 1 : index
    %c0_42 = arith.constant 0 : index
    %46 = vector.load %arg9[%c1_41, %c0_42] : memref<8x256xf32, #tpu.memory_space<vmem>>, vector<1x32xf32>
    %c2_43 = arith.constant 2 : index
    %c0_44 = arith.constant 0 : index
    %47 = vector.load %arg9[%c2_43, %c0_44] : memref<8x256xf32, #tpu.memory_space<vmem>>, vector<1x32xf32>
    %c3 = arith.constant 3 : index
    %c0_45 = arith.constant 0 : index
    %48 = vector.load %arg9[%c3, %c0_45] : memref<8x256xf32, #tpu.memory_space<vmem>>, vector<1x256xf32>
    %c4 = arith.constant 4 : index
    %c0_46 = arith.constant 0 : index
    %49 = vector.load %arg9[%c4, %c0_46] : memref<8x256xf32, #tpu.memory_space<vmem>>, vector<1x256xf32>
    %cst_47 = arith.constant 0.000000e+00 : f32
    %50 = vector.broadcast %cst_47 : f32 to vector<8x32xf32>
    %51 = vector.extract_strided_slice %12 {offsets = [0, 0], sizes = [8, 384], strides = [1, 1]} : vector<64x384xf32> to vector<8x384xf32>
    %52 = arith.truncf %50 : vector<8x32xf32> to vector<8x32xbf16>
    %cst_48 = arith.constant dense<0.000000e+00> : vector<8x384xf32>
    %53 = tpu.matmul %52, %23, %cst_48 {dimension_numbers = #tpu.dot_dimension_numbers<[1], [0], [0], [1], [0, 0, 1, 1], [], []>} : vector<8x32xbf16>, vector<32x384xbf16>, vector<8x384xf32> -> vector<8x384xf32>
    %54 = vector.broadcast %29 : vector<1x384xf32> to vector<8x384xf32>
    %55 = arith.addf %53, %54 : vector<8x384xf32>
    %56 = vector.extract_strided_slice %51 {offsets = [0, 0], sizes = [8, 32], strides = [1, 1]} : vector<8x384xf32> to vector<8x32xf32>
    %57 = vector.extract_strided_slice %55 {offsets = [0, 0], sizes = [8, 32], strides = [1, 1]} : vector<8x384xf32> to vector<8x32xf32>
    %58 = arith.addf %56, %57 : vector<8x32xf32>
    %59 = arith.negf %58 : vector<8x32xf32>
    %60 = math.exp %59 : vector<8x32xf32>
    %cst_49 = arith.constant 1.000000e+00 : f32
    %61 = vector.broadcast %cst_49 : f32 to vector<8x32xf32>
    %62 = arith.addf %61, %60 : vector<8x32xf32>
    %63 = arith.divf %61, %62 : vector<8x32xf32>
    %64 = vector.extract_strided_slice %51 {offsets = [0, 128], sizes = [8, 32], strides = [1, 1]} : vector<8x384xf32> to vector<8x32xf32>
    %65 = vector.extract_strided_slice %55 {offsets = [0, 128], sizes = [8, 32], strides = [1, 1]} : vector<8x384xf32> to vector<8x32xf32>
    %66 = arith.addf %64, %65 : vector<8x32xf32>
    %67 = arith.negf %66 : vector<8x32xf32>
    %68 = math.exp %67 : vector<8x32xf32>
    %cst_50 = arith.constant 1.000000e+00 : f32
    %69 = vector.broadcast %cst_50 : f32 to vector<8x32xf32>
    %70 = arith.addf %69, %68 : vector<8x32xf32>
    %71 = arith.divf %69, %70 : vector<8x32xf32>
    %72 = vector.extract_strided_slice %51 {offsets = [0, 256], sizes = [8, 32], strides = [1, 1]} : vector<8x384xf32> to vector<8x32xf32>
    %73 = vector.extract_strided_slice %55 {offsets = [0, 256], sizes = [8, 32], strides = [1, 1]} : vector<8x384xf32> to vector<8x32xf32>
    %74 = arith.mulf %63, %73 : vector<8x32xf32>
    %75 = arith.addf %72, %74 : vector<8x32xf32>
    %76 = math.tanh %75 : vector<8x32xf32>
    %cst_51 = arith.constant 1.000000e+00 : f32
    %77 = vector.broadcast %cst_51 : f32 to vector<8x32xf32>
    %78 = arith.subf %77, %71 : vector<8x32xf32>
    %79 = arith.mulf %78, %76 : vector<8x32xf32>
    %80 = arith.mulf %71, %50 : vector<8x32xf32>
    %81 = arith.addf %79, %80 : vector<8x32xf32>
    %82 = vector.extract_strided_slice %13 {offsets = [56, 0], sizes = [8, 384], strides = [1, 1]} : vector<64x384xf32> to vector<8x384xf32>
    %83 = arith.truncf %50 : vector<8x32xf32> to vector<8x32xbf16>
    %cst_52 = arith.constant dense<0.000000e+00> : vector<8x384xf32>
    %84 = tpu.matmul %83, %25, %cst_52 {dimension_numbers = #tpu.dot_dimension_numbers<[1], [0], [0], [1], [0, 0, 1, 1], [], []>} : vector<8x32xbf16>, vector<32x384xbf16>, vector<8x384xf32> -> vector<8x384xf32>
    %85 = vector.broadcast %31 : vector<1x384xf32> to vector<8x384xf32>
    %86 = arith.addf %84, %85 : vector<8x384xf32>
    %87 = vector.extract_strided_slice %82 {offsets = [0, 0], sizes = [8, 32], strides = [1, 1]} : vector<8x384xf32> to vector<8x32xf32>
    %88 = vector.extract_strided_slice %86 {offsets = [0, 0], sizes = [8, 32], strides = [1, 1]} : vector<8x384xf32> to vector<8x32xf32>
    %89 = arith.addf %87, %88 : vector<8x32xf32>
    %90 = arith.negf %89 : vector<8x32xf32>
    %91 = math.exp %90 : vector<8x32xf32>
    %cst_53 = arith.constant 1.000000e+00 : f32
    %92 = vector.broadcast %cst_53 : f32 to vector<8x32xf32>
    %93 = arith.addf %92, %91 : vector<8x32xf32>
    %94 = arith.divf %92, %93 : vector<8x32xf32>
    %95 = vector.extract_strided_slice %82 {offsets = [0, 128], sizes = [8, 32], strides = [1, 1]} : vector<8x384xf32> to vector<8x32xf32>
    %96 = vector.extract_strided_slice %86 {offsets = [0, 128], sizes = [8, 32], strides = [1, 1]} : vector<8x384xf32> to vector<8x32xf32>
    %97 = arith.addf %95, %96 : vector<8x32xf32>
    %98 = arith.negf %97 : vector<8x32xf32>
    %99 = math.exp %98 : vector<8x32xf32>
    %cst_54 = arith.constant 1.000000e+00 : f32
    %100 = vector.broadcast %cst_54 : f32 to vector<8x32xf32>
    %101 = arith.addf %100, %99 : vector<8x32xf32>
    %102 = arith.divf %100, %101 : vector<8x32xf32>
    %103 = vector.extract_strided_slice %82 {offsets = [0, 256], sizes = [8, 32], strides = [1, 1]} : vector<8x384xf32> to vector<8x32xf32>
    %104 = vector.extract_strided_slice %86 {offsets = [0, 256], sizes = [8, 32], strides = [1, 1]} : vector<8x384xf32> to vector<8x32xf32>
    %105 = arith.mulf %94, %104 : vector<8x32xf32>
    %106 = arith.addf %103, %105 : vector<8x32xf32>
    %107 = math.tanh %106 : vector<8x32xf32>
    %cst_55 = arith.constant 1.000000e+00 : f32
    %108 = vector.broadcast %cst_55 : f32 to vector<8x32xf32>
    %109 = arith.subf %108, %102 : vector<8x32xf32>
    %110 = arith.mulf %109, %107 : vector<8x32xf32>
    %111 = arith.mulf %102, %50 : vector<8x32xf32>
    %112 = arith.addf %110, %111 : vector<8x32xf32>
    %113 = arith.addf %50, %81 : vector<8x32xf32>
    %114 = arith.addf %50, %112 : vector<8x32xf32>
    %115 = vector.extract_strided_slice %12 {offsets = [8, 0], sizes = [8, 384], strides = [1, 1]} : vector<64x384xf32> to vector<8x384xf32>
    %116 = arith.truncf %81 : vector<8x32xf32> to vector<8x32xbf16>
    %cst_56 = arith.constant dense<0.000000e+00> : vector<8x384xf32>
    %117 = tpu.matmul %116, %23, %cst_56 {dimension_numbers = #tpu.dot_dimension_numbers<[1], [0], [0], [1], [0, 0, 1, 1], [], []>} : vector<8x32xbf16>, vector<32x384xbf16>, vector<8x384xf32> -> vector<8x384xf32>
    %118 = vector.broadcast %29 : vector<1x384xf32> to vector<8x384xf32>
    %119 = arith.addf %117, %118 : vector<8x384xf32>
    %120 = vector.extract_strided_slice %115 {offsets = [0, 0], sizes = [8, 32], strides = [1, 1]} : vector<8x384xf32> to vector<8x32xf32>
    %121 = vector.extract_strided_slice %119 {offsets = [0, 0], sizes = [8, 32], strides = [1, 1]} : vector<8x384xf32> to vector<8x32xf32>
    %122 = arith.addf %120, %121 : vector<8x32xf32>
    %123 = arith.negf %122 : vector<8x32xf32>
    %124 = math.exp %123 : vector<8x32xf32>
    %cst_57 = arith.constant 1.000000e+00 : f32
    %125 = vector.broadcast %cst_57 : f32 to vector<8x32xf32>
    %126 = arith.addf %125, %124 : vector<8x32xf32>
    %127 = arith.divf %125, %126 : vector<8x32xf32>
    %128 = vector.extract_strided_slice %115 {offsets = [0, 128], sizes = [8, 32], strides = [1, 1]} : vector<8x384xf32> to vector<8x32xf32>
    %129 = vector.extract_strided_slice %119 {offsets = [0, 128], sizes = [8, 32], strides = [1, 1]} : vector<8x384xf32> to vector<8x32xf32>
    %130 = arith.addf %128, %129 : vector<8x32xf32>
    %131 = arith.negf %130 : vector<8x32xf32>
    %132 = math.exp %131 : vector<8x32xf32>
    %cst_58 = arith.constant 1.000000e+00 : f32
    %133 = vector.broadcast %cst_58 : f32 to vector<8x32xf32>
    %134 = arith.addf %133, %132 : vector<8x32xf32>
    %135 = arith.divf %133, %134 : vector<8x32xf32>
    %136 = vector.extract_strided_slice %115 {offsets = [0, 256], sizes = [8, 32], strides = [1, 1]} : vector<8x384xf32> to vector<8x32xf32>
    %137 = vector.extract_strided_slice %119 {offsets = [0, 256], sizes = [8, 32], strides = [1, 1]} : vector<8x384xf32> to vector<8x32xf32>
    %138 = arith.mulf %127, %137 : vector<8x32xf32>
    %139 = arith.addf %136, %138 : vector<8x32xf32>
    %140 = math.tanh %139 : vector<8x32xf32>
    %cst_59 = arith.constant 1.000000e+00 : f32
    %141 = vector.broadcast %cst_59 : f32 to vector<8x32xf32>
    %142 = arith.subf %141, %135 : vector<8x32xf32>
    %143 = arith.mulf %142, %140 : vector<8x32xf32>
    %144 = arith.mulf %135, %81 : vector<8x32xf32>
    %145 = arith.addf %143, %144 : vector<8x32xf32>
    %146 = vector.extract_strided_slice %13 {offsets = [48, 0], sizes = [8, 384], strides = [1, 1]} : vector<64x384xf32> to vector<8x384xf32>
    %147 = arith.truncf %112 : vector<8x32xf32> to vector<8x32xbf16>
    %cst_60 = arith.constant dense<0.000000e+00> : vector<8x384xf32>
    %148 = tpu.matmul %147, %25, %cst_60 {dimension_numbers = #tpu.dot_dimension_numbers<[1], [0], [0], [1], [0, 0, 1, 1], [], []>} : vector<8x32xbf16>, vector<32x384xbf16>, vector<8x384xf32> -> vector<8x384xf32>
    %149 = vector.broadcast %31 : vector<1x384xf32> to vector<8x384xf32>
    %150 = arith.addf %148, %149 : vector<8x384xf32>
    %151 = vector.extract_strided_slice %146 {offsets = [0, 0], sizes = [8, 32], strides = [1, 1]} : vector<8x384xf32> to vector<8x32xf32>
    %152 = vector.extract_strided_slice %150 {offsets = [0, 0], sizes = [8, 32], strides = [1, 1]} : vector<8x384xf32> to vector<8x32xf32>
    %153 = arith.addf %151, %152 : vector<8x32xf32>
    %154 = arith.negf %153 : vector<8x32xf32>
    %155 = math.exp %154 : vector<8x32xf32>
    %cst_61 = arith.constant 1.000000e+00 : f32
    %156 = vector.broadcast %cst_61 : f32 to vector<8x32xf32>
    %157 = arith.addf %156, %155 : vector<8x32xf32>
    %158 = arith.divf %156, %157 : vector<8x32xf32>
    %159 = vector.extract_strided_slice %146 {offsets = [0, 128], sizes = [8, 32], strides = [1, 1]} : vector<8x384xf32> to vector<8x32xf32>
    %160 = vector.extract_strided_slice %150 {offsets = [0, 128], sizes = [8, 32], strides = [1, 1]} : vector<8x384xf32> to vector<8x32xf32>
    %161 = arith.addf %159, %160 : vector<8x32xf32>
    %162 = arith.negf %161 : vector<8x32xf32>
    %163 = math.exp %162 : vector<8x32xf32>
    %cst_62 = arith.constant 1.000000e+00 : f32
    %164 = vector.broadcast %cst_62 : f32 to vector<8x32xf32>
    %165 = arith.addf %164, %163 : vector<8x32xf32>
    %166 = arith.divf %164, %165 : vector<8x32xf32>
    %167 = vector.extract_strided_slice %146 {offsets = [0, 256], sizes = [8, 32], strides = [1, 1]} : vector<8x384xf32> to vector<8x32xf32>
    %168 = vector.extract_strided_slice %150 {offsets = [0, 256], sizes = [8, 32], strides = [1, 1]} : vector<8x384xf32> to vector<8x32xf32>
    %169 = arith.mulf %158, %168 : vector<8x32xf32>
    %170 = arith.addf %167, %169 : vector<8x32xf32>
    %171 = math.tanh %170 : vector<8x32xf32>
    %cst_63 = arith.constant 1.000000e+00 : f32
    %172 = vector.broadcast %cst_63 : f32 to vector<8x32xf32>
    %173 = arith.subf %172, %166 : vector<8x32xf32>
    %174 = arith.mulf %173, %171 : vector<8x32xf32>
    %175 = arith.mulf %166, %112 : vector<8x32xf32>
    %176 = arith.addf %174, %175 : vector<8x32xf32>
    %177 = arith.addf %113, %145 : vector<8x32xf32>
    %178 = arith.addf %114, %176 : vector<8x32xf32>
    %179 = vector.extract_strided_slice %12 {offsets = [16, 0], sizes = [8, 384], strides = [1, 1]} : vector<64x384xf32> to vector<8x384xf32>
    %180 = arith.truncf %145 : vector<8x32xf32> to vector<8x32xbf16>
    %cst_64 = arith.constant dense<0.000000e+00> : vector<8x384xf32>
    %181 = tpu.matmul %180, %23, %cst_64 {dimension_numbers = #tpu.dot_dimension_numbers<[1], [0], [0], [1], [0, 0, 1, 1], [], []>} : vector<8x32xbf16>, vector<32x384xbf16>, vector<8x384xf32> -> vector<8x384xf32>
    %182 = vector.broadcast %29 : vector<1x384xf32> to vector<8x384xf32>
    %183 = arith.addf %181, %182 : vector<8x384xf32>
    %184 = vector.extract_strided_slice %179 {offsets = [0, 0], sizes = [8, 32], strides = [1, 1]} : vector<8x384xf32> to vector<8x32xf32>
    %185 = vector.extract_strided_slice %183 {offsets = [0, 0], sizes = [8, 32], strides = [1, 1]} : vector<8x384xf32> to vector<8x32xf32>
    %186 = arith.addf %184, %185 : vector<8x32xf32>
    %187 = arith.negf %186 : vector<8x32xf32>
    %188 = math.exp %187 : vector<8x32xf32>
    %cst_65 = arith.constant 1.000000e+00 : f32
    %189 = vector.broadcast %cst_65 : f32 to vector<8x32xf32>
    %190 = arith.addf %189, %188 : vector<8x32xf32>
    %191 = arith.divf %189, %190 : vector<8x32xf32>
    %192 = vector.extract_strided_slice %179 {offsets = [0, 128], sizes = [8, 32], strides = [1, 1]} : vector<8x384xf32> to vector<8x32xf32>
    %193 = vector.extract_strided_slice %183 {offsets = [0, 128], sizes = [8, 32], strides = [1, 1]} : vector<8x384xf32> to vector<8x32xf32>
    %194 = arith.addf %192, %193 : vector<8x32xf32>
    %195 = arith.negf %194 : vector<8x32xf32>
    %196 = math.exp %195 : vector<8x32xf32>
    %cst_66 = arith.constant 1.000000e+00 : f32
    %197 = vector.broadcast %cst_66 : f32 to vector<8x32xf32>
    %198 = arith.addf %197, %196 : vector<8x32xf32>
    %199 = arith.divf %197, %198 : vector<8x32xf32>
    %200 = vector.extract_strided_slice %179 {offsets = [0, 256], sizes = [8, 32], strides = [1, 1]} : vector<8x384xf32> to vector<8x32xf32>
    %201 = vector.extract_strided_slice %183 {offsets = [0, 256], sizes = [8, 32], strides = [1, 1]} : vector<8x384xf32> to vector<8x32xf32>
    %202 = arith.mulf %191, %201 : vector<8x32xf32>
    %203 = arith.addf %200, %202 : vector<8x32xf32>
    %204 = math.tanh %203 : vector<8x32xf32>
    %cst_67 = arith.constant 1.000000e+00 : f32
    %205 = vector.broadcast %cst_67 : f32 to vector<8x32xf32>
    %206 = arith.subf %205, %199 : vector<8x32xf32>
    %207 = arith.mulf %206, %204 : vector<8x32xf32>
    %208 = arith.mulf %199, %145 : vector<8x32xf32>
    %209 = arith.addf %207, %208 : vector<8x32xf32>
    %210 = vector.extract_strided_slice %13 {offsets = [40, 0], sizes = [8, 384], strides = [1, 1]} : vector<64x384xf32> to vector<8x384xf32>
    %211 = arith.truncf %176 : vector<8x32xf32> to vector<8x32xbf16>
    %cst_68 = arith.constant dense<0.000000e+00> : vector<8x384xf32>
    %212 = tpu.matmul %211, %25, %cst_68 {dimension_numbers = #tpu.dot_dimension_numbers<[1], [0], [0], [1], [0, 0, 1, 1], [], []>} : vector<8x32xbf16>, vector<32x384xbf16>, vector<8x384xf32> -> vector<8x384xf32>
    %213 = vector.broadcast %31 : vector<1x384xf32> to vector<8x384xf32>
    %214 = arith.addf %212, %213 : vector<8x384xf32>
    %215 = vector.extract_strided_slice %210 {offsets = [0, 0], sizes = [8, 32], strides = [1, 1]} : vector<8x384xf32> to vector<8x32xf32>
    %216 = vector.extract_strided_slice %214 {offsets = [0, 0], sizes = [8, 32], strides = [1, 1]} : vector<8x384xf32> to vector<8x32xf32>
    %217 = arith.addf %215, %216 : vector<8x32xf32>
    %218 = arith.negf %217 : vector<8x32xf32>
    %219 = math.exp %218 : vector<8x32xf32>
    %cst_69 = arith.constant 1.000000e+00 : f32
    %220 = vector.broadcast %cst_69 : f32 to vector<8x32xf32>
    %221 = arith.addf %220, %219 : vector<8x32xf32>
    %222 = arith.divf %220, %221 : vector<8x32xf32>
    %223 = vector.extract_strided_slice %210 {offsets = [0, 128], sizes = [8, 32], strides = [1, 1]} : vector<8x384xf32> to vector<8x32xf32>
    %224 = vector.extract_strided_slice %214 {offsets = [0, 128], sizes = [8, 32], strides = [1, 1]} : vector<8x384xf32> to vector<8x32xf32>
    %225 = arith.addf %223, %224 : vector<8x32xf32>
    %226 = arith.negf %225 : vector<8x32xf32>
    %227 = math.exp %226 : vector<8x32xf32>
    %cst_70 = arith.constant 1.000000e+00 : f32
    %228 = vector.broadcast %cst_70 : f32 to vector<8x32xf32>
    %229 = arith.addf %228, %227 : vector<8x32xf32>
    %230 = arith.divf %228, %229 : vector<8x32xf32>
    %231 = vector.extract_strided_slice %210 {offsets = [0, 256], sizes = [8, 32], strides = [1, 1]} : vector<8x384xf32> to vector<8x32xf32>
    %232 = vector.extract_strided_slice %214 {offsets = [0, 256], sizes = [8, 32], strides = [1, 1]} : vector<8x384xf32> to vector<8x32xf32>
    %233 = arith.mulf %222, %232 : vector<8x32xf32>
    %234 = arith.addf %231, %233 : vector<8x32xf32>
    %235 = math.tanh %234 : vector<8x32xf32>
    %cst_71 = arith.constant 1.000000e+00 : f32
    %236 = vector.broadcast %cst_71 : f32 to vector<8x32xf32>
    %237 = arith.subf %236, %230 : vector<8x32xf32>
    %238 = arith.mulf %237, %235 : vector<8x32xf32>
    %239 = arith.mulf %230, %176 : vector<8x32xf32>
    %240 = arith.addf %238, %239 : vector<8x32xf32>
    %241 = arith.addf %177, %209 : vector<8x32xf32>
    %242 = arith.addf %178, %240 : vector<8x32xf32>
    %243 = vector.extract_strided_slice %12 {offsets = [24, 0], sizes = [8, 384], strides = [1, 1]} : vector<64x384xf32> to vector<8x384xf32>
    %244 = arith.truncf %209 : vector<8x32xf32> to vector<8x32xbf16>
    %cst_72 = arith.constant dense<0.000000e+00> : vector<8x384xf32>
    %245 = tpu.matmul %244, %23, %cst_72 {dimension_numbers = #tpu.dot_dimension_numbers<[1], [0], [0], [1], [0, 0, 1, 1], [], []>} : vector<8x32xbf16>, vector<32x384xbf16>, vector<8x384xf32> -> vector<8x384xf32>
    %246 = vector.broadcast %29 : vector<1x384xf32> to vector<8x384xf32>
    %247 = arith.addf %245, %246 : vector<8x384xf32>
    %248 = vector.extract_strided_slice %243 {offsets = [0, 0], sizes = [8, 32], strides = [1, 1]} : vector<8x384xf32> to vector<8x32xf32>
    %249 = vector.extract_strided_slice %247 {offsets = [0, 0], sizes = [8, 32], strides = [1, 1]} : vector<8x384xf32> to vector<8x32xf32>
    %250 = arith.addf %248, %249 : vector<8x32xf32>
    %251 = arith.negf %250 : vector<8x32xf32>
    %252 = math.exp %251 : vector<8x32xf32>
    %cst_73 = arith.constant 1.000000e+00 : f32
    %253 = vector.broadcast %cst_73 : f32 to vector<8x32xf32>
    %254 = arith.addf %253, %252 : vector<8x32xf32>
    %255 = arith.divf %253, %254 : vector<8x32xf32>
    %256 = vector.extract_strided_slice %243 {offsets = [0, 128], sizes = [8, 32], strides = [1, 1]} : vector<8x384xf32> to vector<8x32xf32>
    %257 = vector.extract_strided_slice %247 {offsets = [0, 128], sizes = [8, 32], strides = [1, 1]} : vector<8x384xf32> to vector<8x32xf32>
    %258 = arith.addf %256, %257 : vector<8x32xf32>
    %259 = arith.negf %258 : vector<8x32xf32>
    %260 = math.exp %259 : vector<8x32xf32>
    %cst_74 = arith.constant 1.000000e+00 : f32
    %261 = vector.broadcast %cst_74 : f32 to vector<8x32xf32>
    %262 = arith.addf %261, %260 : vector<8x32xf32>
    %263 = arith.divf %261, %262 : vector<8x32xf32>
    %264 = vector.extract_strided_slice %243 {offsets = [0, 256], sizes = [8, 32], strides = [1, 1]} : vector<8x384xf32> to vector<8x32xf32>
    %265 = vector.extract_strided_slice %247 {offsets = [0, 256], sizes = [8, 32], strides = [1, 1]} : vector<8x384xf32> to vector<8x32xf32>
    %266 = arith.mulf %255, %265 : vector<8x32xf32>
    %267 = arith.addf %264, %266 : vector<8x32xf32>
    %268 = math.tanh %267 : vector<8x32xf32>
    %cst_75 = arith.constant 1.000000e+00 : f32
    %269 = vector.broadcast %cst_75 : f32 to vector<8x32xf32>
    %270 = arith.subf %269, %263 : vector<8x32xf32>
    %271 = arith.mulf %270, %268 : vector<8x32xf32>
    %272 = arith.mulf %263, %209 : vector<8x32xf32>
    %273 = arith.addf %271, %272 : vector<8x32xf32>
    %274 = vector.extract_strided_slice %13 {offsets = [32, 0], sizes = [8, 384], strides = [1, 1]} : vector<64x384xf32> to vector<8x384xf32>
    %275 = arith.truncf %240 : vector<8x32xf32> to vector<8x32xbf16>
    %cst_76 = arith.constant dense<0.000000e+00> : vector<8x384xf32>
    %276 = tpu.matmul %275, %25, %cst_76 {dimension_numbers = #tpu.dot_dimension_numbers<[1], [0], [0], [1], [0, 0, 1, 1], [], []>} : vector<8x32xbf16>, vector<32x384xbf16>, vector<8x384xf32> -> vector<8x384xf32>
    %277 = vector.broadcast %31 : vector<1x384xf32> to vector<8x384xf32>
    %278 = arith.addf %276, %277 : vector<8x384xf32>
    %279 = vector.extract_strided_slice %274 {offsets = [0, 0], sizes = [8, 32], strides = [1, 1]} : vector<8x384xf32> to vector<8x32xf32>
    %280 = vector.extract_strided_slice %278 {offsets = [0, 0], sizes = [8, 32], strides = [1, 1]} : vector<8x384xf32> to vector<8x32xf32>
    %281 = arith.addf %279, %280 : vector<8x32xf32>
    %282 = arith.negf %281 : vector<8x32xf32>
    %283 = math.exp %282 : vector<8x32xf32>
    %cst_77 = arith.constant 1.000000e+00 : f32
    %284 = vector.broadcast %cst_77 : f32 to vector<8x32xf32>
    %285 = arith.addf %284, %283 : vector<8x32xf32>
    %286 = arith.divf %284, %285 : vector<8x32xf32>
    %287 = vector.extract_strided_slice %274 {offsets = [0, 128], sizes = [8, 32], strides = [1, 1]} : vector<8x384xf32> to vector<8x32xf32>
    %288 = vector.extract_strided_slice %278 {offsets = [0, 128], sizes = [8, 32], strides = [1, 1]} : vector<8x384xf32> to vector<8x32xf32>
    %289 = arith.addf %287, %288 : vector<8x32xf32>
    %290 = arith.negf %289 : vector<8x32xf32>
    %291 = math.exp %290 : vector<8x32xf32>
    %cst_78 = arith.constant 1.000000e+00 : f32
    %292 = vector.broadcast %cst_78 : f32 to vector<8x32xf32>
    %293 = arith.addf %292, %291 : vector<8x32xf32>
    %294 = arith.divf %292, %293 : vector<8x32xf32>
    %295 = vector.extract_strided_slice %274 {offsets = [0, 256], sizes = [8, 32], strides = [1, 1]} : vector<8x384xf32> to vector<8x32xf32>
    %296 = vector.extract_strided_slice %278 {offsets = [0, 256], sizes = [8, 32], strides = [1, 1]} : vector<8x384xf32> to vector<8x32xf32>
    %297 = arith.mulf %286, %296 : vector<8x32xf32>
    %298 = arith.addf %295, %297 : vector<8x32xf32>
    %299 = math.tanh %298 : vector<8x32xf32>
    %cst_79 = arith.constant 1.000000e+00 : f32
    %300 = vector.broadcast %cst_79 : f32 to vector<8x32xf32>
    %301 = arith.subf %300, %294 : vector<8x32xf32>
    %302 = arith.mulf %301, %299 : vector<8x32xf32>
    %303 = arith.mulf %294, %240 : vector<8x32xf32>
    %304 = arith.addf %302, %303 : vector<8x32xf32>
    %305 = arith.addf %241, %273 : vector<8x32xf32>
    %306 = arith.addf %242, %304 : vector<8x32xf32>
    %307 = vector.extract_strided_slice %12 {offsets = [32, 0], sizes = [8, 384], strides = [1, 1]} : vector<64x384xf32> to vector<8x384xf32>
    %308 = arith.truncf %273 : vector<8x32xf32> to vector<8x32xbf16>
    %cst_80 = arith.constant dense<0.000000e+00> : vector<8x384xf32>
    %309 = tpu.matmul %308, %23, %cst_80 {dimension_numbers = #tpu.dot_dimension_numbers<[1], [0], [0], [1], [0, 0, 1, 1], [], []>} : vector<8x32xbf16>, vector<32x384xbf16>, vector<8x384xf32> -> vector<8x384xf32>
    %310 = vector.broadcast %29 : vector<1x384xf32> to vector<8x384xf32>
    %311 = arith.addf %309, %310 : vector<8x384xf32>
    %312 = vector.extract_strided_slice %307 {offsets = [0, 0], sizes = [8, 32], strides = [1, 1]} : vector<8x384xf32> to vector<8x32xf32>
    %313 = vector.extract_strided_slice %311 {offsets = [0, 0], sizes = [8, 32], strides = [1, 1]} : vector<8x384xf32> to vector<8x32xf32>
    %314 = arith.addf %312, %313 : vector<8x32xf32>
    %315 = arith.negf %314 : vector<8x32xf32>
    %316 = math.exp %315 : vector<8x32xf32>
    %cst_81 = arith.constant 1.000000e+00 : f32
    %317 = vector.broadcast %cst_81 : f32 to vector<8x32xf32>
    %318 = arith.addf %317, %316 : vector<8x32xf32>
    %319 = arith.divf %317, %318 : vector<8x32xf32>
    %320 = vector.extract_strided_slice %307 {offsets = [0, 128], sizes = [8, 32], strides = [1, 1]} : vector<8x384xf32> to vector<8x32xf32>
    %321 = vector.extract_strided_slice %311 {offsets = [0, 128], sizes = [8, 32], strides = [1, 1]} : vector<8x384xf32> to vector<8x32xf32>
    %322 = arith.addf %320, %321 : vector<8x32xf32>
    %323 = arith.negf %322 : vector<8x32xf32>
    %324 = math.exp %323 : vector<8x32xf32>
    %cst_82 = arith.constant 1.000000e+00 : f32
    %325 = vector.broadcast %cst_82 : f32 to vector<8x32xf32>
    %326 = arith.addf %325, %324 : vector<8x32xf32>
    %327 = arith.divf %325, %326 : vector<8x32xf32>
    %328 = vector.extract_strided_slice %307 {offsets = [0, 256], sizes = [8, 32], strides = [1, 1]} : vector<8x384xf32> to vector<8x32xf32>
    %329 = vector.extract_strided_slice %311 {offsets = [0, 256], sizes = [8, 32], strides = [1, 1]} : vector<8x384xf32> to vector<8x32xf32>
    %330 = arith.mulf %319, %329 : vector<8x32xf32>
    %331 = arith.addf %328, %330 : vector<8x32xf32>
    %332 = math.tanh %331 : vector<8x32xf32>
    %cst_83 = arith.constant 1.000000e+00 : f32
    %333 = vector.broadcast %cst_83 : f32 to vector<8x32xf32>
    %334 = arith.subf %333, %327 : vector<8x32xf32>
    %335 = arith.mulf %334, %332 : vector<8x32xf32>
    %336 = arith.mulf %327, %273 : vector<8x32xf32>
    %337 = arith.addf %335, %336 : vector<8x32xf32>
    %338 = vector.extract_strided_slice %13 {offsets = [24, 0], sizes = [8, 384], strides = [1, 1]} : vector<64x384xf32> to vector<8x384xf32>
    %339 = arith.truncf %304 : vector<8x32xf32> to vector<8x32xbf16>
    %cst_84 = arith.constant dense<0.000000e+00> : vector<8x384xf32>
    %340 = tpu.matmul %339, %25, %cst_84 {dimension_numbers = #tpu.dot_dimension_numbers<[1], [0], [0], [1], [0, 0, 1, 1], [], []>} : vector<8x32xbf16>, vector<32x384xbf16>, vector<8x384xf32> -> vector<8x384xf32>
    %341 = vector.broadcast %31 : vector<1x384xf32> to vector<8x384xf32>
    %342 = arith.addf %340, %341 : vector<8x384xf32>
    %343 = vector.extract_strided_slice %338 {offsets = [0, 0], sizes = [8, 32], strides = [1, 1]} : vector<8x384xf32> to vector<8x32xf32>
    %344 = vector.extract_strided_slice %342 {offsets = [0, 0], sizes = [8, 32], strides = [1, 1]} : vector<8x384xf32> to vector<8x32xf32>
    %345 = arith.addf %343, %344 : vector<8x32xf32>
    %346 = arith.negf %345 : vector<8x32xf32>
    %347 = math.exp %346 : vector<8x32xf32>
    %cst_85 = arith.constant 1.000000e+00 : f32
    %348 = vector.broadcast %cst_85 : f32 to vector<8x32xf32>
    %349 = arith.addf %348, %347 : vector<8x32xf32>
    %350 = arith.divf %348, %349 : vector<8x32xf32>
    %351 = vector.extract_strided_slice %338 {offsets = [0, 128], sizes = [8, 32], strides = [1, 1]} : vector<8x384xf32> to vector<8x32xf32>
    %352 = vector.extract_strided_slice %342 {offsets = [0, 128], sizes = [8, 32], strides = [1, 1]} : vector<8x384xf32> to vector<8x32xf32>
    %353 = arith.addf %351, %352 : vector<8x32xf32>
    %354 = arith.negf %353 : vector<8x32xf32>
    %355 = math.exp %354 : vector<8x32xf32>
    %cst_86 = arith.constant 1.000000e+00 : f32
    %356 = vector.broadcast %cst_86 : f32 to vector<8x32xf32>
    %357 = arith.addf %356, %355 : vector<8x32xf32>
    %358 = arith.divf %356, %357 : vector<8x32xf32>
    %359 = vector.extract_strided_slice %338 {offsets = [0, 256], sizes = [8, 32], strides = [1, 1]} : vector<8x384xf32> to vector<8x32xf32>
    %360 = vector.extract_strided_slice %342 {offsets = [0, 256], sizes = [8, 32], strides = [1, 1]} : vector<8x384xf32> to vector<8x32xf32>
    %361 = arith.mulf %350, %360 : vector<8x32xf32>
    %362 = arith.addf %359, %361 : vector<8x32xf32>
    %363 = math.tanh %362 : vector<8x32xf32>
    %cst_87 = arith.constant 1.000000e+00 : f32
    %364 = vector.broadcast %cst_87 : f32 to vector<8x32xf32>
    %365 = arith.subf %364, %358 : vector<8x32xf32>
    %366 = arith.mulf %365, %363 : vector<8x32xf32>
    %367 = arith.mulf %358, %304 : vector<8x32xf32>
    %368 = arith.addf %366, %367 : vector<8x32xf32>
    %369 = arith.addf %305, %337 : vector<8x32xf32>
    %370 = arith.addf %306, %368 : vector<8x32xf32>
    %371 = vector.extract_strided_slice %12 {offsets = [40, 0], sizes = [8, 384], strides = [1, 1]} : vector<64x384xf32> to vector<8x384xf32>
    %372 = arith.truncf %337 : vector<8x32xf32> to vector<8x32xbf16>
    %cst_88 = arith.constant dense<0.000000e+00> : vector<8x384xf32>
    %373 = tpu.matmul %372, %23, %cst_88 {dimension_numbers = #tpu.dot_dimension_numbers<[1], [0], [0], [1], [0, 0, 1, 1], [], []>} : vector<8x32xbf16>, vector<32x384xbf16>, vector<8x384xf32> -> vector<8x384xf32>
    %374 = vector.broadcast %29 : vector<1x384xf32> to vector<8x384xf32>
    %375 = arith.addf %373, %374 : vector<8x384xf32>
    %376 = vector.extract_strided_slice %371 {offsets = [0, 0], sizes = [8, 32], strides = [1, 1]} : vector<8x384xf32> to vector<8x32xf32>
    %377 = vector.extract_strided_slice %375 {offsets = [0, 0], sizes = [8, 32], strides = [1, 1]} : vector<8x384xf32> to vector<8x32xf32>
    %378 = arith.addf %376, %377 : vector<8x32xf32>
    %379 = arith.negf %378 : vector<8x32xf32>
    %380 = math.exp %379 : vector<8x32xf32>
    %cst_89 = arith.constant 1.000000e+00 : f32
    %381 = vector.broadcast %cst_89 : f32 to vector<8x32xf32>
    %382 = arith.addf %381, %380 : vector<8x32xf32>
    %383 = arith.divf %381, %382 : vector<8x32xf32>
    %384 = vector.extract_strided_slice %371 {offsets = [0, 128], sizes = [8, 32], strides = [1, 1]} : vector<8x384xf32> to vector<8x32xf32>
    %385 = vector.extract_strided_slice %375 {offsets = [0, 128], sizes = [8, 32], strides = [1, 1]} : vector<8x384xf32> to vector<8x32xf32>
    %386 = arith.addf %384, %385 : vector<8x32xf32>
    %387 = arith.negf %386 : vector<8x32xf32>
    %388 = math.exp %387 : vector<8x32xf32>
    %cst_90 = arith.constant 1.000000e+00 : f32
    %389 = vector.broadcast %cst_90 : f32 to vector<8x32xf32>
    %390 = arith.addf %389, %388 : vector<8x32xf32>
    %391 = arith.divf %389, %390 : vector<8x32xf32>
    %392 = vector.extract_strided_slice %371 {offsets = [0, 256], sizes = [8, 32], strides = [1, 1]} : vector<8x384xf32> to vector<8x32xf32>
    %393 = vector.extract_strided_slice %375 {offsets = [0, 256], sizes = [8, 32], strides = [1, 1]} : vector<8x384xf32> to vector<8x32xf32>
    %394 = arith.mulf %383, %393 : vector<8x32xf32>
    %395 = arith.addf %392, %394 : vector<8x32xf32>
    %396 = math.tanh %395 : vector<8x32xf32>
    %cst_91 = arith.constant 1.000000e+00 : f32
    %397 = vector.broadcast %cst_91 : f32 to vector<8x32xf32>
    %398 = arith.subf %397, %391 : vector<8x32xf32>
    %399 = arith.mulf %398, %396 : vector<8x32xf32>
    %400 = arith.mulf %391, %337 : vector<8x32xf32>
    %401 = arith.addf %399, %400 : vector<8x32xf32>
    %402 = vector.extract_strided_slice %13 {offsets = [16, 0], sizes = [8, 384], strides = [1, 1]} : vector<64x384xf32> to vector<8x384xf32>
    %403 = arith.truncf %368 : vector<8x32xf32> to vector<8x32xbf16>
    %cst_92 = arith.constant dense<0.000000e+00> : vector<8x384xf32>
    %404 = tpu.matmul %403, %25, %cst_92 {dimension_numbers = #tpu.dot_dimension_numbers<[1], [0], [0], [1], [0, 0, 1, 1], [], []>} : vector<8x32xbf16>, vector<32x384xbf16>, vector<8x384xf32> -> vector<8x384xf32>
    %405 = vector.broadcast %31 : vector<1x384xf32> to vector<8x384xf32>
    %406 = arith.addf %404, %405 : vector<8x384xf32>
    %407 = vector.extract_strided_slice %402 {offsets = [0, 0], sizes = [8, 32], strides = [1, 1]} : vector<8x384xf32> to vector<8x32xf32>
    %408 = vector.extract_strided_slice %406 {offsets = [0, 0], sizes = [8, 32], strides = [1, 1]} : vector<8x384xf32> to vector<8x32xf32>
    %409 = arith.addf %407, %408 : vector<8x32xf32>
    %410 = arith.negf %409 : vector<8x32xf32>
    %411 = math.exp %410 : vector<8x32xf32>
    %cst_93 = arith.constant 1.000000e+00 : f32
    %412 = vector.broadcast %cst_93 : f32 to vector<8x32xf32>
    %413 = arith.addf %412, %411 : vector<8x32xf32>
    %414 = arith.divf %412, %413 : vector<8x32xf32>
    %415 = vector.extract_strided_slice %402 {offsets = [0, 128], sizes = [8, 32], strides = [1, 1]} : vector<8x384xf32> to vector<8x32xf32>
    %416 = vector.extract_strided_slice %406 {offsets = [0, 128], sizes = [8, 32], strides = [1, 1]} : vector<8x384xf32> to vector<8x32xf32>
    %417 = arith.addf %415, %416 : vector<8x32xf32>
    %418 = arith.negf %417 : vector<8x32xf32>
    %419 = math.exp %418 : vector<8x32xf32>
    %cst_94 = arith.constant 1.000000e+00 : f32
    %420 = vector.broadcast %cst_94 : f32 to vector<8x32xf32>
    %421 = arith.addf %420, %419 : vector<8x32xf32>
    %422 = arith.divf %420, %421 : vector<8x32xf32>
    %423 = vector.extract_strided_slice %402 {offsets = [0, 256], sizes = [8, 32], strides = [1, 1]} : vector<8x384xf32> to vector<8x32xf32>
    %424 = vector.extract_strided_slice %406 {offsets = [0, 256], sizes = [8, 32], strides = [1, 1]} : vector<8x384xf32> to vector<8x32xf32>
    %425 = arith.mulf %414, %424 : vector<8x32xf32>
    %426 = arith.addf %423, %425 : vector<8x32xf32>
    %427 = math.tanh %426 : vector<8x32xf32>
    %cst_95 = arith.constant 1.000000e+00 : f32
    %428 = vector.broadcast %cst_95 : f32 to vector<8x32xf32>
    %429 = arith.subf %428, %422 : vector<8x32xf32>
    %430 = arith.mulf %429, %427 : vector<8x32xf32>
    %431 = arith.mulf %422, %368 : vector<8x32xf32>
    %432 = arith.addf %430, %431 : vector<8x32xf32>
    %433 = arith.addf %369, %401 : vector<8x32xf32>
    %434 = arith.addf %370, %432 : vector<8x32xf32>
    %435 = vector.extract_strided_slice %12 {offsets = [48, 0], sizes = [8, 384], strides = [1, 1]} : vector<64x384xf32> to vector<8x384xf32>
    %436 = arith.truncf %401 : vector<8x32xf32> to vector<8x32xbf16>
    %cst_96 = arith.constant dense<0.000000e+00> : vector<8x384xf32>
    %437 = tpu.matmul %436, %23, %cst_96 {dimension_numbers = #tpu.dot_dimension_numbers<[1], [0], [0], [1], [0, 0, 1, 1], [], []>} : vector<8x32xbf16>, vector<32x384xbf16>, vector<8x384xf32> -> vector<8x384xf32>
    %438 = vector.broadcast %29 : vector<1x384xf32> to vector<8x384xf32>
    %439 = arith.addf %437, %438 : vector<8x384xf32>
    %440 = vector.extract_strided_slice %435 {offsets = [0, 0], sizes = [8, 32], strides = [1, 1]} : vector<8x384xf32> to vector<8x32xf32>
    %441 = vector.extract_strided_slice %439 {offsets = [0, 0], sizes = [8, 32], strides = [1, 1]} : vector<8x384xf32> to vector<8x32xf32>
    %442 = arith.addf %440, %441 : vector<8x32xf32>
    %443 = arith.negf %442 : vector<8x32xf32>
    %444 = math.exp %443 : vector<8x32xf32>
    %cst_97 = arith.constant 1.000000e+00 : f32
    %445 = vector.broadcast %cst_97 : f32 to vector<8x32xf32>
    %446 = arith.addf %445, %444 : vector<8x32xf32>
    %447 = arith.divf %445, %446 : vector<8x32xf32>
    %448 = vector.extract_strided_slice %435 {offsets = [0, 128], sizes = [8, 32], strides = [1, 1]} : vector<8x384xf32> to vector<8x32xf32>
    %449 = vector.extract_strided_slice %439 {offsets = [0, 128], sizes = [8, 32], strides = [1, 1]} : vector<8x384xf32> to vector<8x32xf32>
    %450 = arith.addf %448, %449 : vector<8x32xf32>
    %451 = arith.negf %450 : vector<8x32xf32>
    %452 = math.exp %451 : vector<8x32xf32>
    %cst_98 = arith.constant 1.000000e+00 : f32
    %453 = vector.broadcast %cst_98 : f32 to vector<8x32xf32>
    %454 = arith.addf %453, %452 : vector<8x32xf32>
    %455 = arith.divf %453, %454 : vector<8x32xf32>
    %456 = vector.extract_strided_slice %435 {offsets = [0, 256], sizes = [8, 32], strides = [1, 1]} : vector<8x384xf32> to vector<8x32xf32>
    %457 = vector.extract_strided_slice %439 {offsets = [0, 256], sizes = [8, 32], strides = [1, 1]} : vector<8x384xf32> to vector<8x32xf32>
    %458 = arith.mulf %447, %457 : vector<8x32xf32>
    %459 = arith.addf %456, %458 : vector<8x32xf32>
    %460 = math.tanh %459 : vector<8x32xf32>
    %cst_99 = arith.constant 1.000000e+00 : f32
    %461 = vector.broadcast %cst_99 : f32 to vector<8x32xf32>
    %462 = arith.subf %461, %455 : vector<8x32xf32>
    %463 = arith.mulf %462, %460 : vector<8x32xf32>
    %464 = arith.mulf %455, %401 : vector<8x32xf32>
    %465 = arith.addf %463, %464 : vector<8x32xf32>
    %466 = vector.extract_strided_slice %13 {offsets = [8, 0], sizes = [8, 384], strides = [1, 1]} : vector<64x384xf32> to vector<8x384xf32>
    %467 = arith.truncf %432 : vector<8x32xf32> to vector<8x32xbf16>
    %cst_100 = arith.constant dense<0.000000e+00> : vector<8x384xf32>
    %468 = tpu.matmul %467, %25, %cst_100 {dimension_numbers = #tpu.dot_dimension_numbers<[1], [0], [0], [1], [0, 0, 1, 1], [], []>} : vector<8x32xbf16>, vector<32x384xbf16>, vector<8x384xf32> -> vector<8x384xf32>
    %469 = vector.broadcast %31 : vector<1x384xf32> to vector<8x384xf32>
    %470 = arith.addf %468, %469 : vector<8x384xf32>
    %471 = vector.extract_strided_slice %466 {offsets = [0, 0], sizes = [8, 32], strides = [1, 1]} : vector<8x384xf32> to vector<8x32xf32>
    %472 = vector.extract_strided_slice %470 {offsets = [0, 0], sizes = [8, 32], strides = [1, 1]} : vector<8x384xf32> to vector<8x32xf32>
    %473 = arith.addf %471, %472 : vector<8x32xf32>
    %474 = arith.negf %473 : vector<8x32xf32>
    %475 = math.exp %474 : vector<8x32xf32>
    %cst_101 = arith.constant 1.000000e+00 : f32
    %476 = vector.broadcast %cst_101 : f32 to vector<8x32xf32>
    %477 = arith.addf %476, %475 : vector<8x32xf32>
    %478 = arith.divf %476, %477 : vector<8x32xf32>
    %479 = vector.extract_strided_slice %466 {offsets = [0, 128], sizes = [8, 32], strides = [1, 1]} : vector<8x384xf32> to vector<8x32xf32>
    %480 = vector.extract_strided_slice %470 {offsets = [0, 128], sizes = [8, 32], strides = [1, 1]} : vector<8x384xf32> to vector<8x32xf32>
    %481 = arith.addf %479, %480 : vector<8x32xf32>
    %482 = arith.negf %481 : vector<8x32xf32>
    %483 = math.exp %482 : vector<8x32xf32>
    %cst_102 = arith.constant 1.000000e+00 : f32
    %484 = vector.broadcast %cst_102 : f32 to vector<8x32xf32>
    %485 = arith.addf %484, %483 : vector<8x32xf32>
    %486 = arith.divf %484, %485 : vector<8x32xf32>
    %487 = vector.extract_strided_slice %466 {offsets = [0, 256], sizes = [8, 32], strides = [1, 1]} : vector<8x384xf32> to vector<8x32xf32>
    %488 = vector.extract_strided_slice %470 {offsets = [0, 256], sizes = [8, 32], strides = [1, 1]} : vector<8x384xf32> to vector<8x32xf32>
    %489 = arith.mulf %478, %488 : vector<8x32xf32>
    %490 = arith.addf %487, %489 : vector<8x32xf32>
    %491 = math.tanh %490 : vector<8x32xf32>
    %cst_103 = arith.constant 1.000000e+00 : f32
    %492 = vector.broadcast %cst_103 : f32 to vector<8x32xf32>
    %493 = arith.subf %492, %486 : vector<8x32xf32>
    %494 = arith.mulf %493, %491 : vector<8x32xf32>
    %495 = arith.mulf %486, %432 : vector<8x32xf32>
    %496 = arith.addf %494, %495 : vector<8x32xf32>
    %497 = arith.addf %433, %465 : vector<8x32xf32>
    %498 = arith.addf %434, %496 : vector<8x32xf32>
    %499 = vector.extract_strided_slice %12 {offsets = [56, 0], sizes = [8, 384], strides = [1, 1]} : vector<64x384xf32> to vector<8x384xf32>
    %500 = arith.truncf %465 : vector<8x32xf32> to vector<8x32xbf16>
    %cst_104 = arith.constant dense<0.000000e+00> : vector<8x384xf32>
    %501 = tpu.matmul %500, %23, %cst_104 {dimension_numbers = #tpu.dot_dimension_numbers<[1], [0], [0], [1], [0, 0, 1, 1], [], []>} : vector<8x32xbf16>, vector<32x384xbf16>, vector<8x384xf32> -> vector<8x384xf32>
    %502 = vector.broadcast %29 : vector<1x384xf32> to vector<8x384xf32>
    %503 = arith.addf %501, %502 : vector<8x384xf32>
    %504 = vector.extract_strided_slice %499 {offsets = [0, 0], sizes = [8, 32], strides = [1, 1]} : vector<8x384xf32> to vector<8x32xf32>
    %505 = vector.extract_strided_slice %503 {offsets = [0, 0], sizes = [8, 32], strides = [1, 1]} : vector<8x384xf32> to vector<8x32xf32>
    %506 = arith.addf %504, %505 : vector<8x32xf32>
    %507 = arith.negf %506 : vector<8x32xf32>
    %508 = math.exp %507 : vector<8x32xf32>
    %cst_105 = arith.constant 1.000000e+00 : f32
    %509 = vector.broadcast %cst_105 : f32 to vector<8x32xf32>
    %510 = arith.addf %509, %508 : vector<8x32xf32>
    %511 = arith.divf %509, %510 : vector<8x32xf32>
    %512 = vector.extract_strided_slice %499 {offsets = [0, 128], sizes = [8, 32], strides = [1, 1]} : vector<8x384xf32> to vector<8x32xf32>
    %513 = vector.extract_strided_slice %503 {offsets = [0, 128], sizes = [8, 32], strides = [1, 1]} : vector<8x384xf32> to vector<8x32xf32>
    %514 = arith.addf %512, %513 : vector<8x32xf32>
    %515 = arith.negf %514 : vector<8x32xf32>
    %516 = math.exp %515 : vector<8x32xf32>
    %cst_106 = arith.constant 1.000000e+00 : f32
    %517 = vector.broadcast %cst_106 : f32 to vector<8x32xf32>
    %518 = arith.addf %517, %516 : vector<8x32xf32>
    %519 = arith.divf %517, %518 : vector<8x32xf32>
    %520 = vector.extract_strided_slice %499 {offsets = [0, 256], sizes = [8, 32], strides = [1, 1]} : vector<8x384xf32> to vector<8x32xf32>
    %521 = vector.extract_strided_slice %503 {offsets = [0, 256], sizes = [8, 32], strides = [1, 1]} : vector<8x384xf32> to vector<8x32xf32>
    %522 = arith.mulf %511, %521 : vector<8x32xf32>
    %523 = arith.addf %520, %522 : vector<8x32xf32>
    %524 = math.tanh %523 : vector<8x32xf32>
    %cst_107 = arith.constant 1.000000e+00 : f32
    %525 = vector.broadcast %cst_107 : f32 to vector<8x32xf32>
    %526 = arith.subf %525, %519 : vector<8x32xf32>
    %527 = arith.mulf %526, %524 : vector<8x32xf32>
    %528 = arith.mulf %519, %465 : vector<8x32xf32>
    %529 = arith.addf %527, %528 : vector<8x32xf32>
    %530 = vector.extract_strided_slice %13 {offsets = [0, 0], sizes = [8, 384], strides = [1, 1]} : vector<64x384xf32> to vector<8x384xf32>
    %531 = arith.truncf %496 : vector<8x32xf32> to vector<8x32xbf16>
    %cst_108 = arith.constant dense<0.000000e+00> : vector<8x384xf32>
    %532 = tpu.matmul %531, %25, %cst_108 {dimension_numbers = #tpu.dot_dimension_numbers<[1], [0], [0], [1], [0, 0, 1, 1], [], []>} : vector<8x32xbf16>, vector<32x384xbf16>, vector<8x384xf32> -> vector<8x384xf32>
    %533 = vector.broadcast %31 : vector<1x384xf32> to vector<8x384xf32>
    %534 = arith.addf %532, %533 : vector<8x384xf32>
    %535 = vector.extract_strided_slice %530 {offsets = [0, 0], sizes = [8, 32], strides = [1, 1]} : vector<8x384xf32> to vector<8x32xf32>
    %536 = vector.extract_strided_slice %534 {offsets = [0, 0], sizes = [8, 32], strides = [1, 1]} : vector<8x384xf32> to vector<8x32xf32>
    %537 = arith.addf %535, %536 : vector<8x32xf32>
    %538 = arith.negf %537 : vector<8x32xf32>
    %539 = math.exp %538 : vector<8x32xf32>
    %cst_109 = arith.constant 1.000000e+00 : f32
    %540 = vector.broadcast %cst_109 : f32 to vector<8x32xf32>
    %541 = arith.addf %540, %539 : vector<8x32xf32>
    %542 = arith.divf %540, %541 : vector<8x32xf32>
    %543 = vector.extract_strided_slice %530 {offsets = [0, 128], sizes = [8, 32], strides = [1, 1]} : vector<8x384xf32> to vector<8x32xf32>
    %544 = vector.extract_strided_slice %534 {offsets = [0, 128], sizes = [8, 32], strides = [1, 1]} : vector<8x384xf32> to vector<8x32xf32>
    %545 = arith.addf %543, %544 : vector<8x32xf32>
    %546 = arith.negf %545 : vector<8x32xf32>
    %547 = math.exp %546 : vector<8x32xf32>
    %cst_110 = arith.constant 1.000000e+00 : f32
    %548 = vector.broadcast %cst_110 : f32 to vector<8x32xf32>
    %549 = arith.addf %548, %547 : vector<8x32xf32>
    %550 = arith.divf %548, %549 : vector<8x32xf32>
    %551 = vector.extract_strided_slice %530 {offsets = [0, 256], sizes = [8, 32], strides = [1, 1]} : vector<8x384xf32> to vector<8x32xf32>
    %552 = vector.extract_strided_slice %534 {offsets = [0, 256], sizes = [8, 32], strides = [1, 1]} : vector<8x384xf32> to vector<8x32xf32>
    %553 = arith.mulf %542, %552 : vector<8x32xf32>
    %554 = arith.addf %551, %553 : vector<8x32xf32>
    %555 = math.tanh %554 : vector<8x32xf32>
    %cst_111 = arith.constant 1.000000e+00 : f32
    %556 = vector.broadcast %cst_111 : f32 to vector<8x32xf32>
    %557 = arith.subf %556, %550 : vector<8x32xf32>
    %558 = arith.mulf %557, %555 : vector<8x32xf32>
    %559 = arith.mulf %550, %496 : vector<8x32xf32>
    %560 = arith.addf %558, %559 : vector<8x32xf32>
    %561 = arith.addf %497, %529 : vector<8x32xf32>
    %562 = arith.addf %498, %560 : vector<8x32xf32>
    %cst_112 = arith.constant 1.250000e-01 : f32
    %563 = vector.broadcast %cst_112 : f32 to vector<8x32xf32>
    %564 = arith.mulf %561, %563 : vector<8x32xf32>
    %565 = arith.truncf %564 : vector<8x32xf32> to vector<8x32xbf16>
    %cst_113 = arith.constant dense<0.000000e+00> : vector<8x32xf32>
    %566 = tpu.matmul %565, %35, %cst_113 {dimension_numbers = #tpu.dot_dimension_numbers<[1], [0], [0], [1], [0, 0, 1, 1], [], []>} : vector<8x32xbf16>, vector<32x32xbf16>, vector<8x32xf32> -> vector<8x32xf32>
    %cst_114 = arith.constant 1.250000e-01 : f32
    %567 = vector.broadcast %cst_114 : f32 to vector<8x32xf32>
    %568 = arith.mulf %562, %567 : vector<8x32xf32>
    %569 = arith.truncf %568 : vector<8x32xf32> to vector<8x32xbf16>
    %cst_115 = arith.constant dense<0.000000e+00> : vector<8x32xf32>
    %570 = tpu.matmul %569, %37, %cst_115 {dimension_numbers = #tpu.dot_dimension_numbers<[1], [0], [0], [1], [0, 0, 1, 1], [], []>} : vector<8x32xbf16>, vector<32x32xbf16>, vector<8x32xf32> -> vector<8x32xf32>
    %571 = arith.addf %566, %570 : vector<8x32xf32>
    %572 = vector.broadcast %45 : vector<1x32xf32> to vector<8x32xf32>
    %573 = arith.addf %571, %572 : vector<8x32xf32>
    %cst_116 = arith.constant 0.000000e+00 : f32
    %574 = vector.broadcast %cst_116 : f32 to vector<8x32xf32>
    %575 = arith.maximumf %573, %574 : vector<8x32xf32>
    %576 = arith.truncf %575 : vector<8x32xf32> to vector<8x32xbf16>
    %cst_117 = arith.constant dense<0.000000e+00> : vector<8x32xf32>
    %577 = tpu.matmul %576, %40, %cst_117 {dimension_numbers = #tpu.dot_dimension_numbers<[1], [0], [0], [1], [0, 0, 1, 1], [], []>} : vector<8x32xbf16>, vector<32x32xbf16>, vector<8x32xf32> -> vector<8x32xf32>
    %578 = vector.broadcast %46 : vector<1x32xf32> to vector<8x32xf32>
    %579 = arith.addf %577, %578 : vector<8x32xf32>
    %cst_118 = arith.constant 0.000000e+00 : f32
    %580 = vector.broadcast %cst_118 : f32 to vector<8x32xf32>
    %581 = arith.maximumf %579, %580 : vector<8x32xf32>
    %582 = arith.truncf %581 : vector<8x32xf32> to vector<8x32xbf16>
    %cst_119 = arith.constant dense<0.000000e+00> : vector<8x256xf32>
    %583 = tpu.matmul %582, %42, %cst_119 {dimension_numbers = #tpu.dot_dimension_numbers<[1], [0], [0], [1], [0, 0, 1, 1], [], []>} : vector<8x32xbf16>, vector<32x256xbf16>, vector<8x256xf32> -> vector<8x256xf32>
    %584 = vector.broadcast %48 : vector<1x256xf32> to vector<8x256xf32>
    %585 = arith.addf %583, %584 : vector<8x256xf32>
    %586 = vector.extract_strided_slice %585 {offsets = [0, 0], sizes = [8, 8], strides = [1, 1]} : vector<8x256xf32> to vector<8x8xf32>
    %587 = vector.extract_strided_slice %585 {offsets = [0, 128], sizes = [8, 8], strides = [1, 1]} : vector<8x256xf32> to vector<8x8xf32>
    %588 = math.exp %587 : vector<8x8xf32>
    %589 = arith.mulf %586, %586 : vector<8x8xf32>
    %590 = arith.addf %588, %589 : vector<8x8xf32>
    %cst_120 = arith.constant 1.000000e+00 : f32
    %591 = vector.broadcast %cst_120 : f32 to vector<8x8xf32>
    %592 = arith.subf %590, %591 : vector<8x8xf32>
    %593 = arith.subf %592, %587 : vector<8x8xf32>
    %cst_121 = arith.constant 5.000000e-01 : f32
    %594 = vector.broadcast %cst_121 : f32 to vector<8x8xf32>
    %595 = arith.mulf %594, %593 : vector<8x8xf32>
    %596 = vector.shape_cast %595 : vector<8x8xf32> to vector<1x8x8xf32>
    %cst_122 = arith.constant dense<0.000000e+00> : vector<1xf32>
    %597 = vector.multi_reduction <add>, %596, %cst_122 [1, 2] : vector<1x8x8xf32> to vector<1xf32>
    %598 = vector.shape_cast %597 : vector<1xf32> to vector<1x1x1xf32>
    %599 = vector.extract %598[0, 0, 0] : f32 from vector<1x1x1xf32>
    %cst_123 = arith.constant 1.250000e-01 : f32
    %600 = vector.broadcast %cst_123 : f32 to vector<8x8xf32>
    %601 = arith.maximumf %595, %600 : vector<8x8xf32>
    %602 = vector.shape_cast %601 : vector<8x8xf32> to vector<1x8x8xf32>
    %cst_124 = arith.constant dense<0.000000e+00> : vector<1xf32>
    %603 = vector.multi_reduction <add>, %602, %cst_124 [1, 2] : vector<1x8x8xf32> to vector<1xf32>
    %604 = vector.shape_cast %603 : vector<1xf32> to vector<1x1x1xf32>
    %605 = vector.extract %604[0, 0, 0] : f32 from vector<1x1x1xf32>
    %606 = vector.extract_strided_slice %585 {offsets = [0, 0], sizes = [8, 128], strides = [1, 1]} : vector<8x256xf32> to vector<8x128xf32>
    %c0_125 = arith.constant 0 : index
    %c0_126 = arith.constant 0 : index
    %607 = vector.load %arg11[%c0_125, %c0_126] : memref<8x128xf32, #tpu.memory_space<vmem>>, vector<8x128xf32>
    tpu.vector_store %arg11[%c0_125, %c0_126], %606 {strides = array<i32>} : memref<8x128xf32, #tpu.memory_space<vmem>>, vector<8x128xf32>,
    %cst_127 = arith.constant 5.000000e-01 : f32
    %608 = vector.broadcast %cst_127 : f32 to vector<8x8xf32>
    %609 = arith.mulf %608, %587 : vector<8x8xf32>
    %610 = math.exp %609 : vector<8x8xf32>
    %c0_128 = arith.constant 0 : index
    %c0_129 = arith.constant 0 : index
    %611 = vector.load %arg2[%c0_128, %c0_129] : memref<8x8xf32, #tpu.memory_space<vmem>>, vector<8x8xf32>
    %612 = arith.mulf %610, %611 : vector<8x8xf32>
    %613 = arith.addf %586, %612 : vector<8x8xf32>
    %614 = arith.truncf %613 : vector<8x8xf32> to vector<8x8xbf16>
    %cst_130 = arith.constant dense<0.000000e+00> : vector<8x32xf32>
    %615 = tpu.matmul %614, %44, %cst_130 {dimension_numbers = #tpu.dot_dimension_numbers<[1], [0], [0], [1], [0, 0, 1, 1], [], []>} : vector<8x8xbf16>, vector<8x32xbf16>, vector<8x32xf32> -> vector<8x32xf32>
    %616 = vector.extract_strided_slice %15 {offsets = [0, 0], sizes = [8, 32], strides = [1, 1]} : vector<64x32xf32> to vector<8x32xf32>
    %617 = arith.addf %616, %615 : vector<8x32xf32>
    %618 = arith.truncf %50 : vector<8x32xf32> to vector<8x32xbf16>
    %cst_131 = arith.constant dense<0.000000e+00> : vector<8x32xf32>
    %619 = tpu.matmul %618, %39, %cst_131 {dimension_numbers = #tpu.dot_dimension_numbers<[1], [0], [0], [1], [0, 0, 1, 1], [], []>} : vector<8x32xbf16>, vector<32x32xbf16>, vector<8x32xf32> -> vector<8x32xf32>
    %620 = arith.addf %617, %619 : vector<8x32xf32>
    %cst_132 = arith.constant 0.000000e+00 : f32
    %621 = vector.broadcast %cst_132 : f32 to vector<8x32xf32>
    %622 = arith.maximumf %620, %621 : vector<8x32xf32>
    %623 = arith.truncf %622 : vector<8x32xf32> to vector<8x32xbf16>
    %cst_133 = arith.constant dense<0.000000e+00> : vector<8x32xf32>
    %624 = tpu.matmul %623, %41, %cst_133 {dimension_numbers = #tpu.dot_dimension_numbers<[1], [0], [0], [1], [0, 0, 1, 1], [], []>} : vector<8x32xbf16>, vector<32x32xbf16>, vector<8x32xf32> -> vector<8x32xf32>
    %625 = vector.broadcast %47 : vector<1x32xf32> to vector<8x32xf32>
    %626 = arith.addf %624, %625 : vector<8x32xf32>
    %cst_134 = arith.constant 0.000000e+00 : f32
    %627 = vector.broadcast %cst_134 : f32 to vector<8x32xf32>
    %628 = arith.maximumf %626, %627 : vector<8x32xf32>
    %629 = arith.truncf %628 : vector<8x32xf32> to vector<8x32xbf16>
    %cst_135 = arith.constant dense<0.000000e+00> : vector<8x256xf32>
    %630 = tpu.matmul %629, %43, %cst_135 {dimension_numbers = #tpu.dot_dimension_numbers<[1], [0], [0], [1], [0, 0, 1, 1], [], []>} : vector<8x32xbf16>, vector<32x256xbf16>, vector<8x256xf32> -> vector<8x256xf32>
    %631 = vector.broadcast %49 : vector<1x256xf32> to vector<8x256xf32>
    %632 = arith.addf %630, %631 : vector<8x256xf32>
    %633 = vector.extract_strided_slice %632 {offsets = [0, 0], sizes = [8, 4], strides = [1, 1]} : vector<8x256xf32> to vector<8x4xf32>
    %634 = vector.extract_strided_slice %632 {offsets = [0, 128], sizes = [8, 4], strides = [1, 1]} : vector<8x256xf32> to vector<8x4xf32>
    %c0_136 = arith.constant 0 : index
    %c0_137 = arith.constant 0 : index
    %c0_138 = arith.constant 0 : index
    %635 = vector.load %arg1[%c0_136, %c0_137, %c0_138] : memref<8x8x4xf32, #tpu.memory_space<vmem>>, vector<1x8x4xf32>
    %636 = vector.shape_cast %635 : vector<1x8x4xf32> to vector<8x4xf32>
    %637 = arith.subf %636, %633 : vector<8x4xf32>
    %638 = arith.mulf %637, %637 : vector<8x4xf32>
    %cst_139 = arith.constant 0.000000e+00 : f32
    %639 = vector.broadcast %cst_139 : f32 to vector<8x4xf32>
    %640 = arith.subf %639, %634 : vector<8x4xf32>
    %641 = math.exp %640 : vector<8x4xf32>
    %642 = arith.mulf %638, %641 : vector<8x4xf32>
    %643 = arith.addf %642, %634 : vector<8x4xf32>
    %cst_140 = arith.constant 1.83787704 : f32
    %644 = vector.broadcast %cst_140 : f32 to vector<8x4xf32>
    %645 = arith.addf %643, %644 : vector<8x4xf32>
    %646 = vector.shape_cast %645 : vector<8x4xf32> to vector<1x8x4xf32>
    %cst_141 = arith.constant dense<0.000000e+00> : vector<1xf32>
    %647 = vector.multi_reduction <add>, %646, %cst_141 [1, 2] : vector<1x8x4xf32> to vector<1xf32>
    %648 = vector.shape_cast %647 : vector<1xf32> to vector<1x1x1xf32>
    %649 = vector.extract %648[0, 0, 0] : f32 from vector<1x1x1xf32>
    %cst_142 = arith.constant 5.000000e-01 : f32
    %650 = arith.mulf %cst_142, %649 : f32
    %cst_143 = arith.constant 0.000000e+00 : f32
    %651 = arith.addf %cst_143, %650 : f32
    %652 = vector.extract_strided_slice %14 {offsets = [0, 0], sizes = [8, 384], strides = [1, 1]} : vector<64x384xf32> to vector<8x384xf32>
    %653 = arith.truncf %50 : vector<8x32xf32> to vector<8x32xbf16>
    %cst_144 = arith.constant dense<0.000000e+00> : vector<8x384xf32>
    %654 = tpu.matmul %653, %27, %cst_144 {dimension_numbers = #tpu.dot_dimension_numbers<[1], [0], [0], [1], [0, 0, 1, 1], [], []>} : vector<8x32xbf16>, vector<32x384xbf16>, vector<8x384xf32> -> vector<8x384xf32>
    %655 = vector.broadcast %33 : vector<1x384xf32> to vector<8x384xf32>
    %656 = arith.addf %654, %655 : vector<8x384xf32>
    %657 = vector.extract_strided_slice %652 {offsets = [0, 0], sizes = [8, 32], strides = [1, 1]} : vector<8x384xf32> to vector<8x32xf32>
    %658 = vector.extract_strided_slice %656 {offsets = [0, 0], sizes = [8, 32], strides = [1, 1]} : vector<8x384xf32> to vector<8x32xf32>
    %659 = arith.addf %657, %658 : vector<8x32xf32>
    %660 = arith.negf %659 : vector<8x32xf32>
    %661 = math.exp %660 : vector<8x32xf32>
    %cst_145 = arith.constant 1.000000e+00 : f32
    %662 = vector.broadcast %cst_145 : f32 to vector<8x32xf32>
    %663 = arith.addf %662, %661 : vector<8x32xf32>
    %664 = arith.divf %662, %663 : vector<8x32xf32>
    %665 = vector.extract_strided_slice %652 {offsets = [0, 128], sizes = [8, 32], strides = [1, 1]} : vector<8x384xf32> to vector<8x32xf32>
    %666 = vector.extract_strided_slice %656 {offsets = [0, 128], sizes = [8, 32], strides = [1, 1]} : vector<8x384xf32> to vector<8x32xf32>
    %667 = arith.addf %665, %666 : vector<8x32xf32>
    %668 = arith.negf %667 : vector<8x32xf32>
    %669 = math.exp %668 : vector<8x32xf32>
    %cst_146 = arith.constant 1.000000e+00 : f32
    %670 = vector.broadcast %cst_146 : f32 to vector<8x32xf32>
    %671 = arith.addf %670, %669 : vector<8x32xf32>
    %672 = arith.divf %670, %671 : vector<8x32xf32>
    %673 = vector.extract_strided_slice %652 {offsets = [0, 256], sizes = [8, 32], strides = [1, 1]} : vector<8x384xf32> to vector<8x32xf32>
    %674 = vector.extract_strided_slice %656 {offsets = [0, 256], sizes = [8, 32], strides = [1, 1]} : vector<8x384xf32> to vector<8x32xf32>
    %675 = arith.mulf %664, %674 : vector<8x32xf32>
    %676 = arith.addf %673, %675 : vector<8x32xf32>
    %677 = math.tanh %676 : vector<8x32xf32>
    %cst_147 = arith.constant 1.000000e+00 : f32
    %678 = vector.broadcast %cst_147 : f32 to vector<8x32xf32>
    %679 = arith.subf %678, %672 : vector<8x32xf32>
    %680 = arith.mulf %679, %677 : vector<8x32xf32>
    %681 = arith.mulf %672, %50 : vector<8x32xf32>
    %682 = arith.addf %680, %681 : vector<8x32xf32>
    %683 = vector.extract_strided_slice %15 {offsets = [8, 0], sizes = [8, 32], strides = [1, 1]} : vector<64x32xf32> to vector<8x32xf32>
    %684 = arith.addf %683, %615 : vector<8x32xf32>
    %685 = arith.truncf %682 : vector<8x32xf32> to vector<8x32xbf16>
    %cst_148 = arith.constant dense<0.000000e+00> : vector<8x32xf32>
    %686 = tpu.matmul %685, %39, %cst_148 {dimension_numbers = #tpu.dot_dimension_numbers<[1], [0], [0], [1], [0, 0, 1, 1], [], []>} : vector<8x32xbf16>, vector<32x32xbf16>, vector<8x32xf32> -> vector<8x32xf32>
    %687 = arith.addf %684, %686 : vector<8x32xf32>
    %cst_149 = arith.constant 0.000000e+00 : f32
    %688 = vector.broadcast %cst_149 : f32 to vector<8x32xf32>
    %689 = arith.maximumf %687, %688 : vector<8x32xf32>
    %690 = arith.truncf %689 : vector<8x32xf32> to vector<8x32xbf16>
    %cst_150 = arith.constant dense<0.000000e+00> : vector<8x32xf32>
    %691 = tpu.matmul %690, %41, %cst_150 {dimension_numbers = #tpu.dot_dimension_numbers<[1], [0], [0], [1], [0, 0, 1, 1], [], []>} : vector<8x32xbf16>, vector<32x32xbf16>, vector<8x32xf32> -> vector<8x32xf32>
    %692 = vector.broadcast %47 : vector<1x32xf32> to vector<8x32xf32>
    %693 = arith.addf %691, %692 : vector<8x32xf32>
    %cst_151 = arith.constant 0.000000e+00 : f32
    %694 = vector.broadcast %cst_151 : f32 to vector<8x32xf32>
    %695 = arith.maximumf %693, %694 : vector<8x32xf32>
    %696 = arith.truncf %695 : vector<8x32xf32> to vector<8x32xbf16>
    %cst_152 = arith.constant dense<0.000000e+00> : vector<8x256xf32>
    %697 = tpu.matmul %696, %43, %cst_152 {dimension_numbers = #tpu.dot_dimension_numbers<[1], [0], [0], [1], [0, 0, 1, 1], [], []>} : vector<8x32xbf16>, vector<32x256xbf16>, vector<8x256xf32> -> vector<8x256xf32>
    %698 = vector.broadcast %49 : vector<1x256xf32> to vector<8x256xf32>
    %699 = arith.addf %697, %698 : vector<8x256xf32>
    %700 = vector.extract_strided_slice %699 {offsets = [0, 0], sizes = [8, 4], strides = [1, 1]} : vector<8x256xf32> to vector<8x4xf32>
    %701 = vector.extract_strided_slice %699 {offsets = [0, 128], sizes = [8, 4], strides = [1, 1]} : vector<8x256xf32> to vector<8x4xf32>
    %c1_153 = arith.constant 1 : index
    %c0_154 = arith.constant 0 : index
    %c0_155 = arith.constant 0 : index
    %702 = vector.load %arg1[%c1_153, %c0_154, %c0_155] : memref<8x8x4xf32, #tpu.memory_space<vmem>>, vector<1x8x4xf32>
    %703 = vector.shape_cast %702 : vector<1x8x4xf32> to vector<8x4xf32>
    %704 = arith.subf %703, %700 : vector<8x4xf32>
    %705 = arith.mulf %704, %704 : vector<8x4xf32>
    %cst_156 = arith.constant 0.000000e+00 : f32
    %706 = vector.broadcast %cst_156 : f32 to vector<8x4xf32>
    %707 = arith.subf %706, %701 : vector<8x4xf32>
    %708 = math.exp %707 : vector<8x4xf32>
    %709 = arith.mulf %705, %708 : vector<8x4xf32>
    %710 = arith.addf %709, %701 : vector<8x4xf32>
    %cst_157 = arith.constant 1.83787704 : f32
    %711 = vector.broadcast %cst_157 : f32 to vector<8x4xf32>
    %712 = arith.addf %710, %711 : vector<8x4xf32>
    %713 = vector.shape_cast %712 : vector<8x4xf32> to vector<1x8x4xf32>
    %cst_158 = arith.constant dense<0.000000e+00> : vector<1xf32>
    %714 = vector.multi_reduction <add>, %713, %cst_158 [1, 2] : vector<1x8x4xf32> to vector<1xf32>
    %715 = vector.shape_cast %714 : vector<1xf32> to vector<1x1x1xf32>
    %716 = vector.extract %715[0, 0, 0] : f32 from vector<1x1x1xf32>
    %cst_159 = arith.constant 5.000000e-01 : f32
    %717 = arith.mulf %cst_159, %716 : f32
    %718 = arith.addf %651, %717 : f32
    %719 = vector.extract_strided_slice %14 {offsets = [8, 0], sizes = [8, 384], strides = [1, 1]} : vector<64x384xf32> to vector<8x384xf32>
    %720 = arith.truncf %682 : vector<8x32xf32> to vector<8x32xbf16>
    %cst_160 = arith.constant dense<0.000000e+00> : vector<8x384xf32>
    %721 = tpu.matmul %720, %27, %cst_160 {dimension_numbers = #tpu.dot_dimension_numbers<[1], [0], [0], [1], [0, 0, 1, 1], [], []>} : vector<8x32xbf16>, vector<32x384xbf16>, vector<8x384xf32> -> vector<8x384xf32>
    %722 = vector.broadcast %33 : vector<1x384xf32> to vector<8x384xf32>
    %723 = arith.addf %721, %722 : vector<8x384xf32>
    %724 = vector.extract_strided_slice %719 {offsets = [0, 0], sizes = [8, 32], strides = [1, 1]} : vector<8x384xf32> to vector<8x32xf32>
    %725 = vector.extract_strided_slice %723 {offsets = [0, 0], sizes = [8, 32], strides = [1, 1]} : vector<8x384xf32> to vector<8x32xf32>
    %726 = arith.addf %724, %725 : vector<8x32xf32>
    %727 = arith.negf %726 : vector<8x32xf32>
    %728 = math.exp %727 : vector<8x32xf32>
    %cst_161 = arith.constant 1.000000e+00 : f32
    %729 = vector.broadcast %cst_161 : f32 to vector<8x32xf32>
    %730 = arith.addf %729, %728 : vector<8x32xf32>
    %731 = arith.divf %729, %730 : vector<8x32xf32>
    %732 = vector.extract_strided_slice %719 {offsets = [0, 128], sizes = [8, 32], strides = [1, 1]} : vector<8x384xf32> to vector<8x32xf32>
    %733 = vector.extract_strided_slice %723 {offsets = [0, 128], sizes = [8, 32], strides = [1, 1]} : vector<8x384xf32> to vector<8x32xf32>
    %734 = arith.addf %732, %733 : vector<8x32xf32>
    %735 = arith.negf %734 : vector<8x32xf32>
    %736 = math.exp %735 : vector<8x32xf32>
    %cst_162 = arith.constant 1.000000e+00 : f32
    %737 = vector.broadcast %cst_162 : f32 to vector<8x32xf32>
    %738 = arith.addf %737, %736 : vector<8x32xf32>
    %739 = arith.divf %737, %738 : vector<8x32xf32>
    %740 = vector.extract_strided_slice %719 {offsets = [0, 256], sizes = [8, 32], strides = [1, 1]} : vector<8x384xf32> to vector<8x32xf32>
    %741 = vector.extract_strided_slice %723 {offsets = [0, 256], sizes = [8, 32], strides = [1, 1]} : vector<8x384xf32> to vector<8x32xf32>
    %742 = arith.mulf %731, %741 : vector<8x32xf32>
    %743 = arith.addf %740, %742 : vector<8x32xf32>
    %744 = math.tanh %743 : vector<8x32xf32>
    %cst_163 = arith.constant 1.000000e+00 : f32
    %745 = vector.broadcast %cst_163 : f32 to vector<8x32xf32>
    %746 = arith.subf %745, %739 : vector<8x32xf32>
    %747 = arith.mulf %746, %744 : vector<8x32xf32>
    %748 = arith.mulf %739, %682 : vector<8x32xf32>
    %749 = arith.addf %747, %748 : vector<8x32xf32>
    %750 = vector.extract_strided_slice %15 {offsets = [16, 0], sizes = [8, 32], strides = [1, 1]} : vector<64x32xf32> to vector<8x32xf32>
    %751 = arith.addf %750, %615 : vector<8x32xf32>
    %752 = arith.truncf %749 : vector<8x32xf32> to vector<8x32xbf16>
    %cst_164 = arith.constant dense<0.000000e+00> : vector<8x32xf32>
    %753 = tpu.matmul %752, %39, %cst_164 {dimension_numbers = #tpu.dot_dimension_numbers<[1], [0], [0], [1], [0, 0, 1, 1], [], []>} : vector<8x32xbf16>, vector<32x32xbf16>, vector<8x32xf32> -> vector<8x32xf32>
    %754 = arith.addf %751, %753 : vector<8x32xf32>
    %cst_165 = arith.constant 0.000000e+00 : f32
    %755 = vector.broadcast %cst_165 : f32 to vector<8x32xf32>
    %756 = arith.maximumf %754, %755 : vector<8x32xf32>
    %757 = arith.truncf %756 : vector<8x32xf32> to vector<8x32xbf16>
    %cst_166 = arith.constant dense<0.000000e+00> : vector<8x32xf32>
    %758 = tpu.matmul %757, %41, %cst_166 {dimension_numbers = #tpu.dot_dimension_numbers<[1], [0], [0], [1], [0, 0, 1, 1], [], []>} : vector<8x32xbf16>, vector<32x32xbf16>, vector<8x32xf32> -> vector<8x32xf32>
    %759 = vector.broadcast %47 : vector<1x32xf32> to vector<8x32xf32>
    %760 = arith.addf %758, %759 : vector<8x32xf32>
    %cst_167 = arith.constant 0.000000e+00 : f32
    %761 = vector.broadcast %cst_167 : f32 to vector<8x32xf32>
    %762 = arith.maximumf %760, %761 : vector<8x32xf32>
    %763 = arith.truncf %762 : vector<8x32xf32> to vector<8x32xbf16>
    %cst_168 = arith.constant dense<0.000000e+00> : vector<8x256xf32>
    %764 = tpu.matmul %763, %43, %cst_168 {dimension_numbers = #tpu.dot_dimension_numbers<[1], [0], [0], [1], [0, 0, 1, 1], [], []>} : vector<8x32xbf16>, vector<32x256xbf16>, vector<8x256xf32> -> vector<8x256xf32>
    %765 = vector.broadcast %49 : vector<1x256xf32> to vector<8x256xf32>
    %766 = arith.addf %764, %765 : vector<8x256xf32>
    %767 = vector.extract_strided_slice %766 {offsets = [0, 0], sizes = [8, 4], strides = [1, 1]} : vector<8x256xf32> to vector<8x4xf32>
    %768 = vector.extract_strided_slice %766 {offsets = [0, 128], sizes = [8, 4], strides = [1, 1]} : vector<8x256xf32> to vector<8x4xf32>
    %c2_169 = arith.constant 2 : index
    %c0_170 = arith.constant 0 : index
    %c0_171 = arith.constant 0 : index
    %769 = vector.load %arg1[%c2_169, %c0_170, %c0_171] : memref<8x8x4xf32, #tpu.memory_space<vmem>>, vector<1x8x4xf32>
    %770 = vector.shape_cast %769 : vector<1x8x4xf32> to vector<8x4xf32>
    %771 = arith.subf %770, %767 : vector<8x4xf32>
    %772 = arith.mulf %771, %771 : vector<8x4xf32>
    %cst_172 = arith.constant 0.000000e+00 : f32
    %773 = vector.broadcast %cst_172 : f32 to vector<8x4xf32>
    %774 = arith.subf %773, %768 : vector<8x4xf32>
    %775 = math.exp %774 : vector<8x4xf32>
    %776 = arith.mulf %772, %775 : vector<8x4xf32>
    %777 = arith.addf %776, %768 : vector<8x4xf32>
    %cst_173 = arith.constant 1.83787704 : f32
    %778 = vector.broadcast %cst_173 : f32 to vector<8x4xf32>
    %779 = arith.addf %777, %778 : vector<8x4xf32>
    %780 = vector.shape_cast %779 : vector<8x4xf32> to vector<1x8x4xf32>
    %cst_174 = arith.constant dense<0.000000e+00> : vector<1xf32>
    %781 = vector.multi_reduction <add>, %780, %cst_174 [1, 2] : vector<1x8x4xf32> to vector<1xf32>
    %782 = vector.shape_cast %781 : vector<1xf32> to vector<1x1x1xf32>
    %783 = vector.extract %782[0, 0, 0] : f32 from vector<1x1x1xf32>
    %cst_175 = arith.constant 5.000000e-01 : f32
    %784 = arith.mulf %cst_175, %783 : f32
    %785 = arith.addf %718, %784 : f32
    %786 = vector.extract_strided_slice %14 {offsets = [16, 0], sizes = [8, 384], strides = [1, 1]} : vector<64x384xf32> to vector<8x384xf32>
    %787 = arith.truncf %749 : vector<8x32xf32> to vector<8x32xbf16>
    %cst_176 = arith.constant dense<0.000000e+00> : vector<8x384xf32>
    %788 = tpu.matmul %787, %27, %cst_176 {dimension_numbers = #tpu.dot_dimension_numbers<[1], [0], [0], [1], [0, 0, 1, 1], [], []>} : vector<8x32xbf16>, vector<32x384xbf16>, vector<8x384xf32> -> vector<8x384xf32>
    %789 = vector.broadcast %33 : vector<1x384xf32> to vector<8x384xf32>
    %790 = arith.addf %788, %789 : vector<8x384xf32>
    %791 = vector.extract_strided_slice %786 {offsets = [0, 0], sizes = [8, 32], strides = [1, 1]} : vector<8x384xf32> to vector<8x32xf32>
    %792 = vector.extract_strided_slice %790 {offsets = [0, 0], sizes = [8, 32], strides = [1, 1]} : vector<8x384xf32> to vector<8x32xf32>
    %793 = arith.addf %791, %792 : vector<8x32xf32>
    %794 = arith.negf %793 : vector<8x32xf32>
    %795 = math.exp %794 : vector<8x32xf32>
    %cst_177 = arith.constant 1.000000e+00 : f32
    %796 = vector.broadcast %cst_177 : f32 to vector<8x32xf32>
    %797 = arith.addf %796, %795 : vector<8x32xf32>
    %798 = arith.divf %796, %797 : vector<8x32xf32>
    %799 = vector.extract_strided_slice %786 {offsets = [0, 128], sizes = [8, 32], strides = [1, 1]} : vector<8x384xf32> to vector<8x32xf32>
    %800 = vector.extract_strided_slice %790 {offsets = [0, 128], sizes = [8, 32], strides = [1, 1]} : vector<8x384xf32> to vector<8x32xf32>
    %801 = arith.addf %799, %800 : vector<8x32xf32>
    %802 = arith.negf %801 : vector<8x32xf32>
    %803 = math.exp %802 : vector<8x32xf32>
    %cst_178 = arith.constant 1.000000e+00 : f32
    %804 = vector.broadcast %cst_178 : f32 to vector<8x32xf32>
    %805 = arith.addf %804, %803 : vector<8x32xf32>
    %806 = arith.divf %804, %805 : vector<8x32xf32>
    %807 = vector.extract_strided_slice %786 {offsets = [0, 256], sizes = [8, 32], strides = [1, 1]} : vector<8x384xf32> to vector<8x32xf32>
    %808 = vector.extract_strided_slice %790 {offsets = [0, 256], sizes = [8, 32], strides = [1, 1]} : vector<8x384xf32> to vector<8x32xf32>
    %809 = arith.mulf %798, %808 : vector<8x32xf32>
    %810 = arith.addf %807, %809 : vector<8x32xf32>
    %811 = math.tanh %810 : vector<8x32xf32>
    %cst_179 = arith.constant 1.000000e+00 : f32
    %812 = vector.broadcast %cst_179 : f32 to vector<8x32xf32>
    %813 = arith.subf %812, %806 : vector<8x32xf32>
    %814 = arith.mulf %813, %811 : vector<8x32xf32>
    %815 = arith.mulf %806, %749 : vector<8x32xf32>
    %816 = arith.addf %814, %815 : vector<8x32xf32>
    %817 = vector.extract_strided_slice %15 {offsets = [24, 0], sizes = [8, 32], strides = [1, 1]} : vector<64x32xf32> to vector<8x32xf32>
    %818 = arith.addf %817, %615 : vector<8x32xf32>
    %819 = arith.truncf %816 : vector<8x32xf32> to vector<8x32xbf16>
    %cst_180 = arith.constant dense<0.000000e+00> : vector<8x32xf32>
    %820 = tpu.matmul %819, %39, %cst_180 {dimension_numbers = #tpu.dot_dimension_numbers<[1], [0], [0], [1], [0, 0, 1, 1], [], []>} : vector<8x32xbf16>, vector<32x32xbf16>, vector<8x32xf32> -> vector<8x32xf32>
    %821 = arith.addf %818, %820 : vector<8x32xf32>
    %cst_181 = arith.constant 0.000000e+00 : f32
    %822 = vector.broadcast %cst_181 : f32 to vector<8x32xf32>
    %823 = arith.maximumf %821, %822 : vector<8x32xf32>
    %824 = arith.truncf %823 : vector<8x32xf32> to vector<8x32xbf16>
    %cst_182 = arith.constant dense<0.000000e+00> : vector<8x32xf32>
    %825 = tpu.matmul %824, %41, %cst_182 {dimension_numbers = #tpu.dot_dimension_numbers<[1], [0], [0], [1], [0, 0, 1, 1], [], []>} : vector<8x32xbf16>, vector<32x32xbf16>, vector<8x32xf32> -> vector<8x32xf32>
    %826 = vector.broadcast %47 : vector<1x32xf32> to vector<8x32xf32>
    %827 = arith.addf %825, %826 : vector<8x32xf32>
    %cst_183 = arith.constant 0.000000e+00 : f32
    %828 = vector.broadcast %cst_183 : f32 to vector<8x32xf32>
    %829 = arith.maximumf %827, %828 : vector<8x32xf32>
    %830 = arith.truncf %829 : vector<8x32xf32> to vector<8x32xbf16>
    %cst_184 = arith.constant dense<0.000000e+00> : vector<8x256xf32>
    %831 = tpu.matmul %830, %43, %cst_184 {dimension_numbers = #tpu.dot_dimension_numbers<[1], [0], [0], [1], [0, 0, 1, 1], [], []>} : vector<8x32xbf16>, vector<32x256xbf16>, vector<8x256xf32> -> vector<8x256xf32>
    %832 = vector.broadcast %49 : vector<1x256xf32> to vector<8x256xf32>
    %833 = arith.addf %831, %832 : vector<8x256xf32>
    %834 = vector.extract_strided_slice %833 {offsets = [0, 0], sizes = [8, 4], strides = [1, 1]} : vector<8x256xf32> to vector<8x4xf32>
    %835 = vector.extract_strided_slice %833 {offsets = [0, 128], sizes = [8, 4], strides = [1, 1]} : vector<8x256xf32> to vector<8x4xf32>
    %c3_185 = arith.constant 3 : index
    %c0_186 = arith.constant 0 : index
    %c0_187 = arith.constant 0 : index
    %836 = vector.load %arg1[%c3_185, %c0_186, %c0_187] : memref<8x8x4xf32, #tpu.memory_space<vmem>>, vector<1x8x4xf32>
    %837 = vector.shape_cast %836 : vector<1x8x4xf32> to vector<8x4xf32>
    %838 = arith.subf %837, %834 : vector<8x4xf32>
    %839 = arith.mulf %838, %838 : vector<8x4xf32>
    %cst_188 = arith.constant 0.000000e+00 : f32
    %840 = vector.broadcast %cst_188 : f32 to vector<8x4xf32>
    %841 = arith.subf %840, %835 : vector<8x4xf32>
    %842 = math.exp %841 : vector<8x4xf32>
    %843 = arith.mulf %839, %842 : vector<8x4xf32>
    %844 = arith.addf %843, %835 : vector<8x4xf32>
    %cst_189 = arith.constant 1.83787704 : f32
    %845 = vector.broadcast %cst_189 : f32 to vector<8x4xf32>
    %846 = arith.addf %844, %845 : vector<8x4xf32>
    %847 = vector.shape_cast %846 : vector<8x4xf32> to vector<1x8x4xf32>
    %cst_190 = arith.constant dense<0.000000e+00> : vector<1xf32>
    %848 = vector.multi_reduction <add>, %847, %cst_190 [1, 2] : vector<1x8x4xf32> to vector<1xf32>
    %849 = vector.shape_cast %848 : vector<1xf32> to vector<1x1x1xf32>
    %850 = vector.extract %849[0, 0, 0] : f32 from vector<1x1x1xf32>
    %cst_191 = arith.constant 5.000000e-01 : f32
    %851 = arith.mulf %cst_191, %850 : f32
    %852 = arith.addf %785, %851 : f32
    %853 = vector.extract_strided_slice %14 {offsets = [24, 0], sizes = [8, 384], strides = [1, 1]} : vector<64x384xf32> to vector<8x384xf32>
    %854 = arith.truncf %816 : vector<8x32xf32> to vector<8x32xbf16>
    %cst_192 = arith.constant dense<0.000000e+00> : vector<8x384xf32>
    %855 = tpu.matmul %854, %27, %cst_192 {dimension_numbers = #tpu.dot_dimension_numbers<[1], [0], [0], [1], [0, 0, 1, 1], [], []>} : vector<8x32xbf16>, vector<32x384xbf16>, vector<8x384xf32> -> vector<8x384xf32>
    %856 = vector.broadcast %33 : vector<1x384xf32> to vector<8x384xf32>
    %857 = arith.addf %855, %856 : vector<8x384xf32>
    %858 = vector.extract_strided_slice %853 {offsets = [0, 0], sizes = [8, 32], strides = [1, 1]} : vector<8x384xf32> to vector<8x32xf32>
    %859 = vector.extract_strided_slice %857 {offsets = [0, 0], sizes = [8, 32], strides = [1, 1]} : vector<8x384xf32> to vector<8x32xf32>
    %860 = arith.addf %858, %859 : vector<8x32xf32>
    %861 = arith.negf %860 : vector<8x32xf32>
    %862 = math.exp %861 : vector<8x32xf32>
    %cst_193 = arith.constant 1.000000e+00 : f32
    %863 = vector.broadcast %cst_193 : f32 to vector<8x32xf32>
    %864 = arith.addf %863, %862 : vector<8x32xf32>
    %865 = arith.divf %863, %864 : vector<8x32xf32>
    %866 = vector.extract_strided_slice %853 {offsets = [0, 128], sizes = [8, 32], strides = [1, 1]} : vector<8x384xf32> to vector<8x32xf32>
    %867 = vector.extract_strided_slice %857 {offsets = [0, 128], sizes = [8, 32], strides = [1, 1]} : vector<8x384xf32> to vector<8x32xf32>
    %868 = arith.addf %866, %867 : vector<8x32xf32>
    %869 = arith.negf %868 : vector<8x32xf32>
    %870 = math.exp %869 : vector<8x32xf32>
    %cst_194 = arith.constant 1.000000e+00 : f32
    %871 = vector.broadcast %cst_194 : f32 to vector<8x32xf32>
    %872 = arith.addf %871, %870 : vector<8x32xf32>
    %873 = arith.divf %871, %872 : vector<8x32xf32>
    %874 = vector.extract_strided_slice %853 {offsets = [0, 256], sizes = [8, 32], strides = [1, 1]} : vector<8x384xf32> to vector<8x32xf32>
    %875 = vector.extract_strided_slice %857 {offsets = [0, 256], sizes = [8, 32], strides = [1, 1]} : vector<8x384xf32> to vector<8x32xf32>
    %876 = arith.mulf %865, %875 : vector<8x32xf32>
    %877 = arith.addf %874, %876 : vector<8x32xf32>
    %878 = math.tanh %877 : vector<8x32xf32>
    %cst_195 = arith.constant 1.000000e+00 : f32
    %879 = vector.broadcast %cst_195 : f32 to vector<8x32xf32>
    %880 = arith.subf %879, %873 : vector<8x32xf32>
    %881 = arith.mulf %880, %878 : vector<8x32xf32>
    %882 = arith.mulf %873, %816 : vector<8x32xf32>
    %883 = arith.addf %881, %882 : vector<8x32xf32>
    %884 = vector.extract_strided_slice %15 {offsets = [32, 0], sizes = [8, 32], strides = [1, 1]} : vector<64x32xf32> to vector<8x32xf32>
    %885 = arith.addf %884, %615 : vector<8x32xf32>
    %886 = arith.truncf %883 : vector<8x32xf32> to vector<8x32xbf16>
    %cst_196 = arith.constant dense<0.000000e+00> : vector<8x32xf32>
    %887 = tpu.matmul %886, %39, %cst_196 {dimension_numbers = #tpu.dot_dimension_numbers<[1], [0], [0], [1], [0, 0, 1, 1], [], []>} : vector<8x32xbf16>, vector<32x32xbf16>, vector<8x32xf32> -> vector<8x32xf32>
    %888 = arith.addf %885, %887 : vector<8x32xf32>
    %cst_197 = arith.constant 0.000000e+00 : f32
    %889 = vector.broadcast %cst_197 : f32 to vector<8x32xf32>
    %890 = arith.maximumf %888, %889 : vector<8x32xf32>
    %891 = arith.truncf %890 : vector<8x32xf32> to vector<8x32xbf16>
    %cst_198 = arith.constant dense<0.000000e+00> : vector<8x32xf32>
    %892 = tpu.matmul %891, %41, %cst_198 {dimension_numbers = #tpu.dot_dimension_numbers<[1], [0], [0], [1], [0, 0, 1, 1], [], []>} : vector<8x32xbf16>, vector<32x32xbf16>, vector<8x32xf32> -> vector<8x32xf32>
    %893 = vector.broadcast %47 : vector<1x32xf32> to vector<8x32xf32>
    %894 = arith.addf %892, %893 : vector<8x32xf32>
    %cst_199 = arith.constant 0.000000e+00 : f32
    %895 = vector.broadcast %cst_199 : f32 to vector<8x32xf32>
    %896 = arith.maximumf %894, %895 : vector<8x32xf32>
    %897 = arith.truncf %896 : vector<8x32xf32> to vector<8x32xbf16>
    %cst_200 = arith.constant dense<0.000000e+00> : vector<8x256xf32>
    %898 = tpu.matmul %897, %43, %cst_200 {dimension_numbers = #tpu.dot_dimension_numbers<[1], [0], [0], [1], [0, 0, 1, 1], [], []>} : vector<8x32xbf16>, vector<32x256xbf16>, vector<8x256xf32> -> vector<8x256xf32>
    %899 = vector.broadcast %49 : vector<1x256xf32> to vector<8x256xf32>
    %900 = arith.addf %898, %899 : vector<8x256xf32>
    %901 = vector.extract_strided_slice %900 {offsets = [0, 0], sizes = [8, 4], strides = [1, 1]} : vector<8x256xf32> to vector<8x4xf32>
    %902 = vector.extract_strided_slice %900 {offsets = [0, 128], sizes = [8, 4], strides = [1, 1]} : vector<8x256xf32> to vector<8x4xf32>
    %c4_201 = arith.constant 4 : index
    %c0_202 = arith.constant 0 : index
    %c0_203 = arith.constant 0 : index
    %903 = vector.load %arg1[%c4_201, %c0_202, %c0_203] : memref<8x8x4xf32, #tpu.memory_space<vmem>>, vector<1x8x4xf32>
    %904 = vector.shape_cast %903 : vector<1x8x4xf32> to vector<8x4xf32>
    %905 = arith.subf %904, %901 : vector<8x4xf32>
    %906 = arith.mulf %905, %905 : vector<8x4xf32>
    %cst_204 = arith.constant 0.000000e+00 : f32
    %907 = vector.broadcast %cst_204 : f32 to vector<8x4xf32>
    %908 = arith.subf %907, %902 : vector<8x4xf32>
    %909 = math.exp %908 : vector<8x4xf32>
    %910 = arith.mulf %906, %909 : vector<8x4xf32>
    %911 = arith.addf %910, %902 : vector<8x4xf32>
    %cst_205 = arith.constant 1.83787704 : f32
    %912 = vector.broadcast %cst_205 : f32 to vector<8x4xf32>
    %913 = arith.addf %911, %912 : vector<8x4xf32>
    %914 = vector.shape_cast %913 : vector<8x4xf32> to vector<1x8x4xf32>
    %cst_206 = arith.constant dense<0.000000e+00> : vector<1xf32>
    %915 = vector.multi_reduction <add>, %914, %cst_206 [1, 2] : vector<1x8x4xf32> to vector<1xf32>
    %916 = vector.shape_cast %915 : vector<1xf32> to vector<1x1x1xf32>
    %917 = vector.extract %916[0, 0, 0] : f32 from vector<1x1x1xf32>
    %cst_207 = arith.constant 5.000000e-01 : f32
    %918 = arith.mulf %cst_207, %917 : f32
    %919 = arith.addf %852, %918 : f32
    %920 = vector.extract_strided_slice %14 {offsets = [32, 0], sizes = [8, 384], strides = [1, 1]} : vector<64x384xf32> to vector<8x384xf32>
    %921 = arith.truncf %883 : vector<8x32xf32> to vector<8x32xbf16>
    %cst_208 = arith.constant dense<0.000000e+00> : vector<8x384xf32>
    %922 = tpu.matmul %921, %27, %cst_208 {dimension_numbers = #tpu.dot_dimension_numbers<[1], [0], [0], [1], [0, 0, 1, 1], [], []>} : vector<8x32xbf16>, vector<32x384xbf16>, vector<8x384xf32> -> vector<8x384xf32>
    %923 = vector.broadcast %33 : vector<1x384xf32> to vector<8x384xf32>
    %924 = arith.addf %922, %923 : vector<8x384xf32>
    %925 = vector.extract_strided_slice %920 {offsets = [0, 0], sizes = [8, 32], strides = [1, 1]} : vector<8x384xf32> to vector<8x32xf32>
    %926 = vector.extract_strided_slice %924 {offsets = [0, 0], sizes = [8, 32], strides = [1, 1]} : vector<8x384xf32> to vector<8x32xf32>
    %927 = arith.addf %925, %926 : vector<8x32xf32>
    %928 = arith.negf %927 : vector<8x32xf32>
    %929 = math.exp %928 : vector<8x32xf32>
    %cst_209 = arith.constant 1.000000e+00 : f32
    %930 = vector.broadcast %cst_209 : f32 to vector<8x32xf32>
    %931 = arith.addf %930, %929 : vector<8x32xf32>
    %932 = arith.divf %930, %931 : vector<8x32xf32>
    %933 = vector.extract_strided_slice %920 {offsets = [0, 128], sizes = [8, 32], strides = [1, 1]} : vector<8x384xf32> to vector<8x32xf32>
    %934 = vector.extract_strided_slice %924 {offsets = [0, 128], sizes = [8, 32], strides = [1, 1]} : vector<8x384xf32> to vector<8x32xf32>
    %935 = arith.addf %933, %934 : vector<8x32xf32>
    %936 = arith.negf %935 : vector<8x32xf32>
    %937 = math.exp %936 : vector<8x32xf32>
    %cst_210 = arith.constant 1.000000e+00 : f32
    %938 = vector.broadcast %cst_210 : f32 to vector<8x32xf32>
    %939 = arith.addf %938, %937 : vector<8x32xf32>
    %940 = arith.divf %938, %939 : vector<8x32xf32>
    %941 = vector.extract_strided_slice %920 {offsets = [0, 256], sizes = [8, 32], strides = [1, 1]} : vector<8x384xf32> to vector<8x32xf32>
    %942 = vector.extract_strided_slice %924 {offsets = [0, 256], sizes = [8, 32], strides = [1, 1]} : vector<8x384xf32> to vector<8x32xf32>
    %943 = arith.mulf %932, %942 : vector<8x32xf32>
    %944 = arith.addf %941, %943 : vector<8x32xf32>
    %945 = math.tanh %944 : vector<8x32xf32>
    %cst_211 = arith.constant 1.000000e+00 : f32
    %946 = vector.broadcast %cst_211 : f32 to vector<8x32xf32>
    %947 = arith.subf %946, %940 : vector<8x32xf32>
    %948 = arith.mulf %947, %945 : vector<8x32xf32>
    %949 = arith.mulf %940, %883 : vector<8x32xf32>
    %950 = arith.addf %948, %949 : vector<8x32xf32>
    %951 = vector.extract_strided_slice %15 {offsets = [40, 0], sizes = [8, 32], strides = [1, 1]} : vector<64x32xf32> to vector<8x32xf32>
    %952 = arith.addf %951, %615 : vector<8x32xf32>
    %953 = arith.truncf %950 : vector<8x32xf32> to vector<8x32xbf16>
    %cst_212 = arith.constant dense<0.000000e+00> : vector<8x32xf32>
    %954 = tpu.matmul %953, %39, %cst_212 {dimension_numbers = #tpu.dot_dimension_numbers<[1], [0], [0], [1], [0, 0, 1, 1], [], []>} : vector<8x32xbf16>, vector<32x32xbf16>, vector<8x32xf32> -> vector<8x32xf32>
    %955 = arith.addf %952, %954 : vector<8x32xf32>
    %cst_213 = arith.constant 0.000000e+00 : f32
    %956 = vector.broadcast %cst_213 : f32 to vector<8x32xf32>
    %957 = arith.maximumf %955, %956 : vector<8x32xf32>
    %958 = arith.truncf %957 : vector<8x32xf32> to vector<8x32xbf16>
    %cst_214 = arith.constant dense<0.000000e+00> : vector<8x32xf32>
    %959 = tpu.matmul %958, %41, %cst_214 {dimension_numbers = #tpu.dot_dimension_numbers<[1], [0], [0], [1], [0, 0, 1, 1], [], []>} : vector<8x32xbf16>, vector<32x32xbf16>, vector<8x32xf32> -> vector<8x32xf32>
    %960 = vector.broadcast %47 : vector<1x32xf32> to vector<8x32xf32>
    %961 = arith.addf %959, %960 : vector<8x32xf32>
    %cst_215 = arith.constant 0.000000e+00 : f32
    %962 = vector.broadcast %cst_215 : f32 to vector<8x32xf32>
    %963 = arith.maximumf %961, %962 : vector<8x32xf32>
    %964 = arith.truncf %963 : vector<8x32xf32> to vector<8x32xbf16>
    %cst_216 = arith.constant dense<0.000000e+00> : vector<8x256xf32>
    %965 = tpu.matmul %964, %43, %cst_216 {dimension_numbers = #tpu.dot_dimension_numbers<[1], [0], [0], [1], [0, 0, 1, 1], [], []>} : vector<8x32xbf16>, vector<32x256xbf16>, vector<8x256xf32> -> vector<8x256xf32>
    %966 = vector.broadcast %49 : vector<1x256xf32> to vector<8x256xf32>
    %967 = arith.addf %965, %966 : vector<8x256xf32>
    %968 = vector.extract_strided_slice %967 {offsets = [0, 0], sizes = [8, 4], strides = [1, 1]} : vector<8x256xf32> to vector<8x4xf32>
    %969 = vector.extract_strided_slice %967 {offsets = [0, 128], sizes = [8, 4], strides = [1, 1]} : vector<8x256xf32> to vector<8x4xf32>
    %c5 = arith.constant 5 : index
    %c0_217 = arith.constant 0 : index
    %c0_218 = arith.constant 0 : index
    %970 = vector.load %arg1[%c5, %c0_217, %c0_218] : memref<8x8x4xf32, #tpu.memory_space<vmem>>, vector<1x8x4xf32>
    %971 = vector.shape_cast %970 : vector<1x8x4xf32> to vector<8x4xf32>
    %972 = arith.subf %971, %968 : vector<8x4xf32>
    %973 = arith.mulf %972, %972 : vector<8x4xf32>
    %cst_219 = arith.constant 0.000000e+00 : f32
    %974 = vector.broadcast %cst_219 : f32 to vector<8x4xf32>
    %975 = arith.subf %974, %969 : vector<8x4xf32>
    %976 = math.exp %975 : vector<8x4xf32>
    %977 = arith.mulf %973, %976 : vector<8x4xf32>
    %978 = arith.addf %977, %969 : vector<8x4xf32>
    %cst_220 = arith.constant 1.83787704 : f32
    %979 = vector.broadcast %cst_220 : f32 to vector<8x4xf32>
    %980 = arith.addf %978, %979 : vector<8x4xf32>
    %981 = vector.shape_cast %980 : vector<8x4xf32> to vector<1x8x4xf32>
    %cst_221 = arith.constant dense<0.000000e+00> : vector<1xf32>
    %982 = vector.multi_reduction <add>, %981, %cst_221 [1, 2] : vector<1x8x4xf32> to vector<1xf32>
    %983 = vector.shape_cast %982 : vector<1xf32> to vector<1x1x1xf32>
    %984 = vector.extract %983[0, 0, 0] : f32 from vector<1x1x1xf32>
    %cst_222 = arith.constant 5.000000e-01 : f32
    %985 = arith.mulf %cst_222, %984 : f32
    %986 = arith.addf %919, %985 : f32
    %987 = vector.extract_strided_slice %14 {offsets = [40, 0], sizes = [8, 384], strides = [1, 1]} : vector<64x384xf32> to vector<8x384xf32>
    %988 = arith.truncf %950 : vector<8x32xf32> to vector<8x32xbf16>
    %cst_223 = arith.constant dense<0.000000e+00> : vector<8x384xf32>
    %989 = tpu.matmul %988, %27, %cst_223 {dimension_numbers = #tpu.dot_dimension_numbers<[1], [0], [0], [1], [0, 0, 1, 1], [], []>} : vector<8x32xbf16>, vector<32x384xbf16>, vector<8x384xf32> -> vector<8x384xf32>
    %990 = vector.broadcast %33 : vector<1x384xf32> to vector<8x384xf32>
    %991 = arith.addf %989, %990 : vector<8x384xf32>
    %992 = vector.extract_strided_slice %987 {offsets = [0, 0], sizes = [8, 32], strides = [1, 1]} : vector<8x384xf32> to vector<8x32xf32>
    %993 = vector.extract_strided_slice %991 {offsets = [0, 0], sizes = [8, 32], strides = [1, 1]} : vector<8x384xf32> to vector<8x32xf32>
    %994 = arith.addf %992, %993 : vector<8x32xf32>
    %995 = arith.negf %994 : vector<8x32xf32>
    %996 = math.exp %995 : vector<8x32xf32>
    %cst_224 = arith.constant 1.000000e+00 : f32
    %997 = vector.broadcast %cst_224 : f32 to vector<8x32xf32>
    %998 = arith.addf %997, %996 : vector<8x32xf32>
    %999 = arith.divf %997, %998 : vector<8x32xf32>
    %1000 = vector.extract_strided_slice %987 {offsets = [0, 128], sizes = [8, 32], strides = [1, 1]} : vector<8x384xf32> to vector<8x32xf32>
    %1001 = vector.extract_strided_slice %991 {offsets = [0, 128], sizes = [8, 32], strides = [1, 1]} : vector<8x384xf32> to vector<8x32xf32>
    %1002 = arith.addf %1000, %1001 : vector<8x32xf32>
    %1003 = arith.negf %1002 : vector<8x32xf32>
    %1004 = math.exp %1003 : vector<8x32xf32>
    %cst_225 = arith.constant 1.000000e+00 : f32
    %1005 = vector.broadcast %cst_225 : f32 to vector<8x32xf32>
    %1006 = arith.addf %1005, %1004 : vector<8x32xf32>
    %1007 = arith.divf %1005, %1006 : vector<8x32xf32>
    %1008 = vector.extract_strided_slice %987 {offsets = [0, 256], sizes = [8, 32], strides = [1, 1]} : vector<8x384xf32> to vector<8x32xf32>
    %1009 = vector.extract_strided_slice %991 {offsets = [0, 256], sizes = [8, 32], strides = [1, 1]} : vector<8x384xf32> to vector<8x32xf32>
    %1010 = arith.mulf %999, %1009 : vector<8x32xf32>
    %1011 = arith.addf %1008, %1010 : vector<8x32xf32>
    %1012 = math.tanh %1011 : vector<8x32xf32>
    %cst_226 = arith.constant 1.000000e+00 : f32
    %1013 = vector.broadcast %cst_226 : f32 to vector<8x32xf32>
    %1014 = arith.subf %1013, %1007 : vector<8x32xf32>
    %1015 = arith.mulf %1014, %1012 : vector<8x32xf32>
    %1016 = arith.mulf %1007, %950 : vector<8x32xf32>
    %1017 = arith.addf %1015, %1016 : vector<8x32xf32>
    %1018 = vector.extract_strided_slice %15 {offsets = [48, 0], sizes = [8, 32], strides = [1, 1]} : vector<64x32xf32> to vector<8x32xf32>
    %1019 = arith.addf %1018, %615 : vector<8x32xf32>
    %1020 = arith.truncf %1017 : vector<8x32xf32> to vector<8x32xbf16>
    %cst_227 = arith.constant dense<0.000000e+00> : vector<8x32xf32>
    %1021 = tpu.matmul %1020, %39, %cst_227 {dimension_numbers = #tpu.dot_dimension_numbers<[1], [0], [0], [1], [0, 0, 1, 1], [], []>} : vector<8x32xbf16>, vector<32x32xbf16>, vector<8x32xf32> -> vector<8x32xf32>
    %1022 = arith.addf %1019, %1021 : vector<8x32xf32>
    %cst_228 = arith.constant 0.000000e+00 : f32
    %1023 = vector.broadcast %cst_228 : f32 to vector<8x32xf32>
    %1024 = arith.maximumf %1022, %1023 : vector<8x32xf32>
    %1025 = arith.truncf %1024 : vector<8x32xf32> to vector<8x32xbf16>
    %cst_229 = arith.constant dense<0.000000e+00> : vector<8x32xf32>
    %1026 = tpu.matmul %1025, %41, %cst_229 {dimension_numbers = #tpu.dot_dimension_numbers<[1], [0], [0], [1], [0, 0, 1, 1], [], []>} : vector<8x32xbf16>, vector<32x32xbf16>, vector<8x32xf32> -> vector<8x32xf32>
    %1027 = vector.broadcast %47 : vector<1x32xf32> to vector<8x32xf32>
    %1028 = arith.addf %1026, %1027 : vector<8x32xf32>
    %cst_230 = arith.constant 0.000000e+00 : f32
    %1029 = vector.broadcast %cst_230 : f32 to vector<8x32xf32>
    %1030 = arith.maximumf %1028, %1029 : vector<8x32xf32>
    %1031 = arith.truncf %1030 : vector<8x32xf32> to vector<8x32xbf16>
    %cst_231 = arith.constant dense<0.000000e+00> : vector<8x256xf32>
    %1032 = tpu.matmul %1031, %43, %cst_231 {dimension_numbers = #tpu.dot_dimension_numbers<[1], [0], [0], [1], [0, 0, 1, 1], [], []>} : vector<8x32xbf16>, vector<32x256xbf16>, vector<8x256xf32> -> vector<8x256xf32>
    %1033 = vector.broadcast %49 : vector<1x256xf32> to vector<8x256xf32>
    %1034 = arith.addf %1032, %1033 : vector<8x256xf32>
    %1035 = vector.extract_strided_slice %1034 {offsets = [0, 0], sizes = [8, 4], strides = [1, 1]} : vector<8x256xf32> to vector<8x4xf32>
    %1036 = vector.extract_strided_slice %1034 {offsets = [0, 128], sizes = [8, 4], strides = [1, 1]} : vector<8x256xf32> to vector<8x4xf32>
    %c6 = arith.constant 6 : index
    %c0_232 = arith.constant 0 : index
    %c0_233 = arith.constant 0 : index
    %1037 = vector.load %arg1[%c6, %c0_232, %c0_233] : memref<8x8x4xf32, #tpu.memory_space<vmem>>, vector<1x8x4xf32>
    %1038 = vector.shape_cast %1037 : vector<1x8x4xf32> to vector<8x4xf32>
    %1039 = arith.subf %1038, %1035 : vector<8x4xf32>
    %1040 = arith.mulf %1039, %1039 : vector<8x4xf32>
    %cst_234 = arith.constant 0.000000e+00 : f32
    %1041 = vector.broadcast %cst_234 : f32 to vector<8x4xf32>
    %1042 = arith.subf %1041, %1036 : vector<8x4xf32>
    %1043 = math.exp %1042 : vector<8x4xf32>
    %1044 = arith.mulf %1040, %1043 : vector<8x4xf32>
    %1045 = arith.addf %1044, %1036 : vector<8x4xf32>
    %cst_235 = arith.constant 1.83787704 : f32
    %1046 = vector.broadcast %cst_235 : f32 to vector<8x4xf32>
    %1047 = arith.addf %1045, %1046 : vector<8x4xf32>
    %1048 = vector.shape_cast %1047 : vector<8x4xf32> to vector<1x8x4xf32>
    %cst_236 = arith.constant dense<0.000000e+00> : vector<1xf32>
    %1049 = vector.multi_reduction <add>, %1048, %cst_236 [1, 2] : vector<1x8x4xf32> to vector<1xf32>
    %1050 = vector.shape_cast %1049 : vector<1xf32> to vector<1x1x1xf32>
    %1051 = vector.extract %1050[0, 0, 0] : f32 from vector<1x1x1xf32>
    %cst_237 = arith.constant 5.000000e-01 : f32
    %1052 = arith.mulf %cst_237, %1051 : f32
    %1053 = arith.addf %986, %1052 : f32
    %1054 = vector.extract_strided_slice %14 {offsets = [48, 0], sizes = [8, 384], strides = [1, 1]} : vector<64x384xf32> to vector<8x384xf32>
    %1055 = arith.truncf %1017 : vector<8x32xf32> to vector<8x32xbf16>
    %cst_238 = arith.constant dense<0.000000e+00> : vector<8x384xf32>
    %1056 = tpu.matmul %1055, %27, %cst_238 {dimension_numbers = #tpu.dot_dimension_numbers<[1], [0], [0], [1], [0, 0, 1, 1], [], []>} : vector<8x32xbf16>, vector<32x384xbf16>, vector<8x384xf32> -> vector<8x384xf32>
    %1057 = vector.broadcast %33 : vector<1x384xf32> to vector<8x384xf32>
    %1058 = arith.addf %1056, %1057 : vector<8x384xf32>
    %1059 = vector.extract_strided_slice %1054 {offsets = [0, 0], sizes = [8, 32], strides = [1, 1]} : vector<8x384xf32> to vector<8x32xf32>
    %1060 = vector.extract_strided_slice %1058 {offsets = [0, 0], sizes = [8, 32], strides = [1, 1]} : vector<8x384xf32> to vector<8x32xf32>
    %1061 = arith.addf %1059, %1060 : vector<8x32xf32>
    %1062 = arith.negf %1061 : vector<8x32xf32>
    %1063 = math.exp %1062 : vector<8x32xf32>
    %cst_239 = arith.constant 1.000000e+00 : f32
    %1064 = vector.broadcast %cst_239 : f32 to vector<8x32xf32>
    %1065 = arith.addf %1064, %1063 : vector<8x32xf32>
    %1066 = arith.divf %1064, %1065 : vector<8x32xf32>
    %1067 = vector.extract_strided_slice %1054 {offsets = [0, 128], sizes = [8, 32], strides = [1, 1]} : vector<8x384xf32> to vector<8x32xf32>
    %1068 = vector.extract_strided_slice %1058 {offsets = [0, 128], sizes = [8, 32], strides = [1, 1]} : vector<8x384xf32> to vector<8x32xf32>
    %1069 = arith.addf %1067, %1068 : vector<8x32xf32>
    %1070 = arith.negf %1069 : vector<8x32xf32>
    %1071 = math.exp %1070 : vector<8x32xf32>
    %cst_240 = arith.constant 1.000000e+00 : f32
    %1072 = vector.broadcast %cst_240 : f32 to vector<8x32xf32>
    %1073 = arith.addf %1072, %1071 : vector<8x32xf32>
    %1074 = arith.divf %1072, %1073 : vector<8x32xf32>
    %1075 = vector.extract_strided_slice %1054 {offsets = [0, 256], sizes = [8, 32], strides = [1, 1]} : vector<8x384xf32> to vector<8x32xf32>
    %1076 = vector.extract_strided_slice %1058 {offsets = [0, 256], sizes = [8, 32], strides = [1, 1]} : vector<8x384xf32> to vector<8x32xf32>
    %1077 = arith.mulf %1066, %1076 : vector<8x32xf32>
    %1078 = arith.addf %1075, %1077 : vector<8x32xf32>
    %1079 = math.tanh %1078 : vector<8x32xf32>
    %cst_241 = arith.constant 1.000000e+00 : f32
    %1080 = vector.broadcast %cst_241 : f32 to vector<8x32xf32>
    %1081 = arith.subf %1080, %1074 : vector<8x32xf32>
    %1082 = arith.mulf %1081, %1079 : vector<8x32xf32>
    %1083 = arith.mulf %1074, %1017 : vector<8x32xf32>
    %1084 = arith.addf %1082, %1083 : vector<8x32xf32>
    %1085 = vector.extract_strided_slice %15 {offsets = [56, 0], sizes = [8, 32], strides = [1, 1]} : vector<64x32xf32> to vector<8x32xf32>
    %1086 = arith.addf %1085, %615 : vector<8x32xf32>
    %1087 = arith.truncf %1084 : vector<8x32xf32> to vector<8x32xbf16>
    %cst_242 = arith.constant dense<0.000000e+00> : vector<8x32xf32>
    %1088 = tpu.matmul %1087, %39, %cst_242 {dimension_numbers = #tpu.dot_dimension_numbers<[1], [0], [0], [1], [0, 0, 1, 1], [], []>} : vector<8x32xbf16>, vector<32x32xbf16>, vector<8x32xf32> -> vector<8x32xf32>
    %1089 = arith.addf %1086, %1088 : vector<8x32xf32>
    %cst_243 = arith.constant 0.000000e+00 : f32
    %1090 = vector.broadcast %cst_243 : f32 to vector<8x32xf32>
    %1091 = arith.maximumf %1089, %1090 : vector<8x32xf32>
    %1092 = arith.truncf %1091 : vector<8x32xf32> to vector<8x32xbf16>
    %cst_244 = arith.constant dense<0.000000e+00> : vector<8x32xf32>
    %1093 = tpu.matmul %1092, %41, %cst_244 {dimension_numbers = #tpu.dot_dimension_numbers<[1], [0], [0], [1], [0, 0, 1, 1], [], []>} : vector<8x32xbf16>, vector<32x32xbf16>, vector<8x32xf32> -> vector<8x32xf32>
    %1094 = vector.broadcast %47 : vector<1x32xf32> to vector<8x32xf32>
    %1095 = arith.addf %1093, %1094 : vector<8x32xf32>
    %cst_245 = arith.constant 0.000000e+00 : f32
    %1096 = vector.broadcast %cst_245 : f32 to vector<8x32xf32>
    %1097 = arith.maximumf %1095, %1096 : vector<8x32xf32>
    %1098 = arith.truncf %1097 : vector<8x32xf32> to vector<8x32xbf16>
    %cst_246 = arith.constant dense<0.000000e+00> : vector<8x256xf32>
    %1099 = tpu.matmul %1098, %43, %cst_246 {dimension_numbers = #tpu.dot_dimension_numbers<[1], [0], [0], [1], [0, 0, 1, 1], [], []>} : vector<8x32xbf16>, vector<32x256xbf16>, vector<8x256xf32> -> vector<8x256xf32>
    %1100 = vector.broadcast %49 : vector<1x256xf32> to vector<8x256xf32>
    %1101 = arith.addf %1099, %1100 : vector<8x256xf32>
    %1102 = vector.extract_strided_slice %1101 {offsets = [0, 0], sizes = [8, 4], strides = [1, 1]} : vector<8x256xf32> to vector<8x4xf32>
    %1103 = vector.extract_strided_slice %1101 {offsets = [0, 128], sizes = [8, 4], strides = [1, 1]} : vector<8x256xf32> to vector<8x4xf32>
    %c7 = arith.constant 7 : index
    %c0_247 = arith.constant 0 : index
    %c0_248 = arith.constant 0 : index
    %1104 = vector.load %arg1[%c7, %c0_247, %c0_248] : memref<8x8x4xf32, #tpu.memory_space<vmem>>, vector<1x8x4xf32>
    %1105 = vector.shape_cast %1104 : vector<1x8x4xf32> to vector<8x4xf32>
    %1106 = arith.subf %1105, %1102 : vector<8x4xf32>
    %1107 = arith.mulf %1106, %1106 : vector<8x4xf32>
    %cst_249 = arith.constant 0.000000e+00 : f32
    %1108 = vector.broadcast %cst_249 : f32 to vector<8x4xf32>
    %1109 = arith.subf %1108, %1103 : vector<8x4xf32>
    %1110 = math.exp %1109 : vector<8x4xf32>
    %1111 = arith.mulf %1107, %1110 : vector<8x4xf32>
    %1112 = arith.addf %1111, %1103 : vector<8x4xf32>
    %cst_250 = arith.constant 1.83787704 : f32
    %1113 = vector.broadcast %cst_250 : f32 to vector<8x4xf32>
    %1114 = arith.addf %1112, %1113 : vector<8x4xf32>
    %1115 = vector.shape_cast %1114 : vector<8x4xf32> to vector<1x8x4xf32>
    %cst_251 = arith.constant dense<0.000000e+00> : vector<1xf32>
    %1116 = vector.multi_reduction <add>, %1115, %cst_251 [1, 2] : vector<1x8x4xf32> to vector<1xf32>
    %1117 = vector.shape_cast %1116 : vector<1xf32> to vector<1x1x1xf32>
    %1118 = vector.extract %1117[0, 0, 0] : f32 from vector<1x1x1xf32>
    %cst_252 = arith.constant 5.000000e-01 : f32
    %1119 = arith.mulf %cst_252, %1118 : f32
    %1120 = arith.addf %1053, %1119 : f32
    %1121 = tpu.iota {dimensions = array<i32: 1>} : vector<1x128xi32>
    %c0_i32_253 = arith.constant 0 : i32
    %1122 = vector.broadcast %c0_i32_253 : i32 to vector<1x128xi32>
    %1123 = arith.cmpi eq, %1121, %1122 : vector<1x128xi32>
    %c1_i32_254 = arith.constant 1 : i32
    %1124 = vector.broadcast %c1_i32_254 : i32 to vector<1x128xi32>
    %1125 = arith.cmpi eq, %1121, %1124 : vector<1x128xi32>
    %c2_i32_255 = arith.constant 2 : i32
    %1126 = vector.broadcast %c2_i32_255 : i32 to vector<1x128xi32>
    %1127 = arith.cmpi eq, %1121, %1126 : vector<1x128xi32>
    %cst_256 = arith.constant 0.000000e+00 : f32
    %1128 = vector.broadcast %1120 : f32 to vector<1x128xf32>
    %1129 = vector.broadcast %cst_256 : f32 to vector<1x128xf32>
    %1130 = arith.select %1127, %1128, %1129 : vector<1x128xi1>, vector<1x128xf32>
    %1131 = vector.broadcast %605 : f32 to vector<1x128xf32>
    %1132 = arith.select %1125, %1131, %1130 : vector<1x128xi1>, vector<1x128xf32>
    %1133 = vector.broadcast %599 : f32 to vector<1x128xf32>
    %1134 = arith.select %1123, %1133, %1132 : vector<1x128xi1>, vector<1x128xf32>
    %c0_257 = arith.constant 0 : index
    %c0_258 = arith.constant 0 : index
    %1135 = vector.load %arg10[%c0_257, %c0_258] : memref<1x128xf32, #tpu.memory_space<vmem>>, vector<1x128xf32>
    tpu.vector_store %arg10[%c0_257, %c0_258], %1134 {strides = array<i32>} : memref<1x128xf32, #tpu.memory_space<vmem>>, vector<1x128xf32>,
    return
  }
}

</mosaic_0001>

<bundles_post_ra>
// kernel: tmae_forward.1
= control target key start
LH: loop header
LB: loop body
LE: loop exit
PB: predicated region body
PF: predicated region fallthrough
CT: control target
= control target key end

     0   :  { %17 = vsyncpa [#allocation7], 0  ;;  %s7744_s0 = inlined_call_operand.vmem [shape: bf16[64,8], index: 0, kind: input, shape index: {}]   ;;  %s7745_s1 = inlined_call_operand.vmem [shape: f32[8,8,4], index: 1, kind: input, shape index: {}]   ;;  %s7746_s2 = inlined_call_operand.vmem [shape: f32[8,8], index: 2, kind: input, shape index: {}]   ;;  %s7747_s3 = inlined_call_operand.hbm [shape: bf16[8,1184], index: 3, kind: input, shape index: {}]   ;;  %s7748_s4 = inlined_call_operand.hbm [shape: f32[1,1184], index: 4, kind: input, shape index: {}]   ;;  %s7749_s5 = inlined_call_operand.vmem [shape: bf16[3,32,384], index: 5, kind: input, shape index: {}]   ;;  %s7750_s6 = inlined_call_operand.vmem [shape: f32[3,1,384], index: 6, kind: input, shape index: {}]   ;;  %s7751_s7 = inlined_call_operand.hbm [shape: bf16[3,32,32], index: 7, kind: input, shape index: {}]   ;;  %s7752_s8 = inlined_call_operand.vmem [shape: bf16[144,256], index: 8, kind: input, shape index: {}]   ;;  %s7753_s9 = inlined_call_operand.vmem [shape: f32[8,256], index: 9, kind: input, shape index: {}]   ;;  %s7754_s10 = inlined_call_operand.vmem [shape: f32[1,128], index: 10, kind: output, shape index: {0}]   ;;  %s7755_s11 = inlined_call_operand.hbm [shape: f32[8,128], index: 11, kind: output, shape index: {1}]  }
   0x1   :  { %18 = vsyncpa [#allocation10], 0 }
   0x2   :  { %19 = vsyncpa [#allocation8], 0  ;;  %s6205_s17 = smov [#allocation6]   ;;  %s6206_s19 = smov [#allocation9]  }
   0x3   :  { %s32_s18 = sshll.u32 %s6205_s17, 4  ;;  %s42_s20 = sshll.u32 %s6206_s19, 4  ;;  %s33_s18 = int_to_ptr.vmem [resolvable:$true] %s32_s18  ;;  %s43_s20 = int_to_ptr.vmem [resolvable:$true] %s42_s20 }
   0x4   :  { %s6105_s23 = scalar_lea.hbm %s7747_s3, 640 }
   0x5   :  { %p6106_p0 = scmp.ne.s32.totalorder %s7747_s3, %s6105_s23  ;;  %p6109_p1 = scmp.lt.u32.totalorder %s6105_s23, %s7747_s3 }
   0x7   :  { %p6111_p2 = pnand %p6109_p1, %p6106_p0 }
   0x9   :  { %6114 = shalt.err (!%p6111_p2)
}
   0xa   :  { %s6115_s28 = scalar_lea.vmem %s33_s18, 640  ;;  %p6120_p4 = scmp.lt.s32.totalorder %s33_s18, %s33_s18 }
   0xb   :  { %p6116_p3 = scmp.ne.s32.totalorder %s33_s18, %s6115_s28  ;;  %p6121_p5 = scmp.lt.s32.totalorder %s6115_s28, %s6115_s28 }
   0xd   :  { %p6122_p6 = por %p6121_p5, %p6120_p4 }
   0xf   :  { %p6123_p7 = pnand %p6122_p6, %p6116_p3 }
  0x11   :  { %6126 = shalt.err (!%p6123_p7)
}
  0x12   :  { %35 = dma.hbm_to_vmem [thread:$0]  %s7747_s3, 640, %s33_s18, [#allocation7]  }
  0x13   :  { %s6127_s14 = scalar_lea.hbm %s7748_s4, 160 }
  0x14   :  { %p6128_p8 = scmp.ne.s32.totalorder %s7748_s4, %s6127_s14  ;;  %p6131_p9 = scmp.lt.u32.totalorder %s6127_s14, %s7748_s4 }
  0x16   :  { %p6133_p10 = pnand %p6131_p9, %p6128_p8 }
  0x18   :  { %6136 = shalt.err (!%p6133_p10)
}
  0x19   :  { %s6137_s21 = scalar_lea.vmem %s43_s20, 160  ;;  %p6142_p12 = scmp.lt.s32.totalorder %s43_s20, %s43_s20 }
  0x1a   :  { %p6138_p11 = scmp.ne.s32.totalorder %s43_s20, %s6137_s21  ;;  %p6143_p13 = scmp.lt.s32.totalorder %s6137_s21, %s6137_s21 }
  0x1c   :  { %p6144_p0 = por %p6143_p13, %p6142_p12 }
  0x1e   :  { %p6145_p1 = pnand %p6144_p0, %p6138_p11 }
  0x20   :  { %6148 = shalt.err (!%p6145_p1)
}
  0x21   :  { %45 = dma.hbm_to_vmem [thread:$0]  %s7748_s4, 160, %s43_s20, [#allocation10]  }
  0x22   :  { %6193 = dma.done.wait [#allocation7], 640  }
  0x23   :  { %6194 = vsyncadd [#allocation7], 4294966656 }
  0x24   :  { %6195 = dma.done.wait [#allocation10], 160  }
  0x25   :  { %6196 = vsyncadd [#allocation10], 4294967136  ;;  %v74_v0 = vld [vmem:[%s7749_s5] sm:$0xf]  ;;  %v76_v1 = vld [vmem:[%s7749_s5 + $0xc] sm:$0xf] }
  0x26   :  { %v78_v2 = vld [vmem:[%s7749_s5 + $0x4] sm:$0xf]  ;;  %75 = vst [vmem:[#allocation2] sm:$0xf] %v74_v0  ;;  %77 = vst [vmem:[#allocation2 + $0x4] sm:$0xf] %v76_v1 }
  0x27   :  { %79 = vst [vmem:[#allocation2 + $0x8] sm:$0xf] %v78_v2  ;;  %v80_v3 = vld [vmem:[%s7749_s5 + $0x10] sm:$0xf]  ;;  %v82_v4 = vld [vmem:[%s7749_s5 + $0x8] sm:$0xf] }
  0x28   :  { %v84_v5 = vld [vmem:[%s7749_s5 + $0x14] sm:$0xff]   ;;  %81 = vst [vmem:[#allocation2 + $0xc] sm:$0xf] %v80_v3  ;;  %83 = vst [vmem:[#allocation2 + $0x10] sm:$0xf] %v82_v4  ;;  %v96_v10 = vld [vmem:[%s7749_s5 + $0x2c] sm:$0xff]  }
  0x29   :  { %85 = vst [vmem:[#allocation2 + $0x14] sm:$0xff] %v84_v5   ;;  %v88_v6 = vld [vmem:[%s7749_s5 + $0x24] sm:$0xf]  ;;  %v90_v7 = vld [vmem:[%s7749_s5 + $0x1c] sm:$0xf]  ;;  %97 = vst [vmem:[#allocation2 + $0x2c] sm:$0xff] %v96_v10  }
  0x2a   :  { %v92_v8 = vld [vmem:[%s7749_s5 + $0x28] sm:$0xf]  ;;  %89 = vst [vmem:[#allocation2 + $0x1c] sm:$0xf] %v88_v6  ;;  %91 = vst [vmem:[#allocation2 + $0x20] sm:$0xf] %v90_v7 }
  0x2b   :  { %93 = vst [vmem:[#allocation2 + $0x24] sm:$0xf] %v92_v8  ;;  %v94_v9 = vld [vmem:[%s7749_s5 + $0x20] sm:$0xf]  ;;  %v100_v11 = vld [vmem:[%s7749_s5 + $0x3c] sm:$0xf] }
  0x2c   :  { %95 = vst [vmem:[#allocation2 + $0x28] sm:$0xf] %v94_v9  ;;  %101 = vst [vmem:[#allocation2 + $0x34] sm:$0xf] %v100_v11  ;;  %v102_v12 = vld [vmem:[%s7749_s5 + $0x34] sm:$0xf] }
  0x2d   :  { %v104_v13 = vld [vmem:[%s7749_s5 + $0x40] sm:$0xf]  ;;  %v106_v14 = vld [vmem:[%s7749_s5 + $0x38] sm:$0xf]  ;;  %103 = vst [vmem:[#allocation2 + $0x38] sm:$0xf] %v102_v12 }
  0x2e   :  { %105 = vst [vmem:[#allocation2 + $0x3c] sm:$0xf] %v104_v13  ;;  %107 = vst [vmem:[#allocation2 + $0x40] sm:$0xf] %v106_v14  ;;  %v108_v15 = vld [vmem:[%s7749_s5 + $0x44] sm:$0xff]   ;;  %v120_v20 = vld [vmem:[%s7749_s5 + $0x5c] sm:$0xff]  }
  0x2f   :  { %v112_v16 = vld [vmem:[%s7749_s5 + $0x54] sm:$0xf]  ;;  %v114_v17 = vld [vmem:[%s7749_s5 + $0x4c] sm:$0xf]  ;;  %109 = vst [vmem:[#allocation2 + $0x44] sm:$0xff] %v108_v15   ;;  %121 = vst [vmem:[#allocation2 + $0x5c] sm:$0xff] %v120_v20  }
  0x30   :  { %113 = vst [vmem:[#allocation2 + $0x4c] sm:$0xf] %v112_v16  ;;  %115 = vst [vmem:[#allocation2 + $0x50] sm:$0xf] %v114_v17  ;;  %v116_v18 = vld [vmem:[%s7749_s5 + $0x58] sm:$0xf] }
  0x31   :  { %v118_v19 = vld [vmem:[%s7749_s5 + $0x50] sm:$0xf]  ;;  %117 = vst [vmem:[#allocation2 + $0x54] sm:$0xf] %v116_v18  ;;  %v124_v21 = vld [vmem:[%s7749_s5 + $0x6c] sm:$0xf] }
  0x32   :  { %119 = vst [vmem:[#allocation2 + $0x58] sm:$0xf] %v118_v19  ;;  %v126_v22 = vld [vmem:[%s7749_s5 + $0x64] sm:$0xf]  ;;  %v128_v23 = vld [vmem:[%s7749_s5 + $0x70] sm:$0xf] }
  0x33   :  { %125 = vst [vmem:[#allocation2 + $0x64] sm:$0xf] %v124_v21  ;;  %127 = vst [vmem:[#allocation2 + $0x68] sm:$0xf] %v126_v22  ;;  %v130_v24 = vld [vmem:[%s7749_s5 + $0x68] sm:$0xf] }
  0x34   :  { %129 = vst [vmem:[#allocation2 + $0x6c] sm:$0xf] %v128_v23  ;;  %v132_v25 = vld [vmem:[%s7749_s5 + $0x74] sm:$0xff]   ;;  %v136_v26 = vld [vmem:[%s7749_s5 + $0x84] sm:$0xf] }
  0x35   :  { %131 = vst [vmem:[#allocation2 + $0x70] sm:$0xf] %v130_v24  ;;  %133 = vst [vmem:[#allocation2 + $0x74] sm:$0xff] %v132_v25   ;;  %v138_v27 = vld [vmem:[%s7749_s5 + $0x7c] sm:$0xf] }
  0x36   :  { %137 = vst [vmem:[#allocation2 + $0x7c] sm:$0xf] %v136_v26  ;;  %v140_v28 = vld [vmem:[%s7749_s5 + $0x88] sm:$0xf]  ;;  %v142_v29 = vld [vmem:[%s7749_s5 + $0x80] sm:$0xf] }
  0x37   :  { %139 = vst [vmem:[#allocation2 + $0x80] sm:$0xf] %v138_v27  ;;  %141 = vst [vmem:[#allocation2 + $0x84] sm:$0xf] %v140_v28  ;;  %v144_v30 = vld [vmem:[%s7749_s5 + $0x8c] sm:$0xf] }
  0x38   :  { %143 = vst [vmem:[#allocation2 + $0x88] sm:$0xf] %v142_v29  ;;  %145 = vst [vmem:[#allocation2 + $0x8c] sm:$0xf] %v144_v30 }
  0x39   :  { %248 = vsyncadd [#allocation5], 2304  ;;  %v279_v31 = vld [vmem:[%s7752_s8] sm:$0xf]  ;;  %v285_v32 = vld [vmem:[%s7752_s8 + $0xc] sm:$0xff]   ;;  %s6207_s25 = smov [#allocation3]  }
  0x3a   :  { %s257_s26 = sshll.u32 %s6207_s25, 4  ;;  %280 = vst [vmem:[#allocation4] sm:$0xf] %v279_v31  ;;  %v281_v33 = vld [vmem:[%s7752_s8 + $0x8] sm:$0xf]  ;;  %286 = vst [vmem:[#allocation4 + $0xc] sm:$0xff] %v285_v32   ;;  %s258_s26 = int_to_ptr.vmem [resolvable:$true] %s257_s26 }
  0x3b   :  { %v293_v34 = vld [vmem:[%s7752_s8 + $0x1c] sm:$0xff]   ;;  %282 = vst [vmem:[#allocation4 + $0x4] sm:$0xf] %v281_v33  ;;  %v289_v35 = vld [vmem:[%s7752_s8 + $0x18] sm:$0xf]  ;;  %s6149_s15 = scalar_lea.hbm %s7751_s7, 768 }
  0x3c   :  { %294 = vst [vmem:[#allocation4 + $0x1c] sm:$0xff] %v293_v34   ;;  %v297_v36 = vld [vmem:[%s7752_s8 + $0x28] sm:$0xf]  ;;  %p6150_p2 = scmp.ne.s32.totalorder %s7751_s7, %s6149_s15  ;;  %p6153_p3 = scmp.lt.u32.totalorder %s6149_s15, %s7751_s7 }
  0x3e   :  { %p6155_p4 = pnand %p6153_p3, %p6150_p2 }
  0x40   :  { %6158 = shalt.err (!%p6155_p4)  }
  0x41   :  { %s6159_s3 = scalar_lea.vmem %s258_s26, 768  ;;  %p6164_p6 = scmp.lt.s32.totalorder %s258_s26, %s258_s26 }
  0x42   :  { %p6160_p5 = scmp.ne.s32.totalorder %s258_s26, %s6159_s3  ;;  %p6165_p7 = scmp.lt.s32.totalorder %s6159_s3, %s6159_s3 }
  0x44   :  { %p6166_p8 = por %p6165_p7, %p6164_p6 }
  0x46   :  { %p6167_p9 = pnand %p6166_p8, %p6160_p5 }
  0x48   :  { %6170 = shalt.err (!%p6167_p9)  }
  0x49   :  { %260 = dma.hbm_to_vmem [thread:$0]  %s7751_s7, 768, %s258_s26, [#allocation5 + $0x1]  ;;  %290 = vst [vmem:[#allocation4 + $0x14] sm:$0xf] %v289_v35  ;;  %298 = vst [vmem:[#allocation4 + $0x24] sm:$0xf] %v297_v36 }
  0x4a   :  { %v301_v37 = vld [vmem:[%s7752_s8 + $0x2c] sm:$0xff]   ;;  %v309_v38 = vld [vmem:[%s7752_s8 + $0x3c] sm:$0xff]   ;;  %v305_v39 = vld [vmem:[%s7752_s8 + $0x38] sm:$0xf] }
  0x4b   :  { %302 = vst [vmem:[#allocation4 + $0x2c] sm:$0xff] %v301_v37   ;;  %310 = vst [vmem:[#allocation4 + $0x3c] sm:$0xff] %v309_v38   ;;  %v313_v40 = vld [vmem:[%s7752_s8 + $0x48] sm:$0xf]  ;;  %v315_v41 = vld [vmem:[%s7752_s8 + $0x44] sm:$0xf] }
  0x4c   :  { %306 = vst [vmem:[#allocation4 + $0x34] sm:$0xf] %v305_v39  ;;  %314 = vst [vmem:[#allocation4 + $0x44] sm:$0xf] %v313_v40  ;;  %v317_v42 = vld [vmem:[%s7752_s8 + $0x4c] sm:$0xff]   ;;  %v325_v45 = vld [vmem:[%s7752_s8 + $0x5c] sm:$0xff]  }
  0x4d   :  { %v321_v43 = vld [vmem:[%s7752_s8 + $0x58] sm:$0xf]  ;;  %316 = vst [vmem:[#allocation4 + $0x48] sm:$0xf] %v315_v41  ;;  %318 = vst [vmem:[#allocation4 + $0x4c] sm:$0xff] %v317_v42   ;;  %v333_v48 = vld [vmem:[%s7752_s8 + $0x6c] sm:$0xff]  }
  0x4e   :  { %322 = vst [vmem:[#allocation4 + $0x54] sm:$0xf] %v321_v43  ;;  %v323_v44 = vld [vmem:[%s7752_s8 + $0x54] sm:$0xf]  ;;  %v329_v46 = vld [vmem:[%s7752_s8 + $0x68] sm:$0xf] }
  0x4f   :  { %324 = vst [vmem:[#allocation4 + $0x58] sm:$0xf] %v323_v44  ;;  %326 = vst [vmem:[#allocation4 + $0x5c] sm:$0xff] %v325_v45   ;;  %v331_v47 = vld [vmem:[%s7752_s8 + $0x64] sm:$0xf]  ;;  %v341_v51 = vld [vmem:[%s7752_s8 + $0x7c] sm:$0xff]  }
  0x50   :  { %330 = vst [vmem:[#allocation4 + $0x64] sm:$0xf] %v329_v46  ;;  %v337_v49 = vld [vmem:[%s7752_s8 + $0x78] sm:$0xf]  ;;  %332 = vst [vmem:[#allocation4 + $0x68] sm:$0xf] %v331_v47 }
  0x51   :  { %334 = vst [vmem:[#allocation4 + $0x6c] sm:$0xff] %v333_v48   ;;  %338 = vst [vmem:[#allocation4 + $0x74] sm:$0xf] %v337_v49  ;;  %v339_v50 = vld [vmem:[%s7752_s8 + $0x74] sm:$0xf] }
  0x52   :  { %340 = vst [vmem:[#allocation4 + $0x78] sm:$0xf] %v339_v50  ;;  %342 = vst [vmem:[#allocation4 + $0x7c] sm:$0xff] %v341_v51  }
  0x53   :  { %453 = vsyncadd [#allocation5 + $0x2], 2304  ;;  %v462_v52 = vld [vmem:[#allocation6] sm:$0xff]  ;;  %vm579_vm0 = vcmask 1043456   ;;  %v7757_v55 = vmov 0   ;;  %v464_v56 = vld [vmem:[#allocation6 + $0x10] sm:$0xff]  ;;  %v7756_v13 = vlaneseq }
  0x54   :  { %v5146_v53 = vcombine.high %v462_v52, %v462_v52  ;;  %v5145_v54 = vcombine.low %v462_v52, %v462_v52  ;;  %642 = vmatprep.mubr.bf16.mxu0 %v7757_v55  ;;  %715 = vmatprep.mubr.bf16.mxu1 %v7757_v55  ;;  %v5150_v57 = vcombine.high %v464_v56, %v464_v56  ;;  %v5816_v60 = vld [vmem:[%s7744_s0] sm:$0xff]   ;;  %vm566_vm1 = vcmask 64512   ;;  %v466_v62 = vld [vmem:[#allocation6 + $0x20] sm:$0xff]  ;;  %v463_v63 = vld [vmem:[#allocation6 + $0x8] sm:$0xff] }
  0x55   :  { %v5149_v58 = vcombine.low %v464_v56, %v464_v56  ;;  %v465_v0 = vld [vmem:[#allocation6 + $0x18] sm:$0xff]  ;;  %v5154_v1 = vcombine.high %v466_v62, %v466_v62  ;;  %v5148_v2 = vcombine.high %v463_v63, %v463_v63  ;;  %v5147_v3 = vcombine.low %v463_v63, %v463_v63  ;;  %v5820_v9 = vld [vmem:[%s7744_s0 + $0x10] sm:$0xff]   ;;  %v5821_v10 = vld [vmem:[%s7744_s0 + $0x18] sm:$0xff]  }
  0x56   :  { %5155 = vmatprep.subr.msk.bf16.mxu0 %vm579_vm0, %v5146_v53  ;;  %v581_v59 = vsel %vm579_vm0, %v5145_v54, 0  ;;  %v5152_v4 = vcombine.high %v465_v0, %v465_v0  ;;  %v5151_v5 = vcombine.low %v465_v0, %v465_v0  ;;  %v5819_v7 = vld [vmem:[%s7744_s0 + $0x8] sm:$0xff]   ;;  %v5153_v11 = vcombine.low %v466_v62, %v466_v62  ;;  %v6532_v16 = vld [vmem:[#allocation9] sm:$0xff] }
  0x57   :  { %611 = vmatpush1.bf16.msra.mxu0 %v581_v59  ;;  %v593_v61 = vsel %vm579_vm0, %v5149_v58, 0  ;;  %v587_v6 = vsel %vm579_vm0, %v5147_v3, 0  ;;  %5160 = vmatprep.subr.msk.bf16.mxu1 %vm579_vm0, %v5148_v2  ;;  %v6527_v14 = vshrl.u32 %v7756_v13, 7 }
  0x58   :  { %5165 = vmatprep.subr.msk.bf16.mxu0 %vm579_vm0, %v5150_v57  ;;  %684 = vmatpush1.bf16.msra.mxu1 %v587_v6  ;;  %v599_v8 = vsel %vm579_vm0, %v5151_v5, 0  ;;  %v605_v12 = vsel %vm579_vm0, %v5153_v11, 0 }
  0x59   :  { %5170 = vmatprep.subr.msk.bf16.mxu1 %vm579_vm0, %v5152_v4  ;;  %v6530_v15 = vsub.s32 0, %v6527_v14  ;;  %v6535_v17 = vsub.s32 1, %v6527_v14  ;;  %v6542_v20 = vsub.s32 2, %v6527_v14  ;;  %v485_v22 = vsub.s32 3, %v6527_v14 }
  0x5a   :  { %5156 = vmatmul.mubr.msk.bf16.vlgmr.msra.gmra.mrb[0].mxu0 %vm566_vm1, %v5816_v60 }
  0x5b   :  { %757 = vmatpush1.bf16.msra.mxu0 %v593_v61  ;;  %652 = vmatprep.mubr.bf16.mxu0 %v7757_v55  ;;  %7767 = vst [vmem:[#allocation24_spill] sm:$0xff] %v6530_v15  ;;  %7768 = vst [vmem:[#allocation25_spill] sm:$0xff] %v6535_v17  ;;  %v474_v18 = vrot.slane %v6532_v16, %v6530_v15  ;;  %v478_v19 = vrot.slane %v6532_v16, %v6535_v17 }
  0x5c   :  { %5175 = vmatprep.subr.msk.bf16.mxu0 %vm579_vm0, %v5154_v1  ;;  %5161 = vmatmul.mubr.msk.bf16.vlgmr.msra.gmra.mrb[0].mxu1 %vm566_vm1, %v5816_v60  ;;  %v6553_v29 = vrot.slane %v6532_v16, %v6542_v20  ;;  %v6558_v31 = vrot.slane %v6532_v16, %v485_v22  ;;  %v493_v22 = vsub.s32 5, %v6527_v14 }
  0x5d   :  { %830 = vmatpush1.bf16.msra.mxu1 %v599_v8  ;;  %725 = vmatprep.mubr.bf16.mxu1 %v7757_v55 }
  0x62   :  { %5157 = vmatmul.mubr.msk.bf16.gmra.mrb[4].mxu0 %vm566_vm1, %v5819_v7 }
  0x63   :  { %662 = vmatprep.mubr.bf16.mxu0 %v7757_v55 }
  0x64   :  { %5162 = vmatmul.mubr.msk.bf16.gmra.mrb[4].mxu1 %vm566_vm1, %v5819_v7 }
  0x65   :  { %735 = vmatprep.mubr.bf16.mxu1 %v7757_v55 }
  0x6a   :  { %5158 = vmatmul.mubr.msk.bf16.gmra.mrb[8].mxu0 %vm566_vm1, %v5820_v9 }
  0x6b   :  { %672 = vmatprep.mubr.bf16.mxu0 %v7757_v55 }
  0x6c   :  { %5163 = vmatmul.mubr.msk.bf16.gmra.mrb[8].mxu1 %vm566_vm1, %v5820_v9 }
  0x6d   :  { %745 = vmatprep.mubr.bf16.mxu1 %v7757_v55 }
  0x72   :  { %5159 = vmatmul.mubr.msk.bf16.gmra.mrb[12].mxu0 %vm566_vm1, %v5821_v10 }
  0x73   :  { %788 = vmatprep.mubr.bf16.mxu0 %v7757_v55 }
  0x74   :  { %5164 = vmatmul.mubr.msk.bf16.gmra.mrb[12].mxu1 %vm566_vm1, %v5821_v10 }
  0x75   :  { %861 = vmatprep.mubr.bf16.mxu1 %v7757_v55 }
  0x7a   :  { %5166 = vmatmul.mubr.msk.bf16.vlgmr.msra.gmra.mrb[16].mxu0 %vm566_vm1, %v5816_v60 }
  0x7b   :  { %901 = vmatpush1.bf16.msra.mxu0 %v605_v12  ;;  %798 = vmatprep.mubr.bf16.mxu0 %v7757_v55 }
  0x7c   :  { %5171 = vmatmul.mubr.msk.bf16.vlgmr.msra.gmra.mrb[16].mxu1 %vm566_vm1, %v5816_v60 }
  0x7d   :  { %871 = vmatprep.mubr.bf16.mxu1 %v7757_v55 }
  0x82   :  { %5167 = vmatmul.mubr.msk.bf16.gmra.mrb[20].mxu0 %vm566_vm1, %v5819_v7 }
  0x83   :  { %808 = vmatprep.mubr.bf16.mxu0 %v7757_v55 }
  0x84   :  { %5172 = vmatmul.mubr.msk.bf16.gmra.mrb[20].mxu1 %vm566_vm1, %v5819_v7 }
  0x85   :  { %881 = vmatprep.mubr.bf16.mxu1 %v7757_v55 }
  0x8a   :  { %5168 = vmatmul.mubr.msk.bf16.gmra.mrb[24].mxu0 %vm566_vm1, %v5820_v9 }
  0x8b   :  { %818 = vmatprep.mubr.bf16.mxu0 %v7757_v55 }
  0x8c   :  { %5173 = vmatmul.mubr.msk.bf16.gmra.mrb[24].mxu1 %vm566_vm1, %v5820_v9 }
  0x8d   :  { %891 = vmatprep.mubr.bf16.mxu1 %v7757_v55 }
  0x92   :  { %5169 = vmatmul.mubr.msk.bf16.gmra.mrb[28].mxu0 %vm566_vm1, %v5821_v10 }
  0x93   :  { %932 = vmatprep.mubr.bf16.mxu0 %v7757_v55 }
  0x94   :  { %5174 = vmatmul.mubr.msk.bf16.gmra.mrb[28].mxu1 %vm566_vm1, %v5821_v10 }
  0x9a   :  { %5176 = vmatmul.mubr.msk.bf16.vlgmr.msra.gmra.mrb[32].mxu0 %vm566_vm1, %v5816_v60 }
  0x9b   :  { %942 = vmatprep.mubr.bf16.mxu0 %v7757_v55 }
  0xa2   :  { %5177 = vmatmul.mubr.msk.bf16.gmra.mrb[36].mxu0 %vm566_vm1, %v5819_v7 }
  0xa3   :  { %952 = vmatprep.mubr.bf16.mxu0 %v7757_v55 }
  0xaa   :  { %5178 = vmatmul.mubr.msk.bf16.gmra.mrb[40].mxu0 %vm566_vm1, %v5820_v9  ;;  %v489_v9 = vsub.s32 4, %v6527_v14 }
  0xab   :  { %962 = vmatprep.mubr.bf16.mxu0 %v7757_v55 }
  0xb2   :  { %5179 = vmatmul.mubr.msk.bf16.gmra.mrb[44].mxu0 %vm566_vm1, %v5821_v10 }
 0x12d   :  { %v644_v21 = vpop.f32.mrb[0].mxu0 }
 0x12e   :  { %v6545_v23 = vadd.f32 %v644_v21, %v474_v18  ;;  %v646_v24 = vpop.f32.mrb[1].mxu0 }
 0x12f   :  { %v6547_v25 = vadd.f32 %v646_v24, %v478_v19  ;;  %v648_v26 = vpop.f32.mrb[2].mxu0  ;;  %v717_v32 = vpop.f32.mrb[0].mxu1 }
 0x130   :  { %v6549_v27 = vadd.f32 %v648_v26, %v474_v18  ;;  %v650_v28 = vpop.f32.mrb[3].mxu0  ;;  %v6561_v33 = vadd.f32 %v717_v32, %v6553_v29  ;;  %v719_v34 = vpop.f32.mrb[1].mxu1 }
 0x131   :  { %v6555_v30 = vadd.f32 %v650_v28, %v478_v19  ;;  %v6564_v36 = vadd.f32 %v719_v34, %v6558_v31  ;;  %v721_v37 = vpop.f32.mrb[2].mxu1  ;;  %v6623_v34 = vrot.slane %v6532_v16, %v489_v9 }
 0x132   :  { %v6569_v40 = vadd.f32 %v721_v37, %v6553_v29  ;;  %v723_v41 = vpop.f32.mrb[3].mxu1 }
 0x133   :  { %7769 = vst [vmem:[#allocation26_spill] sm:$0xff] %v6564_v36  ;;  %v6574_v44 = vadd.f32 %v723_v41, %v6558_v31 }
 0x135   :  { %v654_v35 = vpop.f32.mrb[4].mxu0  ;;  %7770 = vst [vmem:[#allocation27_spill] sm:$0xff] %v6574_v44 }
 0x136   :  { %v6566_v38 = vadd.f32 %v654_v35, %v474_v18  ;;  %v656_v39 = vpop.f32.mrb[5].mxu0  ;;  %v6626_v35 = vrot.slane %v6532_v16, %v493_v22 }
 0x137   :  { %v6571_v42 = vadd.f32 %v656_v39, %v478_v19  ;;  %v658_v43 = vpop.f32.mrb[6].mxu0  ;;  %v727_v48 = vpop.f32.mrb[4].mxu1 }
 0x138   :  { %v6576_v45 = vadd.f32 %v658_v43, %v474_v18  ;;  %v660_v46 = vpop.f32.mrb[7].mxu0  ;;  %v6581_v49 = vadd.f32 %v727_v48, %v6553_v29  ;;  %v729_v50 = vpop.f32.mrb[5].mxu1  ;;  %v497_v43 = vsub.s32 6, %v6527_v14 }
 0x139   :  { %v6578_v47 = vadd.f32 %v660_v46, %v478_v19  ;;  %v6584_v52 = vadd.f32 %v729_v50, %v6558_v31  ;;  %v731_v53 = vpop.f32.mrb[6].mxu1 }
 0x13a   :  { %v6589_v57 = vadd.f32 %v731_v53, %v6553_v29  ;;  %v733_v58 = vpop.f32.mrb[7].mxu1 }
 0x13b   :  { %7771 = vst [vmem:[#allocation28_spill] sm:$0xff] %v6584_v52  ;;  %v6594_v61 = vadd.f32 %v733_v58, %v6558_v31 }
 0x13d   :  { %v664_v51 = vpop.f32.mrb[8].mxu0 }
 0x13e   :  { %v6586_v54 = vadd.f32 %v664_v51, %v474_v18  ;;  %v666_v56 = vpop.f32.mrb[9].mxu0 }
 0x13f   :  { %v6591_v59 = vadd.f32 %v666_v56, %v478_v19  ;;  %v668_v60 = vpop.f32.mrb[10].mxu0  ;;  %v737_v1 = vpop.f32.mrb[8].mxu1 }
 0x140   :  { %v6596_v62 = vadd.f32 %v668_v60, %v474_v18  ;;  %v670_v63 = vpop.f32.mrb[11].mxu0  ;;  %v6601_v2 = vadd.f32 %v737_v1, %v6553_v29  ;;  %v739_v3 = vpop.f32.mrb[9].mxu1 }
 0x141   :  { %v6598_v0 = vadd.f32 %v670_v63, %v478_v19  ;;  %v6604_v5 = vadd.f32 %v739_v3, %v6558_v31  ;;  %v741_v6 = vpop.f32.mrb[10].mxu1 }
 0x142   :  { %7772 = vst [vmem:[#allocation29_spill] sm:$0xff] %v6596_v62  ;;  %7774 = vst [vmem:[#allocation31_spill] sm:$0xff] %v6601_v2  ;;  %v6610_v10 = vadd.f32 %v741_v6, %v6553_v29  ;;  %v743_v11 = vpop.f32.mrb[11].mxu1 }
 0x143   :  { %7773 = vst [vmem:[#allocation30_spill] sm:$0xff] %v6598_v0  ;;  %v6616_v24 = vadd.f32 %v743_v11, %v6558_v31 }
 0x144   :  { %7776 = vst [vmem:[#allocation33_spill] sm:$0xff] %v6610_v10 }
 0x145   :  { %v674_v4 = vpop.f32.mrb[12].mxu0 }
 0x146   :  { %v6606_v7 = vadd.f32 %v674_v4, %v474_v18  ;;  %v676_v8 = vpop.f32.mrb[13].mxu0 }
 0x147   :  { %v6612_v12 = vadd.f32 %v676_v8, %v478_v19  ;;  %v678_v21 = vpop.f32.mrb[14].mxu0  ;;  %v747_v37 = vpop.f32.mrb[12].mxu1 }
 0x148   :  { %7775 = vst [vmem:[#allocation32_spill] sm:$0xff] %v6606_v7  ;;  %v6618_v26 = vadd.f32 %v678_v21, %v474_v18  ;;  %v680_v28 = vpop.f32.mrb[15].mxu0  ;;  %v6629_v39 = vadd.f32 %v747_v37, %v6553_v29  ;;  %v749_v41 = vpop.f32.mrb[13].mxu1 }
 0x149   :  { %7777 = vst [vmem:[#allocation34_spill] sm:$0xff] %v6612_v12  ;;  %v6620_v32 = vadd.f32 %v680_v28, %v478_v19  ;;  %v6633_v18 = vadd.f32 %v749_v41, %v6558_v31  ;;  %v751_v48 = vpop.f32.mrb[14].mxu1  ;;  %v501_v19 = vsub.s32 7, %v6527_v14  ;;  %v6652_v14 = vrot.slane %v6532_v16, %v497_v43 }
 0x14a   :  { %7778 = vst [vmem:[#allocation35_spill] sm:$0xff] %v6618_v26  ;;  %7780 = vst [vmem:[#allocation37_spill] sm:$0xff] %v6629_v39  ;;  %v6640_v53 = vadd.f32 %v751_v48, %v6553_v29  ;;  %v753_v56 = vpop.f32.mrb[15].mxu1 }
 0x14b   :  { %7779 = vst [vmem:[#allocation36_spill] sm:$0xff] %v6620_v32  ;;  %v6646_v63 = vadd.f32 %v753_v56, %v6558_v31  ;;  %7785 = vst [vmem:[#allocation42_spill] sm:$0xff] %v6652_v14  ;;  %v6658_v29 = vrot.slane %v6532_v16, %v501_v19 }
 0x14c   :  { %7782 = vst [vmem:[#allocation39_spill] sm:$0xff] %v6640_v53 }
 0x14d   :  { %v790_v46 = vpop.f32.mrb[16].mxu0  ;;  %7787 = vst [vmem:[#allocation44_spill] sm:$0xff] %v6658_v29 }
 0x14e   :  { %v6637_v50 = vadd.f32 %v790_v46, %v6623_v34  ;;  %v792_v51 = vpop.f32.mrb[17].mxu0 }
 0x14f   :  { %v6643_v58 = vadd.f32 %v792_v51, %v6626_v35  ;;  %v794_v60 = vpop.f32.mrb[18].mxu0  ;;  %v863_v6 = vpop.f32.mrb[16].mxu1 }
 0x150   :  { %7781 = vst [vmem:[#allocation38_spill] sm:$0xff] %v6637_v50  ;;  %v6649_v1 = vadd.f32 %v794_v60, %v6623_v34  ;;  %v796_v3 = vpop.f32.mrb[19].mxu0  ;;  %v6661_v8 = vadd.f32 %v863_v6, %v6652_v14  ;;  %v865_v9 = vpop.f32.mrb[17].mxu1 }
 0x151   :  { %7783 = vst [vmem:[#allocation40_spill] sm:$0xff] %v6643_v58  ;;  %v6655_v4 = vadd.f32 %v796_v3, %v6626_v35  ;;  %v6664_v11 = vadd.f32 %v865_v9, %v6658_v29  ;;  %v867_v21 = vpop.f32.mrb[18].mxu1 }
 0x152   :  { %7784 = vst [vmem:[#allocation41_spill] sm:$0xff] %v6649_v1  ;;  %7788 = vst [vmem:[#allocation45_spill] sm:$0xff] %v6661_v8  ;;  %v6670_v37 = vadd.f32 %v867_v21, %v6652_v14  ;;  %v869_v41 = vpop.f32.mrb[19].mxu1 }
 0x153   :  { %7786 = vst [vmem:[#allocation43_spill] sm:$0xff] %v6655_v4  ;;  %7789 = vst [vmem:[#allocation46_spill] sm:$0xff] %v6664_v11  ;;  %v6676_v46 = vadd.f32 %v869_v41, %v6658_v29 }
 0x154   :  { %7791 = vst [vmem:[#allocation48_spill] sm:$0xff] %v6670_v37 }
 0x155   :  { %v800_v31 = vpop.f32.mrb[20].mxu0  ;;  %7793 = vst [vmem:[#allocation50_spill] sm:$0xff] %v6676_v46 }
 0x156   :  { %v6667_v22 = vadd.f32 %v800_v31, %v6623_v34  ;;  %v802_v28 = vpop.f32.mrb[21].mxu0 }
 0x157   :  { %v6673_v16 = vadd.f32 %v802_v28, %v6626_v35  ;;  %v804_v43 = vpop.f32.mrb[22].mxu0  ;;  %v873_v56 = vpop.f32.mrb[20].mxu1 }
 0x158   :  { %7790 = vst [vmem:[#allocation47_spill] sm:$0xff] %v6667_v22  ;;  %v6679_v48 = vadd.f32 %v804_v43, %v6623_v34  ;;  %v806_v19 = vpop.f32.mrb[23].mxu0  ;;  %v6685_v60 = vadd.f32 %v873_v56, %v6652_v14  ;;  %v875_v3 = vpop.f32.mrb[21].mxu1 }
 0x159   :  { %7792 = vst [vmem:[#allocation49_spill] sm:$0xff] %v6673_v16  ;;  %v6682_v51 = vadd.f32 %v806_v19, %v6626_v35  ;;  %v6688_v9 = vadd.f32 %v875_v3, %v6658_v29  ;;  %v877_v31 = vpop.f32.mrb[22].mxu1 }
 0x15a   :  { %7795 = vst [vmem:[#allocation52_spill] sm:$0xff] %v6685_v60  ;;  %v6694_v41 = vadd.f32 %v877_v31, %v6652_v14  ;;  %v879_v43 = vpop.f32.mrb[23].mxu1 }
 0x15b   :  { %7794 = vst [vmem:[#allocation51_spill] sm:$0xff] %v6682_v51  ;;  %7796 = vst [vmem:[#allocation53_spill] sm:$0xff] %v6688_v9  ;;  %v6700_v56 = vadd.f32 %v879_v43, %v6658_v29 }
 0x15c   :  { %7797 = vst [vmem:[#allocation54_spill] sm:$0xff] %v6694_v41 }
 0x15d   :  { %v810_v6 = vpop.f32.mrb[24].mxu0  ;;  %7798 = vst [vmem:[#allocation55_spill] sm:$0xff] %v6700_v56 }
 0x15e   :  { %v6691_v21 = vadd.f32 %v810_v6, %v6623_v34  ;;  %v812_v28 = vpop.f32.mrb[25].mxu0 }
 0x15f   :  { %v6697_v19 = vadd.f32 %v812_v28, %v6626_v35  ;;  %v814_v13 = vpop.f32.mrb[26].mxu0  ;;  %v883_v6 = vpop.f32.mrb[24].mxu1 }
 0x160   :  { %v6703_v55 = vadd.f32 %v814_v13, %v6623_v34  ;;  %v816_v3 = vpop.f32.mrb[27].mxu0  ;;  %v6709_v60 = vadd.f32 %v883_v6, %v6652_v14  ;;  %v885_v31 = vpop.f32.mrb[25].mxu1  ;;  %v468_v6 = vld [vmem:[#allocation9 + $0x8] sm:$0x3] }
 0x161   :  { %v6706_v9 = vadd.f32 %v816_v3, %v6626_v35  ;;  %v6712_v28 = vadd.f32 %v885_v31, %v6658_v29  ;;  %v887_v46 = vpop.f32.mrb[26].mxu1  ;;  %v506_v8 = vrot.slane %v468_v6, %v6530_v15 }
 0x162   :  { %7799 = vst [vmem:[#allocation56_spill] sm:$0xff] %v6709_v60  ;;  %v6718_v13 = vadd.f32 %v887_v46, %v6652_v14  ;;  %v889_v37 = vpop.f32.mrb[27].mxu1  ;;  %v510_v46 = vrot.slane %v468_v6, %v6535_v17 }
 0x163   :  { %7800 = vst [vmem:[#allocation57_spill] sm:$0xff] %v6712_v28  ;;  %v6724_v60 = vadd.f32 %v889_v37, %v6658_v29 }
 0x164   :  { %7801 = vst [vmem:[#allocation58_spill] sm:$0xff] %v6718_v13 }
 0x165   :  { %v820_v41 = vpop.f32.mrb[28].mxu0  ;;  %7802 = vst [vmem:[#allocation59_spill] sm:$0xff] %v6724_v60 }
 0x166   :  { %v6715_v43 = vadd.f32 %v820_v41, %v6623_v34  ;;  %v822_v56 = vpop.f32.mrb[29].mxu0 }
 0x167   :  { %v6721_v3 = vadd.f32 %v822_v56, %v6626_v35  ;;  %v824_v11 = vpop.f32.mrb[30].mxu0 }
 0x168   :  { %v6727_v31 = vadd.f32 %v824_v11, %v6623_v34  ;;  %v826_v28 = vpop.f32.mrb[31].mxu0 }
 0x169   :  { %v6730_v41 = vadd.f32 %v826_v28, %v6626_v35 }
 0x16d   :  { %v934_v14 = vpop.f32.mrb[32].mxu0 }
 0x16e   :  { %v6734_v13 = vadd.f32 %v934_v14, %v506_v8  ;;  %v936_v56 = vpop.f32.mrb[33].mxu0 }
 0x16f   :  { %v6736_v58 = vadd.f32 %v936_v56, %v510_v46  ;;  %v938_v53 = vpop.f32.mrb[34].mxu0 }
 0x170   :  { %7803 = vst [vmem:[#allocation60_spill] sm:$0xff] %v6734_v13  ;;  %v6738_v37 = vadd.f32 %v938_v53, %v506_v8  ;;  %v940_v29 = vpop.f32.mrb[35].mxu0 }
 0x171   :  { %7804 = vst [vmem:[#allocation61_spill] sm:$0xff] %v6736_v58  ;;  %v6740_v34 = vadd.f32 %v940_v29, %v510_v46 }
 0x172   :  { %7805 = vst [vmem:[#allocation62_spill] sm:$0xff] %v6738_v37 }
 0x173   :  { %7806 = vst [vmem:[#allocation63_spill] sm:$0xff] %v6740_v34 }
 0x175   :  { %v944_v11 = vpop.f32.mrb[36].mxu0 }
 0x176   :  { %v6742_v60 = vadd.f32 %v944_v11, %v506_v8  ;;  %v946_v35 = vpop.f32.mrb[37].mxu0 }
 0x177   :  { %v6744_v28 = vadd.f32 %v946_v35, %v510_v46  ;;  %v948_v50 = vpop.f32.mrb[38].mxu0 }
 0x178   :  { %7807 = vst [vmem:[#allocation64_spill] sm:$0xff] %v6742_v60  ;;  %v6746_v6 = vadd.f32 %v948_v50, %v506_v8  ;;  %v950_v14 = vpop.f32.mrb[39].mxu0 }
 0x179   :  { %7808 = vst [vmem:[#allocation65_spill] sm:$0xff] %v6744_v28  ;;  %v6748_v13 = vadd.f32 %v950_v14, %v510_v46 }
 0x17a   :  { %7809 = vst [vmem:[#allocation66_spill] sm:$0xff] %v6746_v6 }
 0x17b   :  { %7810 = vst [vmem:[#allocation67_spill] sm:$0xff] %v6748_v13 }
 0x17d   :  { %v954_v56 = vpop.f32.mrb[40].mxu0 }
 0x17e   :  { %v6750_v58 = vadd.f32 %v954_v56, %v506_v8  ;;  %v956_v53 = vpop.f32.mrb[41].mxu0 }
 0x17f   :  { %v6752_v37 = vadd.f32 %v956_v53, %v510_v46  ;;  %v958_v29 = vpop.f32.mrb[42].mxu0 }
 0x180   :  { %7811 = vst [vmem:[#allocation68_spill] sm:$0xff] %v6750_v58  ;;  %v6754_v34 = vadd.f32 %v958_v29, %v506_v8  ;;  %v960_v11 = vpop.f32.mrb[43].mxu0 }
 0x181   :  { %7812 = vst [vmem:[#allocation69_spill] sm:$0xff] %v6752_v37  ;;  %v6756_v60 = vadd.f32 %v960_v11, %v510_v46 }
 0x182   :  { %7813 = vst [vmem:[#allocation70_spill] sm:$0xff] %v6754_v34 }
 0x183   :  { %7814 = vst [vmem:[#allocation71_spill] sm:$0xff] %v6756_v60 }
 0x185   :  { %v964_v35 = vpop.f32.mrb[44].mxu0 }
 0x186   :  { %v6758_v28 = vadd.f32 %v964_v35, %v506_v8  ;;  %v966_v50 = vpop.f32.mrb[45].mxu0 }
 0x187   :  { %v6760_v6 = vadd.f32 %v966_v50, %v510_v46  ;;  %v968_v14 = vpop.f32.mrb[46].mxu0 }
 0x188   :  { %7815 = vst [vmem:[#allocation72_spill] sm:$0xff] %v6758_v28  ;;  %v969_v13 = vpop.f32.mrb[47].mxu0 }
 0x189   :  { %7816 = vst [vmem:[#allocation73_spill] sm:$0xff] %v6760_v6  ;;  %v6762_v36 = vadd.f32 %v969_v13, %v510_v46 }
 0x18b   :  { %7817 = vst [vmem:[#allocation74_spill] sm:$0xff] %v6762_v36 }
 0x18c   :  { %6197 = dma.done.wait [#allocation5], 2304 }
 0x18d   :  { %6198 = vsyncadd [#allocation5], 4294964992 }
 0x18e   :  { %6199 = dma.done.wait [#allocation5 + $0x1], 768 }
 0x18f   :  { %6200 = vsyncadd [#allocation5 + $0x1], 4294966528 }
 0x190   :  { %6201 = dma.done.wait [#allocation5 + $0x2], 2304 }
 0x191   :  { %6202 = vsyncadd [#allocation5 + $0x2], 4294964992  ;;  %v7818_v56 = vmov 0   ;;  %v6766_v53 = vld [vmem:[#allocation2 + $0x8] sm:$0xff]  ;;  %v6768_v8 = vld [vmem:[#allocation2] sm:$0xff]  ;;  %v7761_v11 = vmov 0.0  }
 0x192   :  { %1089 = vmatprep.mubr.bf16.mxu1 %v7818_v56  ;;  %1315 = vmatprep.mubr.bf16.mxu0 %v7818_v56  ;;  %v6770_v29 = vld [vmem:[#allocation2 + $0x20] sm:$0xff]  ;;  %v6777_v13 = vld [vmem:[#allocation2 + $0x18] sm:$0xff]  ;;  %v6785_v35 = vld [vmem:[#allocation2 + $0x10] sm:$0xff]  ;;  %vm6210_vm2 = vmmov 0   ;;  %vm1053_vm3 = vcmask 261120   ;;  %vm3205_vm4 = vcmask 31744  }
 0x193   :  { %1057 = vmatprep.subr.bf16.mxu1 %v6766_v53  ;;  %1283 = vmatprep.subr.bf16.mxu0 %v6766_v53  ;;  %v6781_v46 = vld [vmem:[#allocation2 + $0x38] sm:$0xff]  ;;  %v6793_v50 = vld [vmem:[#allocation2 + $0x28] sm:$0xff]  ;;  %v6797_v14 = vld [vmem:[#allocation2 + $0x30] sm:$0xff]  ;;  %s6211_s18 = smov [#allocation11]  }
 0x194   :  { %1058 = vmatpush1.bf16.msra.mxu1 %v6768_v8  ;;  %1284 = vmatpush1.bf16.msra.mxu0 %v6768_v8  ;;  %v6799_v36 = vld [vmem:[#allocation2 + $0x50] sm:$0xff]  ;;  %v6805_v28 = vld [vmem:[#allocation2 + $0x48] sm:$0xff]  ;;  %v6809_v6 = vld [vmem:[#allocation2 + $0x40] sm:$0xff]  ;;  %s5081_s22 = sshll.u32 %s6211_s18, 4  ;;  %s5082_s22 = int_to_ptr.vmem [resolvable:$true] %s5081_s22 }
 0x195   :  { %1059 = vmatprep.subr.bf16.mxu1 %v6770_v29  ;;  %1285 = vmatprep.subr.bf16.mxu0 %v6770_v29  ;;  %v6816_v34 = vld [vmem:[#allocation2 + $0x58] sm:$0xff]  ;;  %v1004_v60 = vld [vmem:[%s7750_s6] sm:$0x7]  ;;  %v5180_v0 = vld [vmem:[%s7750_s6 + $0x3] sm:$0x7]  ;;  %s6171_s23 = scalar_lea.vmem %s5082_s22, 128  ;;  %p6176_p11 = scmp.lt.s32.totalorder %s5082_s22, %s5082_s22 }
 0x196   :  { %v6831_v58 = vrot.slane %v1004_v60, %v6530_v15  ;;  %v6834_v37 = vrot.slane %v1004_v60, %v6535_v17  ;;  %v6844_v62 = vrot.slane %v5180_v0, %v6530_v15  ;;  %p6172_p10 = scmp.ne.s32.totalorder %s5082_s22, %s6171_s23  ;;  %p6177_p12 = scmp.lt.s32.totalorder %s6171_s23, %s6171_s23 }
 0x198   :  { %1060 = vmatpush1.bf16.msra.mxu1 %v6777_v13  ;;  %1286 = vmatpush1.bf16.msra.mxu0 %v6777_v13  ;;  %p6178_p13 = por %p6177_p12, %p6176_p11 }
 0x199   :  { %5437 = vmatprep.subr.bf16.mxu1 %v7761_v11  ;;  %1389 = vmatprep.subr.bf16.mxu0 %v6781_v46 }
 0x19a   :  { %p6179_p0 = pnand %p6178_p13, %p6172_p10 }
 0x19b   :  { %1090 = vmatmul.mubr.bf16.vlgmr.msra.gmra.mrb[32].mxu1 %v7818_v56 }
 0x19c   :  { %5438 = vmatpush3.bf16.msra.mxu1 %v6785_v35  ;;  %5441 = vmatprep.mubr.msk.bf16.mxu1 %vm6210_vm2, %v7761_v11 }
 0x19d   :  { %5439 = vmatprep.subr.bf16.mxu1 %v7761_v11 }
 0x1a0   :  { %5440 = vmatpush3.bf16.msra.mxu1 %v6793_v50 }
 0x1a1   :  { %1175 = vmatprep.subr.bf16.mxu1 %v6781_v46 }
 0x1a3   :  { %5442 = vmatmul.mubr.bf16.vlgmr.msra.gmra.mrb[36].mxu1 %v7818_v56 }
 0x1a4   :  { %1176 = vmatpush1.bf16.msra.mxu1 %v6797_v14  ;;  %1207 = vmatprep.mubr.bf16.mxu1 %v7818_v56 }
 0x1a5   :  { %1177 = vmatprep.subr.bf16.mxu1 %v6799_v36 }
 0x1a8   :  { %1178 = vmatpush1.bf16.msra.mxu1 %v6805_v28 }
 0x1a9   :  { %5445 = vmatprep.subr.bf16.mxu1 %v7761_v11 }
 0x1ab   :  { %1208 = vmatmul.mubr.bf16.vlgmr.msra.gmra.mrb[40].mxu1 %v7818_v56 }
 0x1ac   :  { %5446 = vmatpush3.bf16.msra.mxu1 %v6809_v6  ;;  %5449 = vmatprep.mubr.msk.bf16.mxu1 %vm6210_vm2, %v7761_v11 }
 0x1ad   :  { %5447 = vmatprep.subr.bf16.mxu1 %v7761_v11 }
 0x1b0   :  { %5448 = vmatpush3.bf16.msra.mxu1 %v6816_v34 }
 0x1b1   :  { %5453 = vmatprep.subr.bf16.mxu1 %v7761_v11 }
 0x1b3   :  { %5450 = vmatmul.mubr.bf16.vlgmr.msra.gmra.mrb[44].mxu1 %v7818_v56 }
 0x1b4   :  { %5454 = vmatpush3.bf16.msra.mxu1 %v6785_v35  ;;  %5457 = vmatprep.mubr.msk.bf16.mxu1 %vm6210_vm2, %v7761_v11 }
 0x1b5   :  { %5455 = vmatprep.subr.bf16.mxu1 %v7761_v11 }
 0x1b8   :  { %5456 = vmatpush3.bf16.msra.mxu1 %v6793_v50 }
 0x1b9   :  { %5461 = vmatprep.subr.bf16.mxu1 %v7761_v11 }
 0x26e   :  { %v1091_v32 = vpop.f32.mrb[32].mxu1 }
 0x26f   :  { %v1092_v26 = vadd.f32 %v1091_v32, %v6831_v58  ;;  %v1093_v4 = vpop.f32.mrb[33].mxu1 }
 0x270   :  { %v1094_v39 = vadd.f32 %v1093_v4, %v6834_v37  ;;  %v1095_v1 = vpop.f32.mrb[34].mxu1 }
 0x271   :  { %v1138_v44 = vadd.f32 %v1092_v26, %v6545_v23  ;;  %v1096_v11 = vpop.f32.mrb[35].mxu1  ;;  %v6847_v23 = vrot.slane %v5180_v0, %v6535_v17  ;;  %v6854_v17 = vrot.slane %v1004_v60, %v6542_v20  ;;  %v6859_v60 = vrot.slane %v5180_v0, %v6542_v20 }
 0x272   :  { %v1145_v7 = vadd.f32 %v1094_v39, %v6547_v25 }
 0x273   :  { %v5184_v12 = vmul.f32 -1.442695, %v1138_v44 }
 0x274   :  { %v5185_v22 = vmul.f32 -1.442695, %v1145_v7 }
 0x275   :  { %5828 = vpow2.f32 %v5184_v12 }
 0x276   :  { %v1132_v16 = vpop.f32.mrb[36].mxu1  ;;  %5830 = vpow2.f32 %v5185_v22 }
 0x277   :  { %v5443_v10 = vpop.f32.mrb[37].mxu1 }
 0x278   :  { %v1135_v52 = vpop.f32.mrb[38].mxu1 }
 0x279   :  { %v5444_v32 = vpop.f32.mrb[39].mxu1 }
 0x27e   :  { %v1209_v44 = vpop.f32.mrb[40].mxu1 }
 0x27f   :  { %v5829_v26 = vpop.eup %5828  ;;  %v1210_v25 = vadd.f32 %v1209_v44, %v6844_v62  ;;  %v1211_v12 = vpop.f32.mrb[41].mxu1 }
 0x280   :  { %v1142_v10 = vadd.f32 1.0, %v5829_v26  ;;  %v1212_v52 = vadd.f32 %v1211_v12, %v6847_v23  ;;  %v1213_v7 = vpop.f32.mrb[42].mxu1  ;;  %v5831_v22 = vpop.eup %5830  ;;  %v1133_v12 = vadd.f32 %v1132_v16, %v6854_v17 }
 0x281   :  { %v1256_v39 = vadd.f32 %v1210_v25, %v6646_v63  ;;  %v1214_v1 = vpop.f32.mrb[43].mxu1  ;;  %v1149_v26 = vadd.f32 1.0, %v5831_v22 }
 0x282   :  { %5832 = vrcp.f32 %v1142_v10  ;;  %v1263_v11 = vadd.f32 %v1212_v52, %v6727_v31 }
 0x283   :  { %v5186_v4 = vmul.f32 -1.442695, %v1256_v39 }
 0x284   :  { %v5187_v44 = vmul.f32 -1.442695, %v1263_v11 }
 0x285   :  { %5834 = vpow2.f32 %v5186_v4 }
 0x286   :  { %v1250_v32 = vpop.f32.mrb[44].mxu1  ;;  %5836 = vpow2.f32 %v5187_v44 }
 0x287   :  { %v5451_v15 = vpop.f32.mrb[45].mxu1  ;;  %5838 = vrcp.f32 %v1149_v26 }
 0x288   :  { %v1253_v51 = vpop.f32.mrb[46].mxu1 }
 0x289   :  { %v5452_v2 = vpop.f32.mrb[47].mxu1 }
 0x28a   :  { %v1251_v2 = vadd.f32 %v1250_v32, %v6859_v60  ;;  %v7819_v32 = vmov 0.0  }
 0x28c   :  { %v5833_v7 = vpop.eup %5832 }
 0x28d   :  { %v1152_v63 = vmul.f32 %v5833_v7, %v1133_v12 }
 0x28f   :  { %v5835_v25 = vpop.eup %5834  ;;  %v1153_v31 = vadd.f32 %v1152_v63, %v6561_v33 }
 0x290   :  { %v1260_v10 = vadd.f32 1.0, %v5835_v25  ;;  %v5837_v15 = vpop.eup %5836 }
 0x291   :  { %5840 = vtanh.f32 %v1153_v31  ;;  %v5839_v52 = vpop.eup %5838  ;;  %v1267_v51 = vadd.f32 1.0, %v5837_v15 }
 0x292   :  { %5842 = vrcp.f32 %v1260_v10  ;;  %v1155_v39 = vsub.f32 1.0, %v5839_v52  ;;  %v1157_v11 = vmul.f32 0.0, %v5839_v52 }
 0x293   :  { %5844 = vrcp.f32 %v1267_v51 }
 0x29b   :  { %v5841_v16 = vpop.eup %5840 }
 0x29c   :  { %v5843_v1 = vpop.eup %5842  ;;  %v1156_v4 = vmul.f32 %v5841_v16, %v1155_v39 }
 0x29d   :  { %v1270_v22 = vmul.f32 %v5843_v1, %v1251_v2 }
 0x29e   :  { %v6862_v44 = vadd.f32 %v1157_v11, %v1156_v4 }
 0x29f   :  { %v1271_v33 = vadd.f32 %v1270_v22, %v6730_v41  ;;  %v5845_v41 = vpop.eup %5844 }
 0x2a0   :  { %v1279_v0 = vpack.c.bf16 %v6862_v44, %v6862_v44  ;;  %v1273_v26 = vsub.f32 1.0, %v5845_v41  ;;  %v1275_v7 = vmul.f32 0.0, %v5845_v41 }
 0x2a1   :  { %5846 = vtanh.f32 %v1271_v33 }
 0x2a2   :  { %5188 = vmatmul.mubr.msk.bf16.vlgmr.msra.gmra.mrb[48].mxu0 %vm1053_vm3, %v1279_v0  ;;  %5458 = vmatmul.mubr.msk.bf16.vlgmr.msra.gmra.mrb[48].mxu1 %vm1053_vm3, %v1279_v0 }
 0x2a3   :  { %1390 = vmatpush1.bf16.msra.mxu0 %v6797_v14  ;;  %5462 = vmatpush3.bf16.msra.mxu1 %v6809_v6 }
 0x2a4   :  { %1391 = vmatprep.subr.bf16.mxu0 %v6799_v36  ;;  %5463 = vmatprep.subr.bf16.mxu1 %v7819_v32 }
 0x2a5   :  { %1421 = vmatprep.mubr.bf16.mxu0 %v7818_v56  ;;  %5465 = vmatprep.mubr.msk.bf16.mxu1 %vm6210_vm2, %v7819_v32 }
 0x2a7   :  { %1392 = vmatpush1.bf16.msra.mxu0 %v6805_v28  ;;  %5464 = vmatpush3.bf16.msra.mxu1 %v6816_v34 }
 0x2a8   :  { %1497 = vmatprep.subr.bf16.mxu0 %v6766_v53  ;;  %5469 = vmatprep.subr.bf16.mxu1 %v7819_v32 }
 0x2ab   :  { %v5847_v12 = vpop.eup %5846 }
 0x2ac   :  { %v1274_v63 = vmul.f32 %v5847_v12, %v1273_v26 }
 0x2ae   :  { %v6880_v25 = vadd.f32 %v1275_v7, %v1274_v63 }
 0x2b0   :  { %v1385_v31 = vpack.c.bf16 %v6880_v25, %v6880_v25 }
 0x2b2   :  { %5192 = vmatmul.mubr.msk.bf16.vlgmr.msra.gmra.mrb[52].mxu0 %vm1053_vm3, %v1385_v31  ;;  %5466 = vmatmul.mubr.msk.bf16.vlgmr.msra.gmra.mrb[52].mxu1 %vm1053_vm3, %v1385_v31 }
 0x2b3   :  { %1498 = vmatpush1.bf16.msra.mxu0 %v6768_v8  ;;  %5470 = vmatpush3.bf16.msra.mxu1 %v6785_v35 }
 0x2b4   :  { %1499 = vmatprep.subr.bf16.mxu0 %v6770_v29  ;;  %5471 = vmatprep.subr.bf16.mxu1 %v7819_v32 }
 0x2b5   :  { %1529 = vmatprep.mubr.bf16.mxu0 %v7818_v56  ;;  %5473 = vmatprep.mubr.msk.bf16.mxu1 %vm6210_vm2, %v7819_v32 }
 0x2b7   :  { %1500 = vmatpush1.bf16.msra.mxu0 %v6777_v13  ;;  %5472 = vmatpush3.bf16.msra.mxu1 %v6793_v50 }
 0x2b8   :  { %1603 = vmatprep.subr.bf16.mxu0 %v6781_v46  ;;  %5477 = vmatprep.subr.bf16.mxu1 %v7819_v32 }
 0x375   :  { %v1317_v10 = vpop.f32.mrb[48].mxu0  ;;  %v1358_v15 = vpop.f32.mrb[48].mxu1 }
 0x376   :  { %v1318_v52 = vadd.f32 %v1317_v10, %v6831_v58  ;;  %v1319_v51 = vpop.f32.mrb[49].mxu0  ;;  %v5459_v2 = vpop.f32.mrb[49].mxu1 }
 0x377   :  { %v1320_v39 = vadd.f32 %v1319_v51, %v6834_v37  ;;  %v1321_v16 = vpop.f32.mrb[50].mxu0  ;;  %v1361_v1 = vpop.f32.mrb[50].mxu1 }
 0x378   :  { %v1364_v4 = vadd.f32 %v1318_v52, %v6549_v27  ;;  %v1322_v11 = vpop.f32.mrb[51].mxu0  ;;  %v5460_v22 = vpop.f32.mrb[51].mxu1 }
 0x379   :  { %v1371_v0 = vadd.f32 %v1320_v39, %v6555_v30 }
 0x37a   :  { %v5190_v33 = vmul.f32 -1.442695, %v1364_v4 }
 0x37b   :  { %v5191_v41 = vmul.f32 -1.442695, %v1371_v0  ;;  %v1359_v0 = vadd.f32 %v1358_v15, %v6854_v17 }
 0x37c   :  { %5848 = vpow2.f32 %v5190_v33 }
 0x37d   :  { %5850 = vpow2.f32 %v5191_v41 }
 0x385   :  { %v1423_v26 = vpop.f32.mrb[52].mxu0  ;;  %v1464_v12 = vpop.f32.mrb[52].mxu1 }
 0x386   :  { %v5849_v7 = vpop.eup %5848  ;;  %v1424_v63 = vadd.f32 %v1423_v26, %v6844_v62  ;;  %v1425_v31 = vpop.f32.mrb[53].mxu0 }
 0x387   :  { %v5467_v10 = vpop.f32.mrb[53].mxu1  ;;  %v1368_v51 = vadd.f32 1.0, %v5849_v7  ;;  %v1426_v2 = vadd.f32 %v1425_v31, %v6847_v23  ;;  %v1427_v16 = vpop.f32.mrb[54].mxu0 }
 0x388   :  { %v1467_v27 = vpop.f32.mrb[54].mxu1  ;;  %v1470_v52 = vadd.f32 %v1424_v63, %v6633_v18  ;;  %v1428_v1 = vpop.f32.mrb[55].mxu0  ;;  %v1465_v16 = vadd.f32 %v1464_v12, %v6859_v60 }
 0x389   :  { %v5468_v4 = vpop.f32.mrb[55].mxu1  ;;  %5852 = vrcp.f32 %v1368_v51  ;;  %v1477_v39 = vadd.f32 %v1426_v2, %v6715_v43  ;;  %v5851_v11 = vpop.eup %5850 }
 0x38a   :  { %v5194_v30 = vmul.f32 -1.442695, %v1470_v52  ;;  %v1375_v33 = vadd.f32 1.0, %v5851_v11 }
 0x38b   :  { %v5195_v22 = vmul.f32 -1.442695, %v1477_v39 }
 0x38c   :  { %5854 = vpow2.f32 %v5194_v30 }
 0x38d   :  { %5856 = vpow2.f32 %v5195_v22 }
 0x38e   :  { %5858 = vrcp.f32 %v1375_v33 }
 0x393   :  { %v5853_v41 = vpop.eup %5852 }
 0x394   :  { %v1378_v26 = vmul.f32 %v5853_v41, %v1359_v0 }
 0x396   :  { %v5855_v7 = vpop.eup %5854  ;;  %v1379_v31 = vadd.f32 %v1378_v26, %v6569_v40 }
 0x397   :  { %v1474_v18 = vadd.f32 1.0, %v5855_v7  ;;  %v5857_v63 = vpop.eup %5856 }
 0x398   :  { %5860 = vtanh.f32 %v1379_v31  ;;  %v5859_v10 = vpop.eup %5858  ;;  %v1481_v51 = vadd.f32 1.0, %v5857_v63 }
 0x399   :  { %5862 = vrcp.f32 %v1474_v18  ;;  %v1381_v43 = vsub.f32 1.0, %v5859_v10  ;;  %v1383_v15 = vmul.f32 %v5859_v10, %v6862_v44 }
 0x39a   :  { %5864 = vrcp.f32 %v1481_v51 }
 0x3a2   :  { %v5861_v2 = vpop.eup %5860 }
 0x3a3   :  { %v5863_v27 = vpop.eup %5862  ;;  %v1382_v52 = vmul.f32 %v5861_v2, %v1381_v43 }
 0x3a4   :  { %v1484_v1 = vmul.f32 %v5863_v27, %v1465_v16 }
 0x3a5   :  { %v6909_v4 = vadd.f32 %v1383_v15, %v1382_v52 }
 0x3a6   :  { %v1485_v40 = vadd.f32 %v1484_v1, %v6721_v3  ;;  %v5865_v3 = vpop.eup %5864 }
 0x3a7   :  { %v1493_v30 = vpack.c.bf16 %v6909_v4, %v6909_v4  ;;  %v1487_v12 = vsub.f32 1.0, %v5865_v3  ;;  %v1489_v22 = vmul.f32 %v5865_v3, %v6880_v25 }
 0x3a8   :  { %5866 = vtanh.f32 %v1485_v40 }
 0x3a9   :  { %5196 = vmatmul.mubr.msk.bf16.vlgmr.msra.gmra.mrb[56].mxu0 %vm1053_vm3, %v1493_v30  ;;  %5474 = vmatmul.mubr.msk.bf16.vlgmr.msra.gmra.mrb[56].mxu1 %vm1053_vm3, %v1493_v30 }
 0x3aa   :  { %1604 = vmatpush1.bf16.msra.mxu0 %v6797_v14  ;;  %5478 = vmatpush3.bf16.msra.mxu1 %v6809_v6 }
 0x3ab   :  { %1605 = vmatprep.subr.bf16.mxu0 %v6799_v36  ;;  %5479 = vmatprep.subr.bf16.mxu1 %v7819_v32 }
 0x3ac   :  { %1635 = vmatprep.mubr.bf16.mxu0 %v7818_v56  ;;  %5481 = vmatprep.mubr.msk.bf16.mxu1 %vm6210_vm2, %v7819_v32 }
 0x3ae   :  { %1606 = vmatpush1.bf16.msra.mxu0 %v6805_v28  ;;  %5480 = vmatpush3.bf16.msra.mxu1 %v6816_v34 }
 0x3af   :  { %1711 = vmatprep.subr.bf16.mxu0 %v6766_v53  ;;  %5485 = vmatprep.subr.bf16.mxu1 %v7819_v32 }
 0x3b2   :  { %v5867_v39 = vpop.eup %5866 }
 0x3b3   :  { %v1488_v11 = vmul.f32 %v5867_v39, %v1487_v12 }
 0x3b5   :  { %v6928_v33 = vadd.f32 %v1489_v22, %v1488_v11 }
 0x3b7   :  { %v1599_v0 = vpack.c.bf16 %v6928_v33, %v6928_v33 }
 0x3b9   :  { %5200 = vmatmul.mubr.msk.bf16.vlgmr.msra.gmra.mrb[60].mxu0 %vm1053_vm3, %v1599_v0  ;;  %5482 = vmatmul.mubr.msk.bf16.vlgmr.msra.gmra.mrb[60].mxu1 %vm1053_vm3, %v1599_v0 }
 0x3ba   :  { %1712 = vmatpush1.bf16.msra.mxu0 %v6768_v8  ;;  %5486 = vmatpush3.bf16.msra.mxu1 %v6785_v35 }
 0x3bb   :  { %1713 = vmatprep.subr.bf16.mxu0 %v6770_v29  ;;  %5487 = vmatprep.subr.bf16.mxu1 %v7819_v32 }
 0x3bc   :  { %1743 = vmatprep.mubr.bf16.mxu0 %v7818_v56  ;;  %5489 = vmatprep.mubr.msk.bf16.mxu1 %vm6210_vm2, %v7819_v32 }
 0x3be   :  { %1714 = vmatpush1.bf16.msra.mxu0 %v6777_v13  ;;  %5488 = vmatpush3.bf16.msra.mxu1 %v6793_v50 }
 0x3bf   :  { %1817 = vmatprep.subr.bf16.mxu0 %v6781_v46  ;;  %5493 = vmatprep.subr.bf16.mxu1 %v7819_v32 }
 0x47c   :  { %v1531_v41 = vpop.f32.mrb[56].mxu0  ;;  %v1572_v26 = vpop.f32.mrb[56].mxu1 }
 0x47d   :  { %v1532_v7 = vadd.f32 %v1531_v41, %v6831_v58  ;;  %v1533_v31 = vpop.f32.mrb[57].mxu0  ;;  %v5475_v18 = vpop.f32.mrb[57].mxu1 }
 0x47e   :  { %v1534_v63 = vadd.f32 %v1533_v31, %v6834_v37  ;;  %v1535_v10 = vpop.f32.mrb[58].mxu0  ;;  %v1575_v51 = vpop.f32.mrb[58].mxu1 }
 0x47f   :  { %v1578_v43 = vadd.f32 %v1532_v7, %v6566_v38  ;;  %v1536_v2 = vpop.f32.mrb[59].mxu0  ;;  %v5476_v16 = vpop.f32.mrb[59].mxu1 }
 0x480   :  { %v1585_v52 = vadd.f32 %v1534_v63, %v6571_v42 }
 0x481   :  { %v5198_v27 = vmul.f32 -1.442695, %v1578_v43  ;;  %v1573_v43 = vadd.f32 %v1572_v26, %v6854_v17 }
 0x482   :  { %v5199_v15 = vmul.f32 -1.442695, %v1585_v52 }
 0x483   :  { %5868 = vpow2.f32 %v5198_v27 }
 0x484   :  { %5870 = vpow2.f32 %v5199_v15 }
 0x48c   :  { %v1637_v1 = vpop.f32.mrb[60].mxu0  ;;  %v1678_v40 = vpop.f32.mrb[60].mxu1 }
 0x48d   :  { %v5869_v30 = vpop.eup %5868  ;;  %v1638_v3 = vadd.f32 %v1637_v1, %v6844_v62  ;;  %v1639_v12 = vpop.f32.mrb[61].mxu0 }
 0x48e   :  { %v5483_v39 = vpop.f32.mrb[61].mxu1  ;;  %v1582_v11 = vadd.f32 1.0, %v5869_v30  ;;  %v1640_v22 = vadd.f32 %v1639_v12, %v6847_v23  ;;  %v1641_v0 = vpop.f32.mrb[62].mxu0  ;;  %v1679_v12 = vadd.f32 %v1678_v40, %v6859_v60 }
 0x48f   :  { %v1681_v38 = vpop.f32.mrb[62].mxu1  ;;  %v1684_v41 = vadd.f32 %v1638_v3, %v6616_v24  ;;  %v1642_v7 = vpop.f32.mrb[63].mxu0 }
 0x490   :  { %v5484_v31 = vpop.f32.mrb[63].mxu1  ;;  %5872 = vrcp.f32 %v1582_v11  ;;  %v1691_v18 = vadd.f32 %v1640_v22, %v6703_v55  ;;  %v5871_v63 = vpop.eup %5870 }
 0x491   :  { %v5202_v42 = vmul.f32 -1.442695, %v1684_v41  ;;  %v1589_v51 = vadd.f32 1.0, %v5871_v63 }
 0x492   :  { %v5203_v10 = vmul.f32 -1.442695, %v1691_v18 }
 0x493   :  { %5874 = vpow2.f32 %v5202_v42 }
 0x494   :  { %5876 = vpow2.f32 %v5203_v10 }
 0x495   :  { %5878 = vrcp.f32 %v1589_v51 }
 0x49a   :  { %v5873_v2 = vpop.eup %5872 }
 0x49b   :  { %v1592_v16 = vmul.f32 %v5873_v2, %v1573_v43 }
 0x49d   :  { %v5875_v27 = vpop.eup %5874  ;;  %v1593_v52 = vadd.f32 %v1592_v16, %v6581_v49 }
 0x49e   :  { %v1688_v24 = vadd.f32 1.0, %v5875_v27  ;;  %v5877_v15 = vpop.eup %5876 }
 0x49f   :  { %5880 = vtanh.f32 %v1593_v52  ;;  %v5879_v1 = vpop.eup %5878  ;;  %v1695_v30 = vadd.f32 1.0, %v5877_v15 }
 0x4a0   :  { %5882 = vrcp.f32 %v1688_v24  ;;  %v1595_v55 = vsub.f32 1.0, %v5879_v1  ;;  %v1597_v26 = vmul.f32 %v5879_v1, %v6909_v4 }
 0x4a1   :  { %5884 = vrcp.f32 %v1695_v30 }
 0x4a9   :  { %v5881_v3 = vpop.eup %5880 }
 0x4aa   :  { %v5883_v39 = vpop.eup %5882  ;;  %v1596_v11 = vmul.f32 %v5881_v3, %v1595_v55 }
 0x4ab   :  { %v1698_v22 = vmul.f32 %v5883_v39, %v1679_v12 }
 0x4ac   :  { %v6957_v0 = vadd.f32 %v1597_v26, %v1596_v11 }
 0x4ad   :  { %v1699_v49 = vadd.f32 %v1698_v22, %v6706_v9  ;;  %v5885_v9 = vpop.eup %5884 }
 0x4ae   :  { %v1707_v38 = vpack.c.bf16 %v6957_v0, %v6957_v0  ;;  %v1701_v40 = vsub.f32 1.0, %v5885_v9  ;;  %v1703_v31 = vmul.f32 %v5885_v9, %v6928_v33 }
 0x4af   :  { %5886 = vtanh.f32 %v1699_v49 }
 0x4b0   :  { %5204 = vmatmul.mubr.msk.bf16.vlgmr.msra.gmra.mrb[64].mxu0 %vm1053_vm3, %v1707_v38  ;;  %5490 = vmatmul.mubr.msk.bf16.vlgmr.msra.gmra.mrb[64].mxu1 %vm1053_vm3, %v1707_v38 }
 0x4b1   :  { %1818 = vmatpush1.bf16.msra.mxu0 %v6797_v14  ;;  %5494 = vmatpush3.bf16.msra.mxu1 %v6809_v6 }
 0x4b2   :  { %1819 = vmatprep.subr.bf16.mxu0 %v6799_v36  ;;  %5495 = vmatprep.subr.bf16.mxu1 %v7819_v32 }
 0x4b3   :  { %1849 = vmatprep.mubr.bf16.mxu0 %v7818_v56  ;;  %5497 = vmatprep.mubr.msk.bf16.mxu1 %vm6210_vm2, %v7819_v32 }
 0x4b5   :  { %1820 = vmatpush1.bf16.msra.mxu0 %v6805_v28  ;;  %5496 = vmatpush3.bf16.msra.mxu1 %v6816_v34 }
 0x4b6   :  { %1925 = vmatprep.subr.bf16.mxu0 %v6766_v53  ;;  %5501 = vmatprep.subr.bf16.mxu1 %v7819_v32 }
 0x4b9   :  { %v5887_v41 = vpop.eup %5886 }
 0x4ba   :  { %v1702_v7 = vmul.f32 %v5887_v41, %v1701_v40 }
 0x4bc   :  { %v6976_v42 = vadd.f32 %v1703_v31, %v1702_v7 }
 0x4be   :  { %v1813_v18 = vpack.c.bf16 %v6976_v42, %v6976_v42 }
 0x4c0   :  { %5208 = vmatmul.mubr.msk.bf16.vlgmr.msra.gmra.mrb[68].mxu0 %vm1053_vm3, %v1813_v18  ;;  %5498 = vmatmul.mubr.msk.bf16.vlgmr.msra.gmra.mrb[68].mxu1 %vm1053_vm3, %v1813_v18 }
 0x4c1   :  { %1926 = vmatpush1.bf16.msra.mxu0 %v6768_v8  ;;  %5502 = vmatpush3.bf16.msra.mxu1 %v6785_v35 }
 0x4c2   :  { %1927 = vmatprep.subr.bf16.mxu0 %v6770_v29  ;;  %5503 = vmatprep.subr.bf16.mxu1 %v7819_v32 }
 0x4c3   :  { %1957 = vmatprep.mubr.bf16.mxu0 %v7818_v56  ;;  %5505 = vmatprep.mubr.msk.bf16.mxu1 %vm6210_vm2, %v7819_v32 }
 0x4c5   :  { %1928 = vmatpush1.bf16.msra.mxu0 %v6777_v13  ;;  %5504 = vmatpush3.bf16.msra.mxu1 %v6793_v50 }
 0x4c6   :  { %2031 = vmatprep.subr.bf16.mxu0 %v6781_v46  ;;  %5509 = vmatprep.subr.bf16.mxu1 %v7819_v32 }
 0x583   :  { %v1745_v63 = vpop.f32.mrb[64].mxu0  ;;  %v1786_v10 = vpop.f32.mrb[64].mxu1 }
 0x584   :  { %v1746_v51 = vadd.f32 %v1745_v63, %v6831_v58  ;;  %v1747_v43 = vpop.f32.mrb[65].mxu0  ;;  %v5491_v2 = vpop.f32.mrb[65].mxu1 }
 0x585   :  { %v1748_v16 = vadd.f32 %v1747_v43, %v6834_v37  ;;  %v1749_v27 = vpop.f32.mrb[66].mxu0  ;;  %v1789_v52 = vpop.f32.mrb[66].mxu1  ;;  %v1787_v2 = vadd.f32 %v1786_v10, %v6854_v17 }
 0x586   :  { %v1792_v24 = vadd.f32 %v1746_v51, %v6576_v45  ;;  %v1750_v15 = vpop.f32.mrb[67].mxu0  ;;  %v5492_v1 = vpop.f32.mrb[67].mxu1 }
 0x587   :  { %v1799_v55 = vadd.f32 %v1748_v16, %v6578_v47 }
 0x588   :  { %v5206_v30 = vmul.f32 -1.442695, %v1792_v24 }
 0x589   :  { %v5207_v3 = vmul.f32 -1.442695, %v1799_v55 }
 0x58a   :  { %5888 = vpow2.f32 %v5206_v30 }
 0x58b   :  { %5890 = vpow2.f32 %v5207_v3 }
 0x593   :  { %v1851_v12 = vpop.f32.mrb[68].mxu0  ;;  %v1892_v39 = vpop.f32.mrb[68].mxu1 }
 0x594   :  { %v5889_v11 = vpop.eup %5888  ;;  %v1852_v26 = vadd.f32 %v1851_v12, %v6844_v62  ;;  %v1853_v22 = vpop.f32.mrb[69].mxu0  ;;  %v1893_v3 = vadd.f32 %v1892_v39, %v6859_v60 }
 0x595   :  { %v5499_v49 = vpop.f32.mrb[69].mxu1  ;;  %v1796_v38 = vadd.f32 1.0, %v5889_v11  ;;  %v1854_v9 = vadd.f32 %v1853_v22, %v6847_v23  ;;  %v1855_v40 = vpop.f32.mrb[70].mxu0 }
 0x596   :  { %v1895_v45 = vpop.f32.mrb[70].mxu1  ;;  %v1898_v41 = vadd.f32 %v1852_v26, %v6604_v5  ;;  %v1856_v7 = vpop.f32.mrb[71].mxu0 }
 0x597   :  { %v5500_v31 = vpop.f32.mrb[71].mxu1  ;;  %5892 = vrcp.f32 %v1796_v38  ;;  %v1905_v18 = vadd.f32 %v1854_v9, %v6691_v21  ;;  %v5891_v63 = vpop.eup %5890 }
 0x598   :  { %v5210_v47 = vmul.f32 -1.442695, %v1898_v41  ;;  %v1803_v43 = vadd.f32 1.0, %v5891_v63 }
 0x599   :  { %v5211_v51 = vmul.f32 -1.442695, %v1905_v18 }
 0x59a   :  { %5894 = vpow2.f32 %v5210_v47 }
 0x59b   :  { %5896 = vpow2.f32 %v5211_v51 }
 0x59c   :  { %5898 = vrcp.f32 %v1803_v43 }
 0x5a1   :  { %v5893_v16 = vpop.eup %5892 }
 0x5a2   :  { %v1806_v27 = vmul.f32 %v5893_v16, %v1787_v2 }
 0x5a4   :  { %v5895_v52 = vpop.eup %5894  ;;  %v1807_v24 = vadd.f32 %v1806_v27, %v6589_v57 }
 0x5a5   :  { %v1902_v5 = vadd.f32 1.0, %v5895_v52  ;;  %v5897_v15 = vpop.eup %5896 }
 0x5a6   :  { %5900 = vtanh.f32 %v1807_v24  ;;  %v5899_v1 = vpop.eup %5898  ;;  %v1909_v30 = vadd.f32 1.0, %v5897_v15 }
 0x5a7   :  { %5902 = vrcp.f32 %v1902_v5  ;;  %v1809_v21 = vsub.f32 1.0, %v5899_v1  ;;  %v1811_v10 = vmul.f32 %v5899_v1, %v6957_v0 }
 0x5a8   :  { %5904 = vrcp.f32 %v1909_v30 }
 0x5b0   :  { %v5901_v55 = vpop.eup %5900 }
 0x5b1   :  { %v5903_v12 = vpop.eup %5902  ;;  %v1810_v11 = vmul.f32 %v5901_v55, %v1809_v21 }
 0x5b2   :  { %v1912_v26 = vmul.f32 %v5903_v12, %v1893_v3 }
 0x5b3   :  { %v7005_v22 = vadd.f32 %v1811_v10, %v1810_v11 }
 0x5b4   :  { %v1913_v57 = vadd.f32 %v1912_v26, %v6697_v19  ;;  %v5905_v19 = vpop.eup %5904 }
 0x5b5   :  { %v1921_v49 = vpack.c.bf16 %v7005_v22, %v7005_v22  ;;  %v1915_v39 = vsub.f32 1.0, %v5905_v19  ;;  %v1917_v40 = vmul.f32 %v5905_v19, %v6976_v42 }
 0x5b6   :  { %5906 = vtanh.f32 %v1913_v57 }
 0x5b7   :  { %5212 = vmatmul.mubr.msk.bf16.vlgmr.msra.gmra.mrb[72].mxu0 %vm1053_vm3, %v1921_v49  ;;  %5506 = vmatmul.mubr.msk.bf16.vlgmr.msra.gmra.mrb[72].mxu1 %vm1053_vm3, %v1921_v49 }
 0x5b8   :  { %2032 = vmatpush1.bf16.msra.mxu0 %v6797_v14  ;;  %5510 = vmatpush3.bf16.msra.mxu1 %v6809_v6 }
 0x5b9   :  { %2033 = vmatprep.subr.bf16.mxu0 %v6799_v36  ;;  %5511 = vmatprep.subr.bf16.mxu1 %v7819_v32 }
 0x5ba   :  { %2063 = vmatprep.mubr.bf16.mxu0 %v7818_v56  ;;  %5513 = vmatprep.mubr.msk.bf16.mxu1 %vm6210_vm2, %v7819_v32 }
 0x5bc   :  { %2034 = vmatpush1.bf16.msra.mxu0 %v6805_v28  ;;  %5512 = vmatpush3.bf16.msra.mxu1 %v6816_v34 }
 0x5bd   :  { %2139 = vmatprep.subr.bf16.mxu0 %v6766_v53  ;;  %5517 = vmatprep.subr.bf16.mxu1 %v7819_v32 }
 0x5c0   :  { %v5907_v38 = vpop.eup %5906 }
 0x5c1   :  { %v1916_v9 = vmul.f32 %v5907_v38, %v1915_v39 }
 0x5c3   :  { %v7024_v45 = vadd.f32 %v1917_v40, %v1916_v9 }
 0x5c5   :  { %v2027_v41 = vpack.c.bf16 %v7024_v45, %v7024_v45 }
 0x5c7   :  { %5216 = vmatmul.mubr.msk.bf16.vlgmr.msra.gmra.mrb[76].mxu0 %vm1053_vm3, %v2027_v41  ;;  %5514 = vmatmul.mubr.msk.bf16.vlgmr.msra.gmra.mrb[76].mxu1 %vm1053_vm3, %v2027_v41 }
 0x5c8   :  { %2140 = vmatpush1.bf16.msra.mxu0 %v6768_v8  ;;  %5518 = vmatpush3.bf16.msra.mxu1 %v6785_v35 }
 0x5c9   :  { %2141 = vmatprep.subr.bf16.mxu0 %v6770_v29  ;;  %5519 = vmatprep.subr.bf16.mxu1 %v7819_v32 }
 0x5ca   :  { %2171 = vmatprep.mubr.bf16.mxu0 %v7818_v56  ;;  %5521 = vmatprep.mubr.msk.bf16.mxu1 %vm6210_vm2, %v7819_v32 }
 0x5cc   :  { %2142 = vmatpush1.bf16.msra.mxu0 %v6777_v13  ;;  %5520 = vmatpush3.bf16.msra.mxu1 %v6793_v50 }
 0x5cd   :  { %2245 = vmatprep.subr.bf16.mxu0 %v6781_v46  ;;  %5525 = vmatprep.subr.bf16.mxu1 %v7819_v32 }
 0x68a   :  { %v1959_v7 = vpop.f32.mrb[72].mxu0  ;;  %v2000_v31 = vpop.f32.mrb[72].mxu1 }
 0x68b   :  { %v1960_v47 = vadd.f32 %v1959_v7, %v6831_v58  ;;  %v1961_v18 = vpop.f32.mrb[73].mxu0  ;;  %v5507_v63 = vpop.f32.mrb[73].mxu1  ;;  %v2001_v41 = vadd.f32 %v2000_v31, %v6854_v17 }
 0x68c   :  { %v1962_v51 = vadd.f32 %v1961_v18, %v6834_v37  ;;  %v1963_v43 = vpop.f32.mrb[74].mxu0  ;;  %v2003_v2 = vpop.f32.mrb[74].mxu1  ;;  %v7820_v63 = vld [vmem:[#allocation31_spill] sm:$0xff] }
 0x68d   :  { %v2006_v16 = vadd.f32 %v1960_v47, %v6586_v54  ;;  %v1964_v27 = vpop.f32.mrb[75].mxu0  ;;  %v5508_v52 = vpop.f32.mrb[75].mxu1 }
 0x68e   :  { %v2013_v5 = vadd.f32 %v1962_v51, %v6591_v59 }
 0x68f   :  { %v5214_v24 = vmul.f32 -1.442695, %v2006_v16 }
 0x690   :  { %v5215_v15 = vmul.f32 -1.442695, %v2013_v5 }
 0x691   :  { %5908 = vpow2.f32 %v5214_v24 }
 0x692   :  { %5910 = vpow2.f32 %v5215_v15 }
 0x69a   :  { %v2065_v1 = vpop.f32.mrb[76].mxu0  ;;  %v2106_v30 = vpop.f32.mrb[76].mxu1 }
 0x69b   :  { %v5909_v21 = vpop.eup %5908  ;;  %v2066_v55 = vadd.f32 %v2065_v1, %v6844_v62  ;;  %v2067_v3 = vpop.f32.mrb[77].mxu0  ;;  %v2107_v52 = vadd.f32 %v2106_v30, %v6859_v60 }
 0x69c   :  { %v5515_v12 = vpop.f32.mrb[77].mxu1  ;;  %v2010_v11 = vadd.f32 1.0, %v5909_v21  ;;  %v2068_v10 = vadd.f32 %v2067_v3, %v6847_v23  ;;  %v2069_v26 = vpop.f32.mrb[78].mxu0  ;;  %v7821_v21 = vld [vmem:[#allocation51_spill] sm:$0xff] }
 0x69d   :  { %v2109_v54 = vpop.f32.mrb[78].mxu1  ;;  %v2112_v57 = vadd.f32 %v2066_v55, %v6594_v61  ;;  %v2070_v49 = vpop.f32.mrb[79].mxu0 }
 0x69e   :  { %v5516_v19 = vpop.f32.mrb[79].mxu1  ;;  %5912 = vrcp.f32 %v2010_v11  ;;  %v2119_v39 = vadd.f32 %v2068_v10, %v6679_v48  ;;  %v5911_v38 = vpop.eup %5910 }
 0x69f   :  { %v5218_v59 = vmul.f32 -1.442695, %v2112_v57  ;;  %v2017_v40 = vadd.f32 1.0, %v5911_v38  ;;  %v7822_v57 = vld [vmem:[#allocation29_spill] sm:$0xff] }
 0x6a0   :  { %v5219_v9 = vmul.f32 -1.442695, %v2119_v39 }
 0x6a1   :  { %5914 = vpow2.f32 %v5218_v59 }
 0x6a2   :  { %5916 = vpow2.f32 %v5219_v9 }
 0x6a3   :  { %5918 = vrcp.f32 %v2017_v40 }
 0x6a8   :  { %v5913_v7 = vpop.eup %5912 }
 0x6a9   :  { %v2020_v47 = vmul.f32 %v5913_v7, %v2001_v41 }
 0x6ab   :  { %v5915_v18 = vpop.eup %5914  ;;  %v2021_v51 = vadd.f32 %v2020_v47, %v7820_v63 }
 0x6ac   :  { %v2116_v61 = vadd.f32 1.0, %v5915_v18  ;;  %v5917_v43 = vpop.eup %5916 }
 0x6ad   :  { %5920 = vtanh.f32 %v2021_v51  ;;  %v5919_v2 = vpop.eup %5918  ;;  %v2123_v16 = vadd.f32 1.0, %v5917_v43  ;;  %v7824_v43 = vld [vmem:[#allocation28_spill] sm:$0xff] }
 0x6ae   :  { %5922 = vrcp.f32 %v2116_v61  ;;  %v2023_v48 = vsub.f32 1.0, %v5919_v2  ;;  %v2025_v31 = vmul.f32 %v5919_v2, %v7005_v22 }
 0x6af   :  { %5924 = vrcp.f32 %v2123_v16 }
 0x6b7   :  { %v5921_v27 = vpop.eup %5920 }
 0x6b8   :  { %v5923_v24 = vpop.eup %5922  ;;  %v2024_v5 = vmul.f32 %v5921_v27, %v2023_v48 }
 0x6b9   :  { %v2126_v15 = vmul.f32 %v5923_v24, %v2107_v52  ;;  %v5925_v30 = vpop.eup %5924  ;;  %v7825_v52 = vld [vmem:[#allocation47_spill] sm:$0xff] }
 0x6ba   :  { %v7053_v1 = vadd.f32 %v2025_v31, %v2024_v5 }
 0x6bb   :  { %v2127_v55 = vadd.f32 %v2126_v15, %v7821_v21 }
 0x6bc   :  { %v2135_v3 = vpack.c.bf16 %v7053_v1, %v7053_v1 }
 0x6bd   :  { %5926 = vtanh.f32 %v2127_v55 }
 0x6be   :  { %5220 = vmatmul.mubr.msk.bf16.vlgmr.msra.gmra.mrb[80].mxu0 %vm1053_vm3, %v2135_v3  ;;  %5522 = vmatmul.mubr.msk.bf16.vlgmr.msra.gmra.mrb[80].mxu1 %vm1053_vm3, %v2135_v3 }
 0x6bf   :  { %2246 = vmatpush1.bf16.msra.mxu0 %v6797_v14  ;;  %5526 = vmatpush3.bf16.msra.mxu1 %v6809_v6  ;;  %v2129_v14 = vsub.f32 1.0, %v5925_v30 }
 0x6c0   :  { %2247 = vmatprep.subr.bf16.mxu0 %v6799_v36  ;;  %5527 = vmatprep.subr.bf16.mxu1 %v7819_v32  ;;  %v2131_v36 = vmul.f32 %v5925_v30, %v7024_v45 }
 0x6c1   :  { %2277 = vmatprep.mubr.bf16.mxu0 %v7818_v56  ;;  %5529 = vmatprep.mubr.msk.bf16.mxu1 %vm6210_vm2, %v7819_v32 }
 0x6c3   :  { %2248 = vmatpush1.bf16.msra.mxu0 %v6805_v28  ;;  %5528 = vmatpush3.bf16.msra.mxu1 %v6816_v34 }
 0x6c4   :  { %2353 = vmatprep.subr.bf16.mxu0 %v6766_v53  ;;  %5533 = vmatprep.subr.bf16.mxu1 %v7819_v32 }
 0x6c7   :  { %v5927_v6 = vpop.eup %5926 }
 0x6c8   :  { %v2130_v12 = vmul.f32 %v5927_v6, %v2129_v14  ;;  %v7826_v14 = vld [vmem:[#allocation33_spill] sm:$0xff] }
 0x6ca   :  { %v7072_v11 = vadd.f32 %v2131_v36, %v2130_v12 }
 0x6cc   :  { %v2241_v10 = vpack.c.bf16 %v7072_v11, %v7072_v11 }
 0x6ce   :  { %5224 = vmatmul.mubr.msk.bf16.vlgmr.msra.gmra.mrb[84].mxu0 %vm1053_vm3, %v2241_v10  ;;  %5530 = vmatmul.mubr.msk.bf16.vlgmr.msra.gmra.mrb[84].mxu1 %vm1053_vm3, %v2241_v10 }
 0x6cf   :  { %2354 = vmatpush1.bf16.msra.mxu0 %v6768_v8  ;;  %5534 = vmatpush3.bf16.msra.mxu1 %v6785_v35 }
 0x6d0   :  { %2355 = vmatprep.subr.bf16.mxu0 %v6770_v29  ;;  %5535 = vmatprep.subr.bf16.mxu1 %v7819_v32 }
 0x6d1   :  { %2385 = vmatprep.mubr.bf16.mxu0 %v7818_v56  ;;  %5537 = vmatprep.mubr.msk.bf16.mxu1 %vm6210_vm2, %v7819_v32 }
 0x6d3   :  { %2356 = vmatpush1.bf16.msra.mxu0 %v6777_v13  ;;  %5536 = vmatpush3.bf16.msra.mxu1 %v6793_v50  ;;  %v7823_v50 = vld [vmem:[#allocation30_spill] sm:$0xff] }
 0x6d4   :  { %2459 = vmatprep.subr.bf16.mxu0 %v6781_v46  ;;  %5541 = vmatprep.subr.bf16.mxu1 %v7819_v32 }
 0x791   :  { %v2173_v34 = vpop.f32.mrb[80].mxu0  ;;  %v2214_v28 = vpop.f32.mrb[80].mxu1 }
 0x792   :  { %v2174_v53 = vadd.f32 %v2173_v34, %v6831_v58  ;;  %v2175_v8 = vpop.f32.mrb[81].mxu0  ;;  %v5523_v29 = vpop.f32.mrb[81].mxu1  ;;  %v2215_v21 = vadd.f32 %v2214_v28, %v6854_v17 }
 0x793   :  { %v2176_v35 = vadd.f32 %v2175_v8, %v6834_v37  ;;  %v2177_v26 = vpop.f32.mrb[82].mxu0  ;;  %v2217_v54 = vpop.f32.mrb[82].mxu1 }
 0x794   :  { %v2220_v49 = vadd.f32 %v2174_v53, %v7822_v57  ;;  %v2178_v19 = vpop.f32.mrb[83].mxu0  ;;  %v5524_v13 = vpop.f32.mrb[83].mxu1 }
 0x795   :  { %v2227_v39 = vadd.f32 %v2176_v35, %v7823_v50  ;;  %v7111_v50 = vld [vmem:[#allocation2 + $0x40] sm:$0xff] }
 0x796   :  { %v5222_v59 = vmul.f32 -1.442695, %v2220_v49  ;;  %v7827_v49 = vld [vmem:[#allocation49_spill] sm:$0xff] }
 0x797   :  { %v5223_v46 = vmul.f32 -1.442695, %v2227_v39  ;;  %v7114_v39 = vld [vmem:[#allocation2 + $0x50] sm:$0xff] }
 0x798   :  { %5928 = vpow2.f32 %v5222_v59  ;;  %v7108_v59 = vld [vmem:[#allocation2 + $0x30] sm:$0xff] }
 0x799   :  { %5930 = vpow2.f32 %v5223_v46 }
 0x7a1   :  { %v2279_v38 = vpop.f32.mrb[84].mxu0  ;;  %v2320_v9 = vpop.f32.mrb[84].mxu1 }
 0x7a2   :  { %v5929_v40 = vpop.eup %5928  ;;  %v2280_v41 = vadd.f32 %v2279_v38, %v6844_v62  ;;  %v2281_v7 = vpop.f32.mrb[85].mxu0  ;;  %v2321_v29 = vadd.f32 %v2320_v9, %v6859_v60  ;;  %v7121_v38 = vld [vmem:[#allocation2 + $0x48] sm:$0xff]  ;;  %v7124_v9 = vld [vmem:[#allocation2 + $0x58] sm:$0xff] }
 0x7a3   :  { %v5531_v47 = vpop.f32.mrb[85].mxu1  ;;  %v2224_v18 = vadd.f32 1.0, %v5929_v40  ;;  %v2282_v63 = vadd.f32 %v2281_v7, %v6847_v23  ;;  %v2283_v51 = vpop.f32.mrb[86].mxu0  ;;  %v6083_v40 = vld [vmem:[#allocation2 + $0x8] sm:$0xff] }
 0x7a4   :  { %v2323_v61 = vpop.f32.mrb[86].mxu1  ;;  %v2326_v2 = vadd.f32 %v2280_v41, %v7824_v43  ;;  %v2284_v16 = vpop.f32.mrb[87].mxu0  ;;  %v6085_v43 = vld [vmem:[#allocation2 + $0x10] sm:$0xff] }
 0x7a5   :  { %v5532_v48 = vpop.f32.mrb[87].mxu1  ;;  %5932 = vrcp.f32 %v2224_v18  ;;  %v2333_v24 = vadd.f32 %v2282_v63, %v7825_v52  ;;  %v5931_v5 = vpop.eup %5930  ;;  %v6084_v61 = vld [vmem:[#allocation2] sm:$0xff]  ;;  %v6087_v16 = vld [vmem:[#allocation2 + $0x18] sm:$0xff] }
 0x7a6   :  { %v5226_v27 = vmul.f32 -1.442695, %v2326_v2  ;;  %v2231_v15 = vadd.f32 1.0, %v5931_v5  ;;  %v6086_v2 = vld [vmem:[#allocation2 + $0x20] sm:$0xff]  ;;  %v6088_v48 = vld [vmem:[#allocation2 + $0x28] sm:$0xff] }
 0x7a7   :  { %v5227_v31 = vmul.f32 -1.442695, %v2333_v24 }
 0x7a8   :  { %5934 = vpow2.f32 %v5226_v27  ;;  %v6089_v27 = vld [vmem:[#allocation2 + $0x38] sm:$0xff] }
 0x7a9   :  { %5936 = vpow2.f32 %v5227_v31 }
 0x7aa   :  { %5938 = vrcp.f32 %v2231_v15 }
 0x7af   :  { %v5933_v55 = vpop.eup %5932 }
 0x7b0   :  { %v2234_v3 = vmul.f32 %v5933_v55, %v2215_v21 }
 0x7b2   :  { %v5935_v30 = vpop.eup %5934  ;;  %v2235_v6 = vadd.f32 %v2234_v3, %v7826_v14 }
 0x7b3   :  { %v2330_v12 = vadd.f32 1.0, %v5935_v30  ;;  %v5937_v36 = vpop.eup %5936  ;;  %v7828_v30 = vld [vmem:[#allocation32_spill] sm:$0xff] }
 0x7b4   :  { %5940 = vtanh.f32 %v2235_v6  ;;  %v5939_v10 = vpop.eup %5938  ;;  %v2337_v34 = vadd.f32 1.0, %v5937_v36 }
 0x7b5   :  { %5942 = vrcp.f32 %v2330_v12  ;;  %v2237_v53 = vsub.f32 1.0, %v5939_v10  ;;  %v2239_v28 = vmul.f32 %v5939_v10, %v7053_v1  ;;  %v7829_v10 = vld [vmem:[#allocation34_spill] sm:$0xff] }
 0x7b6   :  { %5944 = vrcp.f32 %v2337_v34 }
 0x7be   :  { %v5941_v8 = vpop.eup %5940 }
 0x7bf   :  { %v5943_v35 = vpop.eup %5942  ;;  %v2238_v26 = vmul.f32 %v5941_v8, %v2237_v53 }
 0x7c0   :  { %v2340_v54 = vmul.f32 %v5943_v35, %v2321_v29  ;;  %v5945_v46 = vpop.eup %5944 }
 0x7c1   :  { %v7101_v57 = vadd.f32 %v2239_v28, %v2238_v26  ;;  %v2343_v41 = vsub.f32 1.0, %v5945_v46  ;;  %v2345_v18 = vmul.f32 %v5945_v46, %v7072_v11 }
 0x7c2   :  { %v2341_v19 = vadd.f32 %v2340_v54, %v7827_v49 }
 0x7c3   :  { %v2349_v13 = vpack.c.bf16 %v7101_v57, %v7101_v57 }
 0x7c4   :  { %5946 = vtanh.f32 %v2341_v19 }
 0x7c5   :  { %5228 = vmatmul.mubr.msk.bf16.vlgmr.msra.gmra.mrb[88].mxu0 %vm1053_vm3, %v2349_v13  ;;  %5538 = vmatmul.mubr.msk.bf16.vlgmr.msra.gmra.mrb[88].mxu1 %vm1053_vm3, %v2349_v13 }
 0x7c6   :  { %2460 = vmatpush1.bf16.msra.mxu0 %v7108_v59  ;;  %5542 = vmatpush3.bf16.msra.mxu1 %v7111_v50 }
 0x7c7   :  { %2461 = vmatprep.subr.bf16.mxu0 %v7114_v39  ;;  %5543 = vmatprep.subr.bf16.mxu1 %v7819_v32 }
 0x7c8   :  { %2491 = vmatprep.mubr.bf16.mxu0 %v7818_v56  ;;  %5545 = vmatprep.mubr.msk.bf16.mxu1 %vm6210_vm2, %v7819_v32 }
 0x7ca   :  { %2462 = vmatpush1.bf16.msra.mxu0 %v7121_v38  ;;  %5544 = vmatpush3.bf16.msra.mxu1 %v7124_v9 }
 0x7cb   :  { %2567 = vmatprep.subr.bf16.mxu0 %v6083_v40  ;;  %5549 = vmatprep.subr.bf16.mxu1 %v7819_v32  ;;  %v7830_v40 = vld [vmem:[#allocation27_spill] sm:$0xff] }
 0x7ce   :  { %v5947_v7 = vpop.eup %5946 }
 0x7cf   :  { %v2344_v47 = vmul.f32 %v5947_v7, %v2343_v41 }
 0x7d1   :  { %v7129_v63 = vadd.f32 %v2345_v18, %v2344_v47 }
 0x7d3   :  { %v2455_v51 = vpack.c.bf16 %v7129_v63, %v7129_v63 }
 0x7d5   :  { %5232 = vmatmul.mubr.msk.bf16.vlgmr.msra.gmra.mrb[92].mxu0 %vm1053_vm3, %v2455_v51  ;;  %5546 = vmatmul.mubr.msk.bf16.vlgmr.msra.gmra.mrb[92].mxu1 %vm1053_vm3, %v2455_v51  ;;  %v7831_v51 = vld [vmem:[#allocation41_spill] sm:$0xff] }
 0x7d6   :  { %2568 = vmatpush1.bf16.msra.mxu0 %v6084_v61  ;;  %5550 = vmatpush3.bf16.msra.mxu1 %v6085_v43 }
 0x7d7   :  { %2569 = vmatprep.subr.bf16.mxu0 %v6086_v2  ;;  %5551 = vmatprep.subr.bf16.mxu1 %v7819_v32 }
 0x7d8   :  { %2599 = vmatprep.mubr.bf16.mxu0 %v7818_v56  ;;  %5553 = vmatprep.mubr.msk.bf16.mxu1 %vm6210_vm2, %v7819_v32 }
 0x7da   :  { %2570 = vmatpush1.bf16.msra.mxu0 %v6087_v16  ;;  %5552 = vmatpush3.bf16.msra.mxu1 %v6088_v48 }
 0x7db   :  { %2673 = vmatprep.subr.bf16.mxu0 %v6089_v27  ;;  %5557 = vmatprep.subr.bf16.mxu1 %v7819_v32 }
 0x898   :  { %v2387_v52 = vpop.f32.mrb[88].mxu0  ;;  %v2428_v24 = vpop.f32.mrb[88].mxu1 }
 0x899   :  { %v2388_v5 = vadd.f32 %v2387_v52, %v6831_v58  ;;  %v2389_v31 = vpop.f32.mrb[89].mxu0  ;;  %v5539_v15 = vpop.f32.mrb[89].mxu1  ;;  %v2429_v48 = vadd.f32 %v2428_v24, %v6854_v17 }
 0x89a   :  { %v2390_v21 = vadd.f32 %v2389_v31, %v6834_v37  ;;  %v2391_v55 = vpop.f32.mrb[90].mxu0  ;;  %v2431_v3 = vpop.f32.mrb[90].mxu1  ;;  %v7832_v31 = vld [vmem:[#allocation37_spill] sm:$0xff] }
 0x89b   :  { %v2434_v14 = vadd.f32 %v2388_v5, %v7828_v30  ;;  %v2392_v6 = vpop.f32.mrb[91].mxu0  ;;  %v5540_v12 = vpop.f32.mrb[91].mxu1 }
 0x89c   :  { %v2441_v34 = vadd.f32 %v2390_v21, %v7829_v10 }
 0x89d   :  { %v5230_v36 = vmul.f32 -1.442695, %v2434_v14 }
 0x89e   :  { %v5231_v53 = vmul.f32 -1.442695, %v2441_v34 }
 0x89f   :  { %5948 = vpow2.f32 %v5230_v36 }
 0x8a0   :  { %5950 = vpow2.f32 %v5231_v53 }
 0x8a8   :  { %v2493_v8 = vpop.f32.mrb[92].mxu0  ;;  %v2534_v29 = vpop.f32.mrb[92].mxu1 }
 0x8a9   :  { %v5949_v35 = vpop.eup %5948  ;;  %v2494_v26 = vadd.f32 %v2493_v8, %v6844_v62  ;;  %v2495_v28 = vpop.f32.mrb[93].mxu0  ;;  %v2535_v12 = vadd.f32 %v2534_v29, %v6859_v60  ;;  %v7833_v8 = vld [vmem:[#allocation43_spill] sm:$0xff] }
 0x8aa   :  { %v5547_v54 = vpop.f32.mrb[93].mxu1  ;;  %v2438_v49 = vadd.f32 1.0, %v5949_v35  ;;  %v2496_v19 = vadd.f32 %v2495_v28, %v6847_v23  ;;  %v2497_v13 = vpop.f32.mrb[94].mxu0 }
 0x8ab   :  { %v2537_v46 = vpop.f32.mrb[94].mxu1  ;;  %v2540_v41 = vadd.f32 %v2494_v26, %v7830_v40  ;;  %v2498_v7 = vpop.f32.mrb[95].mxu0  ;;  %v1013_v13 = vld [vmem:[#allocation3 + $0x18] sm:$0xff] }
 0x8ac   :  { %v5548_v47 = vpop.f32.mrb[95].mxu1  ;;  %5952 = vrcp.f32 %v2438_v49  ;;  %v2547_v61 = vadd.f32 %v2496_v19, %v7831_v51  ;;  %v5951_v43 = vpop.eup %5950  ;;  %v1012_v19 = vld [vmem:[#allocation3 + $0x10] sm:$0xff] }
 0x8ad   :  { %v5234_v18 = vmul.f32 -1.442695, %v2540_v41  ;;  %v2445_v16 = vadd.f32 1.0, %v5951_v43  ;;  %v7834_v43 = vld [vmem:[#allocation35_spill] sm:$0xff] }
 0x8ae   :  { %v5235_v2 = vmul.f32 -1.442695, %v2547_v61 }
 0x8af   :  { %5954 = vpow2.f32 %v5234_v18 }
 0x8b0   :  { %5956 = vpow2.f32 %v5235_v2 }
 0x8b1   :  { %5958 = vrcp.f32 %v2445_v16 }
 0x8b6   :  { %v5953_v27 = vpop.eup %5952 }
 0x8b7   :  { %v2448_v52 = vmul.f32 %v5953_v27, %v2429_v48 }
 0x8b9   :  { %v5955_v5 = vpop.eup %5954  ;;  %v2449_v15 = vadd.f32 %v2448_v52, %v7832_v31  ;;  %v7835_v52 = vld [vmem:[#allocation36_spill] sm:$0xff] }
 0x8ba   :  { %v2544_v21 = vadd.f32 1.0, %v5955_v5  ;;  %v5957_v55 = vpop.eup %5956 }
 0x8bb   :  { %5960 = vtanh.f32 %v2449_v15  ;;  %v5959_v3 = vpop.eup %5958  ;;  %v2551_v30 = vadd.f32 1.0, %v5957_v55 }
 0x8bc   :  { %5962 = vrcp.f32 %v2544_v21  ;;  %v2451_v14 = vsub.f32 1.0, %v5959_v3  ;;  %v2453_v24 = vmul.f32 %v5959_v3, %v7101_v57 }
 0x8bd   :  { %5964 = vrcp.f32 %v2551_v30 }
 0x8c5   :  { %v5961_v6 = vpop.eup %5960 }
 0x8c6   :  { %v5963_v36 = vpop.eup %5962  ;;  %v2452_v10 = vmul.f32 %v5961_v6, %v2451_v14 }
 0x8c7   :  { %v2554_v34 = vmul.f32 %v5963_v36, %v2535_v12  ;;  %v5965_v29 = vpop.eup %5964  ;;  %v7836_v36 = vld [vmem:[#allocation26_spill] sm:$0xff] }
 0x8c8   :  { %v7152_v53 = vadd.f32 %v2453_v24, %v2452_v10 }
 0x8c9   :  { %v2555_v35 = vadd.f32 %v2554_v34, %v7833_v8 }
 0x8ca   :  { %v2563_v26 = vpack.c.bf16 %v7152_v53, %v7152_v53 }
 0x8cb   :  { %5966 = vtanh.f32 %v2555_v35  ;;  %v7837_v35 = vld [vmem:[#allocation38_spill] sm:$0xff] }
 0x8cc   :  { %5236 = vmatmul.mubr.msk.bf16.vlgmr.msra.gmra.mrb[96].mxu0 %vm1053_vm3, %v2563_v26  ;;  %5554 = vmatmul.mubr.msk.bf16.vlgmr.msra.gmra.mrb[96].mxu1 %vm1053_vm3, %v2563_v26 }
 0x8cd   :  { %2674 = vmatpush1.bf16.msra.mxu0 %v7108_v59  ;;  %5558 = vmatpush3.bf16.msra.mxu1 %v7111_v50  ;;  %v2557_v59 = vsub.f32 1.0, %v5965_v29 }
 0x8ce   :  { %2675 = vmatprep.subr.bf16.mxu0 %v7114_v39  ;;  %5559 = vmatprep.subr.bf16.mxu1 %v7819_v32  ;;  %v2559_v39 = vmul.f32 %v5965_v29, %v7129_v63 }
 0x8cf   :  { %2705 = vmatprep.mubr.bf16.mxu0 %v7818_v56  ;;  %5561 = vmatprep.mubr.msk.bf16.mxu1 %vm6210_vm2, %v7819_v32 }
 0x8d1   :  { %2676 = vmatpush1.bf16.msra.mxu0 %v7121_v38  ;;  %5560 = vmatpush3.bf16.msra.mxu1 %v7124_v9  ;;  %v1009_v38 = vld [vmem:[#allocation3] sm:$0xff]  ;;  %v1010_v9 = vld [vmem:[#allocation3 + $0x8] sm:$0xff] }
 0x8d2   :  { %5573 = vmatprep.subr.bf16.mxu1 %v7819_v32  ;;  %5565 = vmatprep.subr.bf16.mxu0 %v7819_v32 }
 0x8d5   :  { %v5967_v50 = vpop.eup %5966 }
 0x8d6   :  { %v2558_v28 = vmul.f32 %v5967_v50, %v2557_v59 }
 0x8d8   :  { %v7171_v54 = vadd.f32 %v2559_v39, %v2558_v28 }
 0x8da   :  { %v2669_v49 = vpack.c.bf16 %v7171_v54, %v7171_v54 }
 0x8dc   :  { %5240 = vmatmul.mubr.msk.bf16.vlgmr.msra.gmra.mrb[100].mxu0 %vm1053_vm3, %v2669_v49  ;;  %5562 = vmatmul.mubr.msk.bf16.vlgmr.msra.gmra.mrb[100].mxu1 %vm1053_vm3, %v2669_v49  ;;  %v7838_v49 = vld [vmem:[#allocation39_spill] sm:$0xff] }
 0x8dd   :  { %5577 = vmatprep.mubr.msk.bf16.mxu1 %vm6210_vm2, %v7819_v32  ;;  %5569 = vmatprep.mubr.msk.bf16.mxu0 %vm6210_vm2, %v7819_v32 }
 0x8de   :  { %5574 = vmatpush3.bf16.msra.mxu1 %v1009_v38  ;;  %5566 = vmatpush3.bf16.msra.mxu0 %v1012_v19  ;;  %v1491_v19 = vadd.f32 %v6909_v4, %v6862_v44 }
 0x8df   :  { %5575 = vmatprep.subr.bf16.mxu1 %v7819_v32  ;;  %5567 = vmatprep.subr.bf16.mxu0 %v7819_v32 }
 0x8e2   :  { %5576 = vmatpush3.bf16.msra.mxu1 %v1010_v9  ;;  %5568 = vmatpush3.bf16.msra.mxu0 %v1013_v13 }
 0x8e3   :  { %5581 = vmatprep.subr.bf16.mxu0 %v7819_v32 }
 0x99f   :  { %v2601_v46 = vpop.f32.mrb[96].mxu0  ;;  %v2642_v40 = vpop.f32.mrb[96].mxu1 }
 0x9a0   :  { %v2602_v41 = vadd.f32 %v2601_v46, %v6831_v58  ;;  %v2603_v7 = vpop.f32.mrb[97].mxu0  ;;  %v5555_v47 = vpop.f32.mrb[97].mxu1  ;;  %v1705_v46 = vadd.f32 %v6957_v0, %v1491_v19 }
 0x9a1   :  { %v2604_v18 = vadd.f32 %v2603_v7, %v6834_v37  ;;  %v2605_v51 = vpop.f32.mrb[98].mxu0  ;;  %v2645_v61 = vpop.f32.mrb[98].mxu1 }
 0x9a2   :  { %v2648_v2 = vadd.f32 %v2602_v41, %v7834_v43  ;;  %v2606_v16 = vpop.f32.mrb[99].mxu0  ;;  %v5556_v48 = vpop.f32.mrb[99].mxu1  ;;  %v1919_v7 = vadd.f32 %v7005_v22, %v1705_v46 }
 0x9a3   :  { %v2655_v5 = vadd.f32 %v2604_v18, %v7835_v52  ;;  %v7839_v48 = vld [vmem:[#allocation40_spill] sm:$0xff] }
 0x9a4   :  { %v5238_v27 = vmul.f32 -1.442695, %v2648_v2  ;;  %v2133_v47 = vadd.f32 %v7053_v1, %v1919_v7  ;;  %v1492_v1 = vadd.f32 %v6928_v33, %v6880_v25  ;;  %v7232_v7 = vld [vmem:[#allocation3 + $0x20] sm:$0xff] }
 0x9a5   :  { %v5239_v31 = vmul.f32 -1.442695, %v2655_v5 }
 0x9a6   :  { %5968 = vpow2.f32 %v5238_v27  ;;  %v2347_v2 = vadd.f32 %v7101_v57, %v2133_v47  ;;  %v1706_v5 = vadd.f32 %v6976_v42, %v1492_v1  ;;  %v5182_v47 = vld [vmem:[%s7753_s9 + $0x3] ss:$8 sm:$0x3] }
 0x9a7   :  { %5970 = vpow2.f32 %v5239_v31 }
 0x9a8   :  { %v2561_v4 = vadd.f32 %v7152_v53, %v2347_v2  ;;  %v1920_v31 = vadd.f32 %v7024_v45, %v1706_v5  ;;  %v1017_v45 = vld [vmem:[#allocation4] sm:$0xff] }
 0x9a9   :  { %v3002_v5 = vld [vmem:[%s7746_s2] sm:$0xff] }
 0x9af   :  { %v2707_v15 = vpop.f32.mrb[100].mxu0  ;;  %v2748_v21 = vpop.f32.mrb[100].mxu1 }
 0x9b0   :  { %v5969_v55 = vpop.eup %5968  ;;  %v2708_v58 = vadd.f32 %v2707_v15, %v6844_v62  ;;  %v2709_v3 = vpop.f32.mrb[101].mxu0  ;;  %v2643_v62 = vadd.f32 %v2642_v40, %v6854_v17  ;;  %v2749_v51 = vadd.f32 %v2748_v21, %v6859_v60  ;;  %v2134_v15 = vadd.f32 %v7072_v11, %v1920_v31  ;;  %v1018_v11 = vld [vmem:[#allocation4 + $0x10] sm:$0xff] }
 0x9b1   :  { %v5563_v30 = vpop.f32.mrb[101].mxu1  ;;  %v2652_v37 = vadd.f32 1.0, %v5969_v55  ;;  %v2710_v14 = vadd.f32 %v2709_v3, %v6847_v23  ;;  %v2711_v6 = vpop.f32.mrb[102].mxu0 }
 0x9b2   :  { %v2751_v12 = vpop.f32.mrb[102].mxu1  ;;  %v2754_v10 = vadd.f32 %v2708_v58, %v7836_v36  ;;  %v2712_v24 = vpop.f32.mrb[103].mxu0  ;;  %v2348_v58 = vadd.f32 %v7129_v63, %v2134_v15  ;;  %v1022_v63 = vld [vmem:[#allocation4 + $0x48] sm:$0xff]  ;;  %v1030_v36 = vld [vmem:[%s7753_s9] ss:$0 sm:$0xff] }
 0x9b3   :  { %v5564_v34 = vpop.f32.mrb[103].mxu1  ;;  %5972 = vrcp.f32 %v2652_v37  ;;  %v2761_v26 = vadd.f32 %v2710_v14, %v7837_v35  ;;  %v5971_v29 = vpop.eup %5970  ;;  %2929 = vmatprep.subr.bf16.mxu1 %v1022_v63 }
 0x9b4   :  { %v5242_v8 = vmul.f32 -1.442695, %v2754_v10  ;;  %v2659_v50 = vadd.f32 1.0, %v5971_v29  ;;  %v2562_v25 = vadd.f32 %v7171_v54, %v2348_v58 }
 0x9b5   :  { %v5243_v59 = vmul.f32 -1.442695, %v2761_v26 }
 0x9b6   :  { %5974 = vpow2.f32 %v5242_v8 }
 0x9b7   :  { %5976 = vpow2.f32 %v5243_v59 }
 0x9b8   :  { %5978 = vrcp.f32 %v2659_v50  ;;  %v1021_v50 = vld [vmem:[#allocation4 + $0x40] sm:$0xff] }
 0x9bd   :  { %v5973_v28 = vpop.eup %5972 }
 0x9be   :  { %v2662_v39 = vmul.f32 %v5973_v28, %v2643_v62  ;;  %v1024_v62 = vld [vmem:[#allocation4 + $0x58] sm:$0xff]  ;;  %v1023_v28 = vld [vmem:[#allocation4 + $0x50] sm:$0xff] }
 0x9c0   :  { %v5975_v23 = vpop.eup %5974  ;;  %v2663_v38 = vadd.f32 %v2662_v39, %v7838_v49  ;;  %v1031_v39 = vld [vmem:[%s7753_s9 + $0x1] ss:$0 sm:$0xff] }
 0x9c1   :  { %v2758_v9 = vadd.f32 1.0, %v5975_v23  ;;  %v5977_v13 = vpop.eup %5976 }
 0x9c2   :  { %5980 = vtanh.f32 %v2663_v38  ;;  %v5979_v41 = vpop.eup %5978  ;;  %v2765_v17 = vadd.f32 1.0, %v5977_v13 }
 0x9c3   :  { %5982 = vrcp.f32 %v2758_v9  ;;  %v2665_v40 = vsub.f32 1.0, %v5979_v41  ;;  %v2667_v43 = vmul.f32 %v5979_v41, %v7152_v53  ;;  %v1029_v41 = vld [vmem:[#allocation4 + $0x80] sm:$0xf] }
 0x9c4   :  { %5984 = vrcp.f32 %v2765_v17  ;;  %v3010_v17 = vsel %vm579_vm0, %v1029_v41, 0 }
 0x9cc   :  { %v5981_v18 = vpop.eup %5980 }
 0x9cd   :  { %v5983_v61 = vpop.eup %5982  ;;  %v2666_v16 = vmul.f32 %v5981_v18, %v2665_v40  ;;  %v7237_v40 = vld [vmem:[#allocation3 + $0x28] sm:$0xff]  ;;  %v7840_v18 = vld [vmem:[#allocation24_spill] sm:$0xff] }
 0x9ce   :  { %v2768_v44 = vmul.f32 %v5983_v61, %v2749_v51  ;;  %v5985_v57 = vpop.eup %5984  ;;  %v2919_v51 = vrot.slane %v5182_v47, %v7840_v18  ;;  %v7841_v61 = vld [vmem:[#allocation25_spill] sm:$0xff] }
 0x9cf   :  { %v2668_v0 = vadd.f32 %v2667_v43, %v2666_v16  ;;  %v2771_v53 = vsub.f32 1.0, %v5985_v57  ;;  %v2773_v55 = vmul.f32 %v5985_v57, %v7171_v54  ;;  %v2923_v43 = vrot.slane %v5182_v47, %v7841_v61  ;;  %v7273_v47 = vld [vmem:[#allocation2 + $0x60] sm:$0xff] }
 0x9d0   :  { %v2769_v22 = vadd.f32 %v2768_v44, %v7839_v48 }
 0x9d1   :  { %v2775_v27 = vadd.f32 %v2668_v0, %v2561_v4 }
 0x9d2   :  { %5986 = vtanh.f32 %v2769_v22 }
 0x9d3   :  { %v2777_v52 = vmul.f32 0.125, %v2775_v27 }
 0x9d5   :  { %v2778_v60 = vpack.c.bf16 %v2777_v52, %v2777_v52 }
 0x9d7   :  { %5578 = vmatmul.mubr.msk.bf16.vlgmr.msra.gmra.mrb[104].mxu1 %vm1053_vm3, %v2778_v60 }
 0x9d8   :  { %2961 = vmatprep.mubr.bf16.mxu1 %v7818_v56  ;;  %2930 = vmatpush1.bf16.msra.mxu1 %v1021_v50 }
 0x9d9   :  { %2931 = vmatprep.subr.bf16.mxu1 %v1024_v62 }
 0x9dc   :  { %v5987_v21 = vpop.eup %5986  ;;  %2932 = vmatpush1.bf16.msra.mxu1 %v1023_v28 }
 0x9dd   :  { %v2772_v3 = vmul.f32 %v5987_v21, %v2771_v53  ;;  %5595 = vmatprep.subr.bf16.mxu1 %v7819_v32 }
 0x9df   :  { %v2774_v33 = vadd.f32 %v2773_v55, %v2772_v3 }
 0x9e1   :  { %v2776_v42 = vadd.f32 %v2774_v33, %v2562_v25 }
 0x9e3   :  { %v2779_v30 = vmul.f32 0.125, %v2776_v42 }
 0x9e5   :  { %v2780_v37 = vpack.c.bf16 %v2779_v30, %v2779_v30 }
 0x9e7   :  { %5570 = vmatmul.mubr.msk.bf16.vlgmr.msra.gmra.mrb[104].mxu0 %vm1053_vm3, %v2780_v37 }
 0x9e8   :  { %5585 = vmatprep.mubr.msk.bf16.mxu0 %vm6210_vm2, %v7819_v32  ;;  %5582 = vmatpush3.bf16.msra.mxu0 %v1017_v45 }
 0x9e9   :  { %5583 = vmatprep.subr.bf16.mxu0 %v7819_v32 }
 0x9ec   :  { %5584 = vmatpush3.bf16.msra.mxu0 %v1018_v11  ;;  %v7256_v11 = vld [vmem:[#allocation4 + $0x20] sm:$0xff] }
 0x9ed   :  { %5589 = vmatprep.subr.bf16.mxu0 %v7819_v32 }
 0xaaa   :  { %v2861_v54 = vpop.f32.mrb[104].mxu1 }
 0xaab   :  { %v5579_v14 = vpop.f32.mrb[105].mxu1 }
 0xaac   :  { %v2864_v6 = vpop.f32.mrb[106].mxu1  ;;  %v7263_v14 = vld [vmem:[#allocation2 + $0x68] sm:$0xff] }
 0xaad   :  { %v5580_v12 = vpop.f32.mrb[107].mxu1  ;;  %v7266_v6 = vld [vmem:[#allocation4 + $0x68] sm:$0xff] }
 0xaba   :  { %v2818_v10 = vpop.f32.mrb[104].mxu0 }
 0xabb   :  { %v2862_v24 = vadd.f32 %v2861_v54, %v2818_v10  ;;  %v5571_v34 = vpop.f32.mrb[105].mxu0  ;;  %v7260_v54 = vld [vmem:[#allocation4 + $0x30] sm:$0xff] }
 0xabc   :  { %v2821_v8 = vpop.f32.mrb[106].mxu0 }
 0xabd   :  { %v2867_v35 = vadd.f32 %v2862_v24, %v1030_v36  ;;  %v5572_v26 = vpop.f32.mrb[107].mxu0 }
 0xabf   :  { %v2868_v29 = vmax.f32 %v2867_v35, 0.0 }
 0xac1   :  { %v2869_v59 = vpack.c.bf16 %v2868_v29, %v2868_v29 }
 0xac3   :  { %5586 = vmatmul.mubr.msk.bf16.vlgmr.msra.gmra.mrb[108].mxu0 %vm1053_vm3, %v2869_v59 }
 0xac4   :  { %5591 = vmatprep.mubr.msk.bf16.mxu0 %vm6210_vm2, %v7819_v32  ;;  %5590 = vmatpush3.bf16.msra.mxu0 %v3010_v17 }
 0xac5   :  { %5603 = vmatprep.subr.bf16.mxu0 %v7819_v32 }
 0xb96   :  { %v2907_v23 = vpop.f32.mrb[108].mxu0 }
 0xb97   :  { %v2908_v49 = vadd.f32 %v2907_v23, %v1031_v39  ;;  %v5587_v38 = vpop.f32.mrb[109].mxu0 }
 0xb98   :  { %v2910_v9 = vpop.f32.mrb[110].mxu0 }
 0xb99   :  { %v2913_v19 = vmax.f32 %v2908_v49, 0.0  ;;  %v5588_v13 = vpop.f32.mrb[111].mxu0  ;;  %v7842_v49 = vld [vmem:[#allocation61_spill] sm:$0xff] }
 0xb9b   :  { %v2914_v46 = vpack.c.bf16 %v2913_v19, %v2913_v19 }
 0xb9d   :  { %5247 = vmatmul.mubr.msk.bf16.vlgmr.msra.gmra.mrb[108].mxu1 %vm1053_vm3, %v2914_v46 }
 0xb9e   :  { %5599 = vmatprep.mubr.msk.bf16.mxu1 %vm6210_vm2, %v7819_v32  ;;  %5596 = vmatpush3.bf16.msra.mxu1 %v7232_v7 }
 0xb9f   :  { %5597 = vmatprep.subr.bf16.mxu1 %v7819_v32 }
 0xba2   :  { %5598 = vmatpush3.bf16.msra.mxu1 %v7237_v40 }
 0xba3   :  { %3155 = vmatprep.subr.bf16.mxu1 %v7266_v6 }
 0xba5   :  { %5600 = vmatmul.mubr.bf16.vlgmr.msra.gmra.mrb[112].mxu1 %v7818_v56 }
 0xba6   :  { %3187 = vmatprep.mubr.bf16.mxu1 %v7818_v56 }
 0xc70   :  { %v2963_v2 = vpop.f32.mrb[108].mxu1 }
 0xc71   :  { %v2964_v16 = vadd.f32 %v2963_v2, %v2919_v51  ;;  %v2965_v44 = vpop.f32.mrb[109].mxu1  ;;  %v7275_v51 = vld [vmem:[#allocation2 + $0x80] sm:$0xff] }
 0xc72   :  { %v2966_v4 = vadd.f32 %v2965_v44, %v2923_v43  ;;  %v2967_v0 = vpop.f32.mrb[110].mxu1  ;;  %v7281_v43 = vld [vmem:[#allocation2 + $0x78] sm:$0xff]  ;;  %v7292_v2 = vld [vmem:[#allocation4 + $0x60] sm:$0xff]  ;;  %v7298_v44 = vld [vmem:[#allocation4 + $0x70] sm:$0xff] }
 0xc73   :  { %2998 = vst [vmem:[#allocation11] sm:$0xff] %v2964_v16  ;;  %v2968_v48 = vpop.f32.mrb[111].mxu1  ;;  %v2972_v1 = vmul.f32 %v2964_v16, %v2964_v16  ;;  %3156 = vmatpush1.bf16.msra.mxu1 %v7292_v2 }
 0xc74   :  { %v2970_v22 = vmul.f32 1.442695, %v2966_v4  ;;  %v2999_v27 = vmul.f32 0.5, %v2966_v4 }
 0xc76   :  { %5988 = vpow2.f32 %v2970_v22  ;;  %v3000_v52 = vmul.f32 1.442695, %v2999_v27 }
 0xc78   :  { %5990 = vpow2.f32 %v3000_v52  ;;  %v3087_v30 = vpop.f32.mrb[112].mxu1 }
 0xc79   :  { %v5601_v37 = vpop.f32.mrb[113].mxu1 }
 0xc7a   :  { %v3090_v45 = vpop.f32.mrb[114].mxu1 }
 0xc7b   :  { %v5602_v63 = vpop.f32.mrb[115].mxu1  ;;  %v7844_v45 = vld [vmem:[#allocation46_spill] sm:$0xff] }
 0xc80   :  { %v5989_v60 = vpop.eup %5988 }
 0xc81   :  { %v2973_v57 = vadd.f32 %v5989_v60, %v2972_v1 }
 0xc82   :  { %v5991_v31 = vpop.eup %5990 }
 0xc83   :  { %v3003_v53 = vmul.f32 %v5991_v31, %v3002_v5  ;;  %v5248_v15 = vadd.f32 -1.0, %v2973_v57  ;;  %v7308_v5 = vld [vmem:[#allocation2 + $0x70] sm:$0xff]  ;;  %v7315_v31 = vld [vmem:[#allocation2 + $0x88] sm:$0xff] }
 0xc85   :  { %v3004_v21 = vadd.f32 %v3003_v53, %v2964_v16  ;;  %v2975_v55 = vsub.f32 %v5248_v15, %v2966_v4  ;;  %v7295_v16 = vld [vmem:[#allocation4 + $0x78] sm:$0xff]  ;;  %v7305_v4 = vld [vmem:[%s7753_s9 + $0x2] ss:$0 sm:$0xff] }
 0xc86   :  { %3157 = vmatprep.subr.bf16.mxu1 %v7295_v16 }
 0xc87   :  { %v3005_v58 = vpack.c.bf16 %v3004_v21, %v3004_v21  ;;  %v2976_v3 = vmul.f32 0.5, %v2975_v55  ;;  %3158 = vmatpush1.bf16.msra.mxu1 %v7298_v44  ;;  %v5181_v55 = vld [vmem:[%s7750_s6 + $0x6] sm:$0x7] }
 0xc88   :  { %5611 = vmatprep.subr.bf16.mxu1 %v7819_v32 }
 0xc89   :  { %5592 = vmatmul.mubr.msk.bf16.vlgmr.msra.gmra.mrb[112].mxu0 %vm566_vm1, %v3005_v58  ;;  %v2977_v25 = vsel %vm566_vm1, %v2976_v3, 0.0  ;;  %v2987_v33 = vmax.f32 %v2976_v3, 0.125  ;;  %v7330_v58 = vrot.slane %v5181_v55, %v7840_v18 }
 0xc8a   :  { %2978 = vadd.xlane.f32.xlu0 %v2977_v25  ;;  %5607 = vmatprep.mubr.msk.bf16.mxu0 %vm6210_vm2, %v7819_v32  ;;  %v7843_v25 = vld [vmem:[#allocation45_spill] sm:$0xff] }
 0xc8b   :  { %v2988_v42 = vsel %vm566_vm1, %v2987_v33, 0.0  ;;  %5604 = vmatpush3.bf16.msra.mxu0 %v7256_v11 }
 0xc8c   :  { %5605 = vmatprep.subr.bf16.mxu0 %v7819_v32 }
 0xc8e   :  { %2989 = vadd.xlane.f32.xlu0 %v2988_v42 }
 0xc8f   :  { %5606 = vmatpush3.bf16.msra.mxu0 %v7260_v54 }
 0xc90   :  { %3234 = vmatprep.subr.bf16.mxu0 %v7263_v14 }
 0xd17   :  { %v2979_v12 = vpop.xlane.xlu0 %2978 }
 0xd18   :  { %v2980_v36 = vrot.slane %v2979_v12, 4 }
 0xd1a   :  { %v2981_v10 = vadd.f32 %v2980_v36, %v2979_v12 }
 0xd1b   :  { %v2990_v24 = vpop.xlane.xlu0 %2989 }
 0xd1c   :  { %v2982_v34 = vrot.slane %v2981_v10, 2  ;;  %v2991_v8 = vrot.slane %v2990_v24, 4 }
 0xd1e   :  { %v2992_v35 = vadd.f32 %v2991_v8, %v2990_v24  ;;  %v2983_v26 = vadd.f32 %v2982_v34, %v2981_v10  ;;  %v5183_v24 = vld [vmem:[%s7753_s9 + $0x4] ss:$8 sm:$0x3] }
 0xd1f   :  { %v7343_v34 = vrot.slane %v5183_v24, %v7841_v61 }
 0xd20   :  { %v2993_v29 = vrot.slane %v2992_v35, 2  ;;  %v2984_v59 = vrot.slane %v2983_v26, 1 }
 0xd22   :  { %v2985_v50 = vadd.f32 %v2984_v59, %v2983_v26  ;;  %v2994_v62 = vadd.f32 %v2993_v29, %v2992_v35 }
 0xd24   :  { %5787 = vpush %v2985_v50  ;;  %v2995_v28 = vrot.slane %v2994_v62, 1 }
 0xd26   :  { %v2996_v39 = vadd.f32 %v2995_v28, %v2994_v62  ;;  %v7347_v28 = vrot.slane %v5183_v24, %v7840_v18 }
 0xd28   :  { %5789 = vpush %v2996_v39  ;;  %v7350_v39 = vrot.slane %v5181_v55, %v6542_v20 }
 0xd5c   :  { %v7269_v23 = vpop.f32.mrb[112].mxu0 }
 0xd5d   :  { %v3052_v38 = vadd.f32 %v7269_v23, %v7842_v49  ;;  %v5593_v9 = vpop.f32.mrb[113].mxu0 }
 0xd5e   :  { %v3049_v19 = vpop.f32.mrb[114].mxu0 }
 0xd5f   :  { %v3093_v13 = vadd.f32 %v3087_v30, %v3052_v38  ;;  %v5594_v46 = vpop.f32.mrb[115].mxu0  ;;  %v7335_v30 = vrot.slane %v5181_v55, %v7841_v61 }
 0xd61   :  { %v3094_v41 = vmax.f32 %v3093_v13, 0.0 }
 0xd63   :  { %v3095_v17 = vpack.c.bf16 %v3094_v41, %v3094_v41  ;;  %v3196_v41 = vld [vmem:[%s7745_s1] sm:$0xff] }
 0xd65   :  { %5608 = vmatmul.mubr.msk.bf16.vlgmr.msra.gmra.mrb[116].mxu0 %vm1053_vm3, %v3095_v17 }
 0xd66   :  { %3235 = vmatpush1.bf16.msra.mxu0 %v7273_v47  ;;  %3266 = vmatprep.mubr.bf16.mxu0 %v7818_v56 }
 0xd67   :  { %3236 = vmatprep.subr.bf16.mxu0 %v7275_v51 }
 0xd6a   :  { %3237 = vmatpush1.bf16.msra.mxu0 %v7281_v43 }
 0xd6b   :  { %5619 = vmatprep.subr.bf16.mxu0 %v7819_v32 }
 0xd6d   :  { %3267 = vmatmul.mubr.bf16.vlgmr.msra.gmra.mrb[120].mxu0 %v7818_v56 }
 0xd6e   :  { %5620 = vmatpush3.bf16.msra.mxu0 %v7232_v7  ;;  %5623 = vmatprep.mubr.msk.bf16.mxu0 %vm6210_vm2, %v7819_v32 }
 0xd6f   :  { %5621 = vmatprep.subr.bf16.mxu0 %v7819_v32 }
 0xd72   :  { %5622 = vmatpush3.bf16.msra.mxu0 %v7237_v40 }
 0xd73   :  { %3432 = vmatprep.subr.bf16.mxu0 %v7266_v6 }
 0xe38   :  { %v3133_v0 = vpop.f32.mrb[116].mxu0 }
 0xe39   :  { %v3134_v48 = vadd.f32 %v3133_v0, %v7305_v4  ;;  %v5609_v22 = vpop.f32.mrb[117].mxu0 }
 0xe3a   :  { %v3136_v27 = vpop.f32.mrb[118].mxu0 }
 0xe3b   :  { %v3139_v52 = vmax.f32 %v3134_v48, 0.0  ;;  %v5610_v1 = vpop.f32.mrb[119].mxu0  ;;  %v7845_v48 = vld [vmem:[#allocation60_spill] sm:$0xff] }
 0xe3d   :  { %v3140_v60 = vpack.c.bf16 %v3139_v52, %v3139_v52 }
 0xe3f   :  { %5251 = vmatmul.mubr.msk.bf16.vlgmr.msra.gmra.mrb[116].mxu1 %vm1053_vm3, %v3140_v60 }
 0xe40   :  { %5612 = vmatpush3.bf16.msra.mxu1 %v7308_v5  ;;  %5615 = vmatprep.mubr.msk.bf16.mxu1 %vm6210_vm2, %v7819_v32  ;;  %v3268_v57 = vpop.f32.mrb[120].mxu0 }
 0xe41   :  { %5613 = vmatprep.subr.bf16.mxu1 %v7819_v32  ;;  %v3270_v53 = vpop.f32.mrb[121].mxu0  ;;  %v3269_v3 = vadd.f32 %v3268_v57, %v7330_v58 }
 0xe42   :  { %v3272_v15 = vpop.f32.mrb[122].mxu0  ;;  %v3271_v37 = vadd.f32 %v3270_v53, %v7335_v30 }
 0xe43   :  { %v3273_v21 = vpop.f32.mrb[123].mxu0  ;;  %v3315_v33 = vadd.f32 %v3269_v3, %v7843_v25 }
 0xe44   :  { %5614 = vmatpush3.bf16.msra.mxu1 %v7315_v31  ;;  %v3322_v63 = vadd.f32 %v3271_v37, %v7844_v45 }
 0xe45   :  { %5627 = vmatprep.subr.bf16.mxu1 %v7819_v32  ;;  %v5252_v42 = vmul.f32 -1.442695, %v3315_v33 }
 0xe46   :  { %v5253_v12 = vmul.f32 -1.442695, %v3322_v63 }
 0xe47   :  { %5616 = vmatmul.mubr.bf16.vlgmr.msra.gmra.mrb[120].mxu1 %v7818_v56  ;;  %5992 = vpow2.f32 %v5252_v42 }
 0xe48   :  { %5628 = vmatpush3.bf16.msra.mxu1 %v7256_v11  ;;  %5631 = vmatprep.mubr.msk.bf16.mxu1 %vm6210_vm2, %v7819_v32  ;;  %5994 = vpow2.f32 %v5253_v12 }
 0xe49   :  { %5629 = vmatprep.subr.bf16.mxu1 %v7819_v32 }
 0xe4c   :  { %5630 = vmatpush3.bf16.msra.mxu1 %v7260_v54 }
 0xe4d   :  { %3495 = vmatprep.subr.bf16.mxu1 %v7263_v14 }
 0xe51   :  { %v5993_v36 = vpop.eup %5992 }
 0xe52   :  { %v3319_v10 = vadd.f32 1.0, %v5993_v36  ;;  %v5995_v50 = vpop.eup %5994 }
 0xe53   :  { %v3326_v38 = vadd.f32 1.0, %v5995_v50 }
 0xe54   :  { %5996 = vrcp.f32 %v3319_v10 }
 0xe5e   :  { %v5997_v9 = vpop.eup %5996 }
 0xf12   :  { %v3189_v8 = vpop.f32.mrb[116].mxu1 }
 0xf13   :  { %v3191_v35 = vpop.f32.mrb[117].mxu1  ;;  %v3190_v19 = vadd.f32 %v3189_v8, %v7347_v28  ;;  %v7846_v8 = vld [vmem:[#allocation63_spill] sm:$0xff] }
 0xf14   :  { %v3192_v26 = vadd.f32 %v3191_v35, %v7343_v34  ;;  %v3193_v29 = vpop.f32.mrb[118].mxu1  ;;  %v3336_v35 = vadd.f32 %v7269_v23, %v7846_v8 }
 0xf15   :  { %v3194_v59 = vpop.f32.mrb[119].mxu1  ;;  %v3197_v20 = vsub.f32 %v3196_v41, %v3190_v19 }
 0xf16   :  { %v3199_v62 = vsub.f32 0.0, %v3192_v26 }
 0xf17   :  { %v3198_v27 = vmul.f32 %v3197_v20, %v3197_v20 }
 0xf18   :  { %v3200_v49 = vmul.f32 1.442695, %v3199_v62 }
 0xf1a   :  { %5998 = vpow2.f32 %v3200_v49  ;;  %v3309_v61 = vpop.f32.mrb[120].mxu1 }
 0xf1b   :  { %v3310_v13 = vadd.f32 %v3309_v61, %v7350_v39  ;;  %v5617_v46 = vpop.f32.mrb[121].mxu1  ;;  %6000 = vrcp.f32 %v3326_v38 }
 0xf1c   :  { %v3312_v17 = vpop.f32.mrb[122].mxu1 }
 0xf1d   :  { %v3329_v18 = vmul.f32 %v5997_v9, %v3310_v13  ;;  %v5618_v0 = vpop.f32.mrb[123].mxu1 }
 0xf1f   :  { %v3330_v22 = vadd.f32 %v3329_v18, %v7845_v48 }
 0xf21   :  { %6002 = vtanh.f32 %v3330_v22 }
 0xf24   :  { %v5999_v52 = vpop.eup %5998 }
 0xf25   :  { %v3202_v1 = vmul.f32 %v5999_v52, %v3198_v27  ;;  %v6001_v60 = vpop.eup %6000  ;;  %v7847_v27 = vld [vmem:[#allocation48_spill] sm:$0xff] }
 0xf26   :  { %v3332_v15 = vsub.f32 1.0, %v6001_v60  ;;  %v3334_v25 = vmul.f32 0.0, %v6001_v60 }
 0xf27   :  { %v3203_v57 = vadd.f32 %v3202_v1, %v3192_v26 }
 0xf29   :  { %v3204_v53 = vadd.f32 1.837877, %v3203_v57  ;;  %v7848_v57 = vld [vmem:[#allocation50_spill] sm:$0xff] }
 0xf2b   :  { %v6003_v21 = vpop.eup %6002  ;;  %v3206_v55 = vsel %vm3205_vm4, %v3204_v53, 0.0 }
 0xf2c   :  { %v3333_v3 = vmul.f32 %v6003_v21, %v3332_v15  ;;  %3207 = vadd.xlane.f32.xlu1 %v3206_v55 }
 0xf2e   :  { %v7359_v33 = vadd.f32 %v3334_v25, %v3333_v3 }
 0xf30   :  { %v3337_v42 = vpack.c.bf16 %v7359_v33, %v7359_v33 }
 0xf32   :  { %5624 = vmatmul.mubr.msk.bf16.vlgmr.msra.gmra.mrb[124].mxu0 %vm1053_vm3, %v3337_v42 }
 0xf33   :  { %3433 = vmatpush1.bf16.msra.mxu0 %v7292_v2  ;;  %3464 = vmatprep.mubr.bf16.mxu0 %v7818_v56 }
 0xf34   :  { %3434 = vmatprep.subr.bf16.mxu0 %v7295_v16 }
 0xf37   :  { %3435 = vmatpush1.bf16.msra.mxu0 %v7298_v44 }
 0xf38   :  { %5635 = vmatprep.subr.bf16.mxu0 %v7819_v32 }
 0xfb9   :  { %v3208_v37 = vpop.xlane.xlu1 %3207 }
 0xfba   :  { %v3209_v45 = vrot.slane %v3208_v37, 4 }
 0xfbc   :  { %v3210_v63 = vadd.f32 %v3209_v45, %v3208_v37 }
 0xfbe   :  { %v3211_v12 = vrot.slane %v3210_v63, 2 }
 0xfc0   :  { %v3212_v36 = vadd.f32 %v3211_v12, %v3210_v63 }
 0xfc2   :  { %v3213_v10 = vrot.slane %v3212_v36, 1 }
 0xfc4   :  { %v3214_v24 = vadd.f32 %v3213_v10, %v3212_v36 }
 0xfc6   :  { %5791 = vpush %v3214_v24 }
0x1005   :  { %v3375_v26 = vpop.f32.mrb[124].mxu0 }
0x1006   :  { %v3381_v29 = vadd.f32 %v3375_v26, %v3336_v35  ;;  %v5625_v59 = vpop.f32.mrb[125].mxu0 }
0x1007   :  { %v3378_v50 = vpop.f32.mrb[126].mxu0  ;;  %v5257_v59 = vld [vmem:[%s7745_s1 + $0x8] sm:$0xff] }
0x1008   :  { %v3382_v62 = vmax.f32 %v3381_v29, 0.0  ;;  %v5626_v49 = vpop.f32.mrb[127].mxu0 }
0x100a   :  { %v3383_v38 = vpack.c.bf16 %v3382_v62, %v3382_v62 }
0x100c   :  { %5632 = vmatmul.mubr.msk.bf16.vlgmr.msra.gmra.mrb[124].mxu1 %vm1053_vm3, %v3383_v38 }
0x100d   :  { %3496 = vmatpush1.bf16.msra.mxu1 %v7273_v47  ;;  %3527 = vmatprep.mubr.bf16.mxu1 %v7818_v56 }
0x100e   :  { %3497 = vmatprep.subr.bf16.mxu1 %v7275_v51 }
0x1011   :  { %3498 = vmatpush1.bf16.msra.mxu1 %v7281_v43 }
0x1012   :  { %5643 = vmatprep.subr.bf16.mxu1 %v7819_v32 }
0x1014   :  { %5258 = vmatmul.mubr.msk.bf16.vlgmr.msra.gmra.mrb[128].mxu1 %vm1053_vm3, %v3337_v42 }
0x1015   :  { %5644 = vmatpush3.bf16.msra.mxu1 %v7232_v7  ;;  %5647 = vmatprep.mubr.msk.bf16.mxu1 %vm6210_vm2, %v7819_v32 }
0x1016   :  { %5645 = vmatprep.subr.bf16.mxu1 %v7819_v32 }
0x1019   :  { %5646 = vmatpush3.bf16.msra.mxu1 %v7237_v40 }
0x101a   :  { %3693 = vmatprep.subr.bf16.mxu1 %v7266_v6 }
0x10df   :  { %v3421_v9 = vpop.f32.mrb[124].mxu1 }
0x10e0   :  { %v3422_v61 = vadd.f32 %v3421_v9, %v7305_v4  ;;  %v5633_v19 = vpop.f32.mrb[125].mxu1  ;;  %v7849_v9 = vld [vmem:[#allocation62_spill] sm:$0xff] }
0x10e1   :  { %v3424_v13 = vpop.f32.mrb[126].mxu1 }
0x10e2   :  { %v3427_v46 = vmax.f32 %v3422_v61, 0.0  ;;  %v5634_v41 = vpop.f32.mrb[127].mxu1 }
0x10e4   :  { %v3428_v17 = vpack.c.bf16 %v3427_v46, %v3427_v46 }
0x10e6   :  { %5256 = vmatmul.mubr.msk.bf16.vlgmr.msra.gmra.mrb[128].mxu0 %vm1053_vm3, %v3428_v17 }
0x10e7   :  { %v3529_v18 = vpop.f32.mrb[128].mxu1  ;;  %5636 = vmatpush3.bf16.msra.mxu0 %v7308_v5  ;;  %5639 = vmatprep.mubr.msk.bf16.mxu0 %vm6210_vm2, %v7819_v32 }
0x10e8   :  { %v3531_v0 = vpop.f32.mrb[129].mxu1  ;;  %5637 = vmatprep.subr.bf16.mxu0 %v7819_v32  ;;  %v3530_v22 = vadd.f32 %v3529_v18, %v7330_v58 }
0x10e9   :  { %v3533_v20 = vpop.f32.mrb[130].mxu1  ;;  %v3532_v60 = vadd.f32 %v3531_v0, %v7335_v30 }
0x10ea   :  { %v3534_v48 = vpop.f32.mrb[131].mxu1  ;;  %v3576_v52 = vadd.f32 %v3530_v22, %v7847_v27 }
0x10eb   :  { %5638 = vmatpush3.bf16.msra.mxu0 %v7315_v31  ;;  %v3583_v53 = vadd.f32 %v3532_v60, %v7848_v57 }
0x10ec   :  { %5651 = vmatprep.subr.bf16.mxu0 %v7819_v32  ;;  %v5260_v1 = vmul.f32 -1.442695, %v3576_v52 }
0x10ed   :  { %v5261_v15 = vmul.f32 -1.442695, %v3583_v53 }
0x10ee   :  { %5640 = vmatmul.mubr.msk.bf16.vlgmr.msra.gmra.mrb[132].mxu0 %vm1053_vm3, %v3337_v42  ;;  %6004 = vpow2.f32 %v5260_v1 }
0x10ef   :  { %5652 = vmatpush3.bf16.msra.mxu0 %v7256_v11  ;;  %5655 = vmatprep.mubr.msk.bf16.mxu0 %vm6210_vm2, %v7819_v32  ;;  %6006 = vpow2.f32 %v5261_v15 }
0x10f0   :  { %5653 = vmatprep.subr.bf16.mxu0 %v7819_v32 }
0x10f3   :  { %5654 = vmatpush3.bf16.msra.mxu0 %v7260_v54 }
0x10f4   :  { %3756 = vmatprep.subr.bf16.mxu0 %v7263_v14 }
0x10f8   :  { %v6005_v21 = vpop.eup %6004 }
0x10f9   :  { %v3580_v55 = vadd.f32 1.0, %v6005_v21  ;;  %v6007_v63 = vpop.eup %6006 }
0x10fa   :  { %v3587_v10 = vadd.f32 1.0, %v6007_v63 }
0x10fb   :  { %6008 = vrcp.f32 %v3580_v55 }
0x1105   :  { %v6009_v29 = vpop.eup %6008 }
0x11b9   :  { %v3466_v3 = vpop.f32.mrb[128].mxu0 }
0x11ba   :  { %v3468_v25 = vpop.f32.mrb[129].mxu0  ;;  %v3467_v8 = vadd.f32 %v3466_v3, %v7347_v28  ;;  %v7850_v3 = vld [vmem:[#allocation65_spill] sm:$0xff] }
0x11bb   :  { %v3469_v42 = vadd.f32 %v3468_v25, %v7343_v34  ;;  %v3470_v37 = vpop.f32.mrb[130].mxu0  ;;  %v3597_v25 = vadd.f32 %v7269_v23, %v7850_v3 }
0x11bc   :  { %v3471_v45 = vpop.f32.mrb[131].mxu0  ;;  %v3475_v38 = vsub.f32 %v5257_v59, %v3467_v8 }
0x11bd   :  { %v3477_v12 = vsub.f32 0.0, %v3469_v42 }
0x11be   :  { %v3476_v19 = vmul.f32 %v3475_v38, %v3475_v38 }
0x11bf   :  { %v3478_v36 = vmul.f32 1.442695, %v3477_v12 }
0x11c1   :  { %6010 = vpow2.f32 %v3478_v36  ;;  %v3570_v24 = vpop.f32.mrb[132].mxu0 }
0x11c2   :  { %v3571_v35 = vadd.f32 %v3570_v24, %v7350_v39  ;;  %v5641_v26 = vpop.f32.mrb[133].mxu0  ;;  %6012 = vrcp.f32 %v3587_v10 }
0x11c3   :  { %v3573_v50 = vpop.f32.mrb[134].mxu0 }
0x11c4   :  { %v3590_v62 = vmul.f32 %v6009_v29, %v3571_v35  ;;  %v5642_v49 = vpop.f32.mrb[135].mxu0 }
0x11c6   :  { %v3591_v61 = vadd.f32 %v3590_v62, %v7849_v9 }
0x11c8   :  { %6014 = vtanh.f32 %v3591_v61 }
0x11cb   :  { %v6011_v13 = vpop.eup %6010 }
0x11cc   :  { %v3480_v46 = vmul.f32 %v6011_v13, %v3476_v19  ;;  %v6013_v41 = vpop.eup %6012  ;;  %v7851_v19 = vld [vmem:[#allocation52_spill] sm:$0xff] }
0x11cd   :  { %v3593_v0 = vsub.f32 1.0, %v6013_v41  ;;  %v3595_v27 = vmul.f32 %v6013_v41, %v7359_v33 }
0x11ce   :  { %v3481_v17 = vadd.f32 %v3480_v46, %v3469_v42 }
0x11d0   :  { %v3482_v18 = vadd.f32 1.837877, %v3481_v17  ;;  %v7852_v17 = vld [vmem:[#allocation53_spill] sm:$0xff] }
0x11d2   :  { %v6015_v20 = vpop.eup %6014  ;;  %v3483_v48 = vsel %vm3205_vm4, %v3482_v18, 0.0 }
0x11d3   :  { %v3594_v22 = vmul.f32 %v6015_v20, %v3593_v0  ;;  %3484 = vadd.xlane.f32.xlu1 %v3483_v48 }
0x11d5   :  { %v7412_v52 = vadd.f32 %v3595_v27, %v3594_v22 }
0x11d7   :  { %v3598_v1 = vpack.c.bf16 %v7412_v52, %v7412_v52 }
0x11d9   :  { %5648 = vmatmul.mubr.msk.bf16.vlgmr.msra.gmra.mrb[132].mxu1 %vm1053_vm3, %v3598_v1 }
0x11da   :  { %3694 = vmatpush1.bf16.msra.mxu1 %v7292_v2  ;;  %3725 = vmatprep.mubr.bf16.mxu1 %v7818_v56 }
0x11db   :  { %3695 = vmatprep.subr.bf16.mxu1 %v7295_v16 }
0x11de   :  { %3696 = vmatpush1.bf16.msra.mxu1 %v7298_v44 }
0x11df   :  { %5659 = vmatprep.subr.bf16.mxu1 %v7819_v32 }
0x1260   :  { %v3485_v60 = vpop.xlane.xlu1 %3484 }
0x1261   :  { %v3486_v57 = vrot.slane %v3485_v60, 4 }
0x1263   :  { %v3487_v33 = vadd.f32 %v3486_v57, %v3485_v60 }
0x1265   :  { %v3488_v53 = vrot.slane %v3487_v33, 2 }
0x1267   :  { %v3489_v15 = vadd.f32 %v3488_v53, %v3487_v33 }
0x1269   :  { %v3490_v21 = vrot.slane %v3489_v15, 1 }
0x126b   :  { %v3491_v55 = vadd.f32 %v3490_v21, %v3489_v15 }
0x126d   :  { %5793 = vpush %v3491_v55 }
0x12ac   :  { %v3636_v42 = vpop.f32.mrb[132].mxu1 }
0x12ad   :  { %v3642_v37 = vadd.f32 %v3636_v42, %v3597_v25  ;;  %v5649_v45 = vpop.f32.mrb[133].mxu1 }
0x12ae   :  { %v3639_v63 = vpop.f32.mrb[134].mxu1  ;;  %v5265_v45 = vld [vmem:[%s7745_s1 + $0x10] sm:$0xff] }
0x12af   :  { %v3643_v12 = vmax.f32 %v3642_v37, 0.0  ;;  %v5650_v36 = vpop.f32.mrb[135].mxu1 }
0x12b1   :  { %v3644_v10 = vpack.c.bf16 %v3643_v12, %v3643_v12 }
0x12b3   :  { %5656 = vmatmul.mubr.msk.bf16.vlgmr.msra.gmra.mrb[136].mxu0 %vm1053_vm3, %v3644_v10 }
0x12b4   :  { %3757 = vmatpush1.bf16.msra.mxu0 %v7273_v47  ;;  %3788 = vmatprep.mubr.bf16.mxu0 %v7818_v56 }
0x12b5   :  { %3758 = vmatprep.subr.bf16.mxu0 %v7275_v51 }
0x12b8   :  { %3759 = vmatpush1.bf16.msra.mxu0 %v7281_v43 }
0x12b9   :  { %5667 = vmatprep.subr.bf16.mxu0 %v7819_v32 }
0x12bb   :  { %5266 = vmatmul.mubr.msk.bf16.vlgmr.msra.gmra.mrb[140].mxu0 %vm1053_vm3, %v3598_v1 }
0x12bc   :  { %5668 = vmatpush3.bf16.msra.mxu0 %v7232_v7  ;;  %5671 = vmatprep.mubr.msk.bf16.mxu0 %vm6210_vm2, %v7819_v32 }
0x12bd   :  { %5669 = vmatprep.subr.bf16.mxu0 %v7819_v32 }
0x12c0   :  { %5670 = vmatpush3.bf16.msra.mxu0 %v7237_v40 }
0x12c1   :  { %3954 = vmatprep.subr.bf16.mxu0 %v7266_v6 }
0x1386   :  { %v3682_v24 = vpop.f32.mrb[136].mxu0 }
0x1387   :  { %v3683_v8 = vadd.f32 %v3682_v24, %v7305_v4  ;;  %v5657_v35 = vpop.f32.mrb[137].mxu0  ;;  %v7853_v24 = vld [vmem:[#allocation64_spill] sm:$0xff] }
0x1388   :  { %v3685_v26 = vpop.f32.mrb[138].mxu0 }
0x1389   :  { %v3688_v29 = vmax.f32 %v3683_v8, 0.0  ;;  %v5658_v59 = vpop.f32.mrb[139].mxu0 }
0x138b   :  { %v3689_v50 = vpack.c.bf16 %v3688_v29, %v3688_v29 }
0x138d   :  { %5264 = vmatmul.mubr.msk.bf16.vlgmr.msra.gmra.mrb[136].mxu1 %vm1053_vm3, %v3689_v50 }
0x138e   :  { %v3790_v62 = vpop.f32.mrb[140].mxu0  ;;  %5660 = vmatpush3.bf16.msra.mxu1 %v7308_v5  ;;  %5663 = vmatprep.mubr.msk.bf16.mxu1 %vm6210_vm2, %v7819_v32 }
0x138f   :  { %v3792_v49 = vpop.f32.mrb[141].mxu0  ;;  %5661 = vmatprep.subr.bf16.mxu1 %v7819_v32  ;;  %v3791_v61 = vadd.f32 %v3790_v62, %v7330_v58 }
0x1390   :  { %v3794_v38 = vpop.f32.mrb[142].mxu0  ;;  %v3793_v41 = vadd.f32 %v3792_v49, %v7335_v30 }
0x1391   :  { %v3795_v9 = vpop.f32.mrb[143].mxu0  ;;  %v3837_v13 = vadd.f32 %v3791_v61, %v7851_v19 }
0x1392   :  { %5662 = vmatpush3.bf16.msra.mxu1 %v7315_v31  ;;  %v3844_v18 = vadd.f32 %v3793_v41, %v7852_v17 }
0x1393   :  { %5675 = vmatprep.subr.bf16.mxu1 %v7819_v32  ;;  %v5268_v46 = vmul.f32 -1.442695, %v3837_v13 }
0x1394   :  { %v5269_v0 = vmul.f32 -1.442695, %v3844_v18 }
0x1395   :  { %5664 = vmatmul.mubr.msk.bf16.vlgmr.msra.gmra.mrb[140].mxu1 %vm1053_vm3, %v3598_v1  ;;  %6016 = vpow2.f32 %v5268_v46 }
0x1396   :  { %5676 = vmatpush3.bf16.msra.mxu1 %v7256_v11  ;;  %5679 = vmatprep.mubr.msk.bf16.mxu1 %vm6210_vm2, %v7819_v32  ;;  %6018 = vpow2.f32 %v5269_v0 }
0x1397   :  { %5677 = vmatprep.subr.bf16.mxu1 %v7819_v32 }
0x139a   :  { %5678 = vmatpush3.bf16.msra.mxu1 %v7260_v54 }
0x139b   :  { %4017 = vmatprep.subr.bf16.mxu1 %v7263_v14 }
0x139f   :  { %v6017_v20 = vpop.eup %6016 }
0x13a0   :  { %v3841_v48 = vadd.f32 1.0, %v6017_v20  ;;  %v6019_v33 = vpop.eup %6018 }
0x13a1   :  { %v3848_v21 = vadd.f32 1.0, %v6019_v33 }
0x13a2   :  { %6020 = vrcp.f32 %v3841_v48 }
0x13ac   :  { %v6021_v37 = vpop.eup %6020 }
0x1460   :  { %v3727_v22 = vpop.f32.mrb[136].mxu1 }
0x1461   :  { %v3729_v27 = vpop.f32.mrb[137].mxu1  ;;  %v3728_v3 = vadd.f32 %v3727_v22, %v7347_v28  ;;  %v7854_v22 = vld [vmem:[#allocation67_spill] sm:$0xff] }
0x1462   :  { %v3730_v1 = vadd.f32 %v3729_v27, %v7343_v34  ;;  %v3731_v60 = vpop.f32.mrb[138].mxu1  ;;  %v3858_v27 = vadd.f32 %v7269_v23, %v7854_v22 }
0x1463   :  { %v3732_v57 = vpop.f32.mrb[139].mxu1  ;;  %v3736_v10 = vsub.f32 %v5265_v45, %v3728_v3 }
0x1464   :  { %v3738_v53 = vsub.f32 0.0, %v3730_v1 }
0x1465   :  { %v3737_v35 = vmul.f32 %v3736_v10, %v3736_v10 }
0x1466   :  { %v3739_v15 = vmul.f32 1.442695, %v3738_v53 }
0x1468   :  { %6022 = vpow2.f32 %v3739_v15  ;;  %v3831_v55 = vpop.f32.mrb[140].mxu1 }
0x1469   :  { %v3832_v25 = vadd.f32 %v3831_v55, %v7350_v39  ;;  %v5665_v42 = vpop.f32.mrb[141].mxu1  ;;  %6024 = vrcp.f32 %v3848_v21 }
0x146a   :  { %v3834_v63 = vpop.f32.mrb[142].mxu1 }
0x146b   :  { %v3851_v12 = vmul.f32 %v6021_v37, %v3832_v25  ;;  %v5666_v36 = vpop.f32.mrb[143].mxu1 }
0x146d   :  { %v3852_v8 = vadd.f32 %v3851_v12, %v7853_v24  ;;  %v7855_v24 = vld [vmem:[#allocation54_spill] sm:$0xff] }
0x146f   :  { %6026 = vtanh.f32 %v3852_v8 }
0x1472   :  { %v6023_v26 = vpop.eup %6022 }
0x1473   :  { %v3741_v29 = vmul.f32 %v6023_v26, %v3737_v35  ;;  %v6025_v59 = vpop.eup %6024 }
0x1474   :  { %v3854_v49 = vsub.f32 1.0, %v6025_v59  ;;  %v3856_v19 = vmul.f32 %v6025_v59, %v7412_v52 }
0x1475   :  { %v3742_v50 = vadd.f32 %v3741_v29, %v3730_v1  ;;  %v7856_v29 = vld [vmem:[#allocation55_spill] sm:$0xff] }
0x1477   :  { %v3743_v62 = vadd.f32 1.837877, %v3742_v50 }
0x1479   :  { %v6027_v38 = vpop.eup %6026  ;;  %v3744_v9 = vsel %vm3205_vm4, %v3743_v62, 0.0 }
0x147a   :  { %v3855_v61 = vmul.f32 %v6027_v38, %v3854_v49  ;;  %3745 = vadd.xlane.f32.xlu0 %v3744_v9 }
0x147c   :  { %v7465_v13 = vadd.f32 %v3856_v19, %v3855_v61 }
0x147e   :  { %v3859_v46 = vpack.c.bf16 %v7465_v13, %v7465_v13 }
0x1480   :  { %5672 = vmatmul.mubr.msk.bf16.vlgmr.msra.gmra.mrb[144].mxu0 %vm1053_vm3, %v3859_v46 }
0x1481   :  { %3955 = vmatpush1.bf16.msra.mxu0 %v7292_v2  ;;  %3986 = vmatprep.mubr.bf16.mxu0 %v7818_v56 }
0x1482   :  { %3956 = vmatprep.subr.bf16.mxu0 %v7295_v16 }
0x1485   :  { %3957 = vmatpush1.bf16.msra.mxu0 %v7298_v44 }
0x1486   :  { %5683 = vmatprep.subr.bf16.mxu0 %v7819_v32 }
0x1507   :  { %v3746_v41 = vpop.xlane.xlu0 %3745 }
0x1508   :  { %v3747_v17 = vrot.slane %v3746_v41, 4 }
0x150a   :  { %v3748_v52 = vadd.f32 %v3747_v17, %v3746_v41 }
0x150c   :  { %v3749_v18 = vrot.slane %v3748_v52, 2 }
0x150e   :  { %v3750_v0 = vadd.f32 %v3749_v18, %v3748_v52 }
0x1510   :  { %v3751_v20 = vrot.slane %v3750_v0, 1 }
0x1512   :  { %v3752_v48 = vadd.f32 %v3751_v20, %v3750_v0 }
0x1514   :  { %5795 = vpush %v3752_v48 }
0x1553   :  { %v3897_v1 = vpop.f32.mrb[144].mxu0 }
0x1554   :  { %v3903_v60 = vadd.f32 %v3897_v1, %v3858_v27  ;;  %v5673_v57 = vpop.f32.mrb[145].mxu0  ;;  %v5273_v1 = vld [vmem:[%s7745_s1 + $0x18] sm:$0xff] }
0x1555   :  { %v3900_v33 = vpop.f32.mrb[146].mxu0 }
0x1556   :  { %v3904_v53 = vmax.f32 %v3903_v60, 0.0  ;;  %v5674_v15 = vpop.f32.mrb[147].mxu0 }
0x1557   :  { %v7857_v15 = vld [vmem:[#allocation66_spill] sm:$0xff] }
0x1558   :  { %v3905_v21 = vpack.c.bf16 %v3904_v53, %v3904_v53 }
0x155a   :  { %5680 = vmatmul.mubr.msk.bf16.vlgmr.msra.gmra.mrb[144].mxu1 %vm1053_vm3, %v3905_v21 }
0x155b   :  { %4018 = vmatpush1.bf16.msra.mxu1 %v7273_v47  ;;  %4049 = vmatprep.mubr.bf16.mxu1 %v7818_v56 }
0x155c   :  { %4019 = vmatprep.subr.bf16.mxu1 %v7275_v51 }
0x155f   :  { %4020 = vmatpush1.bf16.msra.mxu1 %v7281_v43 }
0x1560   :  { %5691 = vmatprep.subr.bf16.mxu1 %v7819_v32 }
0x1562   :  { %5274 = vmatmul.mubr.msk.bf16.vlgmr.msra.gmra.mrb[148].mxu1 %vm1053_vm3, %v3859_v46 }
0x1563   :  { %5692 = vmatpush3.bf16.msra.mxu1 %v7232_v7  ;;  %5695 = vmatprep.mubr.msk.bf16.mxu1 %vm6210_vm2, %v7819_v32 }
0x1564   :  { %5693 = vmatprep.subr.bf16.mxu1 %v7819_v32 }
0x1567   :  { %5694 = vmatpush3.bf16.msra.mxu1 %v7237_v40 }
0x1568   :  { %4215 = vmatprep.subr.bf16.mxu1 %v7266_v6 }
0x162d   :  { %v3943_v55 = vpop.f32.mrb[144].mxu1 }
0x162e   :  { %v3944_v3 = vadd.f32 %v3943_v55, %v7305_v4  ;;  %v5681_v25 = vpop.f32.mrb[145].mxu1 }
0x162f   :  { %v3946_v42 = vpop.f32.mrb[146].mxu1 }
0x1630   :  { %v3949_v37 = vmax.f32 %v3944_v3, 0.0  ;;  %v5682_v45 = vpop.f32.mrb[147].mxu1 }
0x1632   :  { %v3950_v63 = vpack.c.bf16 %v3949_v37, %v3949_v37 }
0x1634   :  { %5272 = vmatmul.mubr.msk.bf16.vlgmr.msra.gmra.mrb[148].mxu0 %vm1053_vm3, %v3950_v63 }
0x1635   :  { %v4051_v7 = vpop.f32.mrb[148].mxu1  ;;  %5684 = vmatpush3.bf16.msra.mxu0 %v7308_v5  ;;  %5687 = vmatprep.mubr.msk.bf16.mxu0 %vm6210_vm2, %v7819_v32 }
0x1636   :  { %v4053_v12 = vpop.f32.mrb[149].mxu1  ;;  %5685 = vmatprep.subr.bf16.mxu0 %v7819_v32  ;;  %v4052_v10 = vadd.f32 %v4051_v7, %v7330_v58 }
0x1637   :  { %v4055_v40 = vpop.f32.mrb[150].mxu1  ;;  %v4054_v26 = vadd.f32 %v4053_v12, %v7335_v30 }
0x1638   :  { %v4056_v36 = vpop.f32.mrb[151].mxu1  ;;  %v4098_v8 = vadd.f32 %v4052_v10, %v7855_v24 }
0x1639   :  { %5686 = vmatpush3.bf16.msra.mxu0 %v7315_v31  ;;  %v4105_v59 = vadd.f32 %v4054_v26, %v7856_v29 }
0x163a   :  { %5699 = vmatprep.subr.bf16.mxu0 %v7819_v32  ;;  %v5276_v35 = vmul.f32 -1.442695, %v4098_v8 }
0x163b   :  { %v5277_v50 = vmul.f32 -1.442695, %v4105_v59 }
0x163c   :  { %5688 = vmatmul.mubr.msk.bf16.vlgmr.msra.gmra.mrb[152].mxu0 %vm1053_vm3, %v3859_v46  ;;  %6028 = vpow2.f32 %v5276_v35 }
0x163d   :  { %5700 = vmatpush3.bf16.msra.mxu0 %v7256_v11  ;;  %5703 = vmatprep.mubr.msk.bf16.mxu0 %vm6210_vm2, %v7819_v32  ;;  %6030 = vpow2.f32 %v5277_v50 }
0x163e   :  { %5701 = vmatprep.subr.bf16.mxu0 %v7819_v32 }
0x1641   :  { %5702 = vmatpush3.bf16.msra.mxu0 %v7260_v54 }
0x1642   :  { %4278 = vmatprep.subr.bf16.mxu0 %v7263_v14 }
0x1646   :  { %v6029_v62 = vpop.eup %6028 }
0x1647   :  { %v4102_v49 = vadd.f32 1.0, %v6029_v62  ;;  %v6031_v41 = vpop.eup %6030  ;;  %v7858_v62 = vld [vmem:[#allocation69_spill] sm:$0xff] }
0x1648   :  { %v4109_v18 = vadd.f32 1.0, %v6031_v41 }
0x1649   :  { %6032 = vrcp.f32 %v4102_v49  ;;  %v4119_v49 = vadd.f32 %v7269_v23, %v7858_v62 }
0x1653   :  { %v6033_v27 = vpop.eup %6032 }
0x1707   :  { %v3988_v38 = vpop.f32.mrb[148].mxu0 }
0x1708   :  { %v3990_v9 = vpop.f32.mrb[149].mxu0  ;;  %v3989_v20 = vadd.f32 %v3988_v38, %v7347_v28 }
0x1709   :  { %v3991_v61 = vadd.f32 %v3990_v9, %v7343_v34  ;;  %v3992_v19 = vpop.f32.mrb[150].mxu0 }
0x170a   :  { %v3993_v46 = vpop.f32.mrb[151].mxu0  ;;  %v3997_v53 = vsub.f32 %v5273_v1, %v3989_v20 }
0x170b   :  { %v3999_v17 = vsub.f32 0.0, %v3991_v61 }
0x170c   :  { %v3998_v55 = vmul.f32 %v3997_v53, %v3997_v53  ;;  %v7860_v53 = vld [vmem:[#allocation57_spill] sm:$0xff] }
0x170d   :  { %v4000_v52 = vmul.f32 1.442695, %v3999_v17 }
0x170f   :  { %6034 = vpow2.f32 %v4000_v52  ;;  %v4092_v0 = vpop.f32.mrb[152].mxu0  ;;  %v7537_v52 = vld [vmem:[#allocation3 + $0x20] sm:$0xff] }
0x1710   :  { %v4093_v48 = vadd.f32 %v4092_v0, %v7350_v39  ;;  %v5689_v22 = vpop.f32.mrb[153].mxu0  ;;  %6036 = vrcp.f32 %v4109_v18 }
0x1711   :  { %v4095_v60 = vpop.f32.mrb[154].mxu0 }
0x1712   :  { %v4112_v57 = vmul.f32 %v6033_v27, %v4093_v48  ;;  %v5690_v33 = vpop.f32.mrb[155].mxu0 }
0x1714   :  { %v4113_v21 = vadd.f32 %v4112_v57, %v7857_v15 }
0x1716   :  { %6038 = vtanh.f32 %v4113_v21 }
0x1719   :  { %v6035_v3 = vpop.eup %6034 }
0x171a   :  { %v4002_v25 = vmul.f32 %v6035_v3, %v3998_v55  ;;  %v6037_v42 = vpop.eup %6036 }
0x171b   :  { %v4115_v63 = vsub.f32 1.0, %v6037_v42  ;;  %v4117_v36 = vmul.f32 %v6037_v42, %v7465_v13 }
0x171c   :  { %v4003_v37 = vadd.f32 %v4002_v25, %v3991_v61 }
0x171e   :  { %v4004_v45 = vadd.f32 1.837877, %v4003_v37 }
0x1720   :  { %v6039_v7 = vpop.eup %6038  ;;  %v4005_v12 = vsel %vm3205_vm4, %v4004_v45, 0.0 }
0x1721   :  { %v4116_v40 = vmul.f32 %v6039_v7, %v4115_v63  ;;  %4006 = vadd.xlane.f32.xlu1 %v4005_v12 }
0x1723   :  { %v7518_v10 = vadd.f32 %v4117_v36, %v4116_v40 }
0x1725   :  { %v4120_v24 = vpack.c.bf16 %v7518_v10, %v7518_v10 }
0x1727   :  { %5696 = vmatmul.mubr.msk.bf16.vlgmr.msra.gmra.mrb[152].mxu1 %vm1053_vm3, %v4120_v24 }
0x1728   :  { %4216 = vmatpush1.bf16.msra.mxu1 %v7292_v2  ;;  %4247 = vmatprep.mubr.bf16.mxu1 %v7818_v56 }
0x1729   :  { %4217 = vmatprep.subr.bf16.mxu1 %v7295_v16 }
0x172c   :  { %4218 = vmatpush1.bf16.msra.mxu1 %v7298_v44 }
0x172d   :  { %5707 = vmatprep.subr.bf16.mxu1 %v7819_v32 }
0x17ae   :  { %v4007_v8 = vpop.xlane.xlu1 %4006 }
0x17af   :  { %v4008_v35 = vrot.slane %v4007_v8, 4 }
0x17b1   :  { %v4009_v13 = vadd.f32 %v4008_v35, %v4007_v8  ;;  %v5281_v35 = vld [vmem:[%s7745_s1 + $0x20] sm:$0xff] }
0x17b3   :  { %v4010_v26 = vrot.slane %v4009_v13, 2 }
0x17b5   :  { %v4011_v29 = vadd.f32 %v4010_v26, %v4009_v13 }
0x17b7   :  { %v4012_v59 = vrot.slane %v4011_v29, 1 }
0x17b9   :  { %v4013_v50 = vadd.f32 %v4012_v59, %v4011_v29 }
0x17bb   :  { %5797 = vpush %v4013_v50  ;;  %v7861_v50 = vld [vmem:[#allocation68_spill] sm:$0xff] }
0x17fa   :  { %v4158_v38 = vpop.f32.mrb[152].mxu1 }
0x17fb   :  { %v4164_v9 = vadd.f32 %v4158_v38, %v4119_v49  ;;  %v5697_v61 = vpop.f32.mrb[153].mxu1 }
0x17fc   :  { %v4161_v19 = vpop.f32.mrb[154].mxu1 }
0x17fd   :  { %v4165_v46 = vmax.f32 %v4164_v9, 0.0  ;;  %v5698_v41 = vpop.f32.mrb[155].mxu1 }
0x17ff   :  { %v4166_v17 = vpack.c.bf16 %v4165_v46, %v4165_v46 }
0x1801   :  { %5704 = vmatmul.mubr.msk.bf16.vlgmr.msra.gmra.mrb[156].mxu0 %vm1053_vm3, %v4166_v17 }
0x1802   :  { %4279 = vmatpush1.bf16.msra.mxu0 %v7273_v47  ;;  %4310 = vmatprep.mubr.bf16.mxu0 %v7818_v56  ;;  %v7543_v47 = vld [vmem:[#allocation3 + $0x28] sm:$0xff] }
0x1803   :  { %4280 = vmatprep.subr.bf16.mxu0 %v7275_v51 }
0x1806   :  { %4281 = vmatpush1.bf16.msra.mxu0 %v7281_v43 }
0x1807   :  { %5715 = vmatprep.subr.bf16.mxu0 %v7819_v32 }
0x1809   :  { %5282 = vmatmul.mubr.msk.bf16.vlgmr.msra.gmra.mrb[160].mxu0 %vm1053_vm3, %v4120_v24 }
0x180a   :  { %5716 = vmatpush3.bf16.msra.mxu0 %v7537_v52  ;;  %5719 = vmatprep.mubr.msk.bf16.mxu0 %vm6210_vm2, %v7819_v32 }
0x180b   :  { %5717 = vmatprep.subr.bf16.mxu0 %v7819_v32 }
0x180e   :  { %5718 = vmatpush3.bf16.msra.mxu0 %v7543_v47 }
0x180f   :  { %4476 = vmatprep.subr.bf16.mxu0 %v7266_v6 }
0x18d4   :  { %v4204_v51 = vpop.f32.mrb[156].mxu0 }
0x18d5   :  { %v4205_v43 = vadd.f32 %v4204_v51, %v7305_v4  ;;  %v5705_v18 = vpop.f32.mrb[157].mxu0 }
0x18d6   :  { %v4207_v0 = vpop.f32.mrb[158].mxu0 }
0x18d7   :  { %v4210_v20 = vmax.f32 %v4205_v43, 0.0  ;;  %v5706_v48 = vpop.f32.mrb[159].mxu0 }
0x18d9   :  { %v4211_v22 = vpack.c.bf16 %v4210_v20, %v4210_v20 }
0x18db   :  { %5280 = vmatmul.mubr.msk.bf16.vlgmr.msra.gmra.mrb[156].mxu1 %vm1053_vm3, %v4211_v22 }
0x18dc   :  { %v4312_v27 = vpop.f32.mrb[160].mxu0  ;;  %5708 = vmatpush3.bf16.msra.mxu1 %v7308_v5  ;;  %5711 = vmatprep.mubr.msk.bf16.mxu1 %vm6210_vm2, %v7819_v32  ;;  %v7859_v5 = vld [vmem:[#allocation56_spill] sm:$0xff] }
0x18dd   :  { %v4314_v1 = vpop.f32.mrb[161].mxu0  ;;  %5709 = vmatprep.subr.bf16.mxu1 %v7819_v32  ;;  %v4313_v4 = vadd.f32 %v4312_v27, %v7330_v58 }
0x18de   :  { %v4316_v6 = vpop.f32.mrb[162].mxu0  ;;  %v4315_v33 = vadd.f32 %v4314_v1, %v7335_v30 }
0x18df   :  { %v4317_v60 = vpop.f32.mrb[163].mxu0  ;;  %v4359_v57 = vadd.f32 %v4313_v4, %v7859_v5  ;;  %v7862_v4 = vld [vmem:[#allocation71_spill] sm:$0xff] }
0x18e0   :  { %5710 = vmatpush3.bf16.msra.mxu1 %v7315_v31  ;;  %v4366_v15 = vadd.f32 %v4315_v33, %v7860_v53  ;;  %v4380_v5 = vadd.f32 %v7269_v23, %v7862_v4  ;;  %v5289_v4 = vld [vmem:[%s7745_s1 + $0x28] sm:$0xff] }
0x18e1   :  { %5723 = vmatprep.subr.bf16.mxu1 %v7819_v32  ;;  %v5284_v31 = vmul.f32 -1.442695, %v4359_v57 }
0x18e3   :  { %5712 = vmatmul.mubr.msk.bf16.vlgmr.msra.gmra.mrb[160].mxu1 %vm1053_vm3, %v4120_v24  ;;  %6040 = vpow2.f32 %v5284_v31 }
0x18e4   :  { %5724 = vmatpush3.bf16.msra.mxu1 %v7256_v11  ;;  %5727 = vmatprep.mubr.msk.bf16.mxu1 %vm6210_vm2, %v7819_v32  ;;  %v5285_v11 = vmul.f32 -1.442695, %v4366_v15  ;;  %v7588_v15 = vld [vmem:[#allocation2 + $0x60] sm:$0xff] }
0x18e5   :  { %5725 = vmatprep.subr.bf16.mxu1 %v7819_v32 }
0x18e6   :  { %6042 = vpow2.f32 %v5285_v11  ;;  %v7592_v11 = vld [vmem:[#allocation2 + $0x80] sm:$0xff] }
0x18e8   :  { %5726 = vmatpush3.bf16.msra.mxu1 %v7260_v54 }
0x18e9   :  { %4539 = vmatprep.subr.bf16.mxu1 %v7263_v14 }
0x18ed   :  { %v6041_v21 = vpop.eup %6040 }
0x18ee   :  { %v4363_v55 = vadd.f32 1.0, %v6041_v21  ;;  %v7595_v21 = vld [vmem:[#allocation2 + $0x78] sm:$0xff] }
0x18f0   :  { %6044 = vrcp.f32 %v4363_v55  ;;  %v6043_v37 = vpop.eup %6042  ;;  %v7605_v55 = vld [vmem:[#allocation4 + $0x68] sm:$0xff] }
0x18f1   :  { %v4370_v7 = vadd.f32 1.0, %v6043_v37 }
0x18fa   :  { %v6045_v8 = vpop.eup %6044 }
0x19ae   :  { %v4249_v3 = vpop.f32.mrb[156].mxu1 }
0x19af   :  { %v4251_v25 = vpop.f32.mrb[157].mxu1  ;;  %v4250_v40 = vadd.f32 %v4249_v3, %v7347_v28 }
0x19b0   :  { %v4252_v54 = vadd.f32 %v4251_v25, %v7343_v34  ;;  %v4253_v14 = vpop.f32.mrb[158].mxu1  ;;  %v7611_v25 = vld [vmem:[%s7753_s9 + $0x2] ss:$0 sm:$0xff] }
0x19b1   :  { %v4254_v42 = vpop.f32.mrb[159].mxu1  ;;  %v4258_v59 = vsub.f32 %v5281_v35, %v4250_v40  ;;  %v7626_v35 = vld [vmem:[#allocation4 + $0x20] sm:$0xff] }
0x19b2   :  { %v4260_v45 = vsub.f32 0.0, %v4252_v54 }
0x19b3   :  { %v4259_v49 = vmul.f32 %v4258_v59, %v4258_v59 }
0x19b4   :  { %v4261_v63 = vmul.f32 1.442695, %v4260_v45 }
0x19b6   :  { %6046 = vpow2.f32 %v4261_v63  ;;  %v4353_v12 = vpop.f32.mrb[160].mxu1 }
0x19b7   :  { %v4354_v36 = vadd.f32 %v4353_v12, %v7350_v39  ;;  %v5713_v24 = vpop.f32.mrb[161].mxu1  ;;  %6048 = vrcp.f32 %v4370_v7  ;;  %v7615_v12 = vld [vmem:[#allocation2 + $0x70] sm:$0xff] }
0x19b8   :  { %v4356_v13 = vpop.f32.mrb[162].mxu1 }
0x19b9   :  { %v4373_v26 = vmul.f32 %v6045_v8, %v4354_v36  ;;  %v5714_v29 = vpop.f32.mrb[163].mxu1  ;;  %v7621_v8 = vld [vmem:[#allocation2 + $0x88] sm:$0xff]  ;;  %v7632_v13 = vld [vmem:[#allocation4 + $0x30] sm:$0xff] }
0x19ba   :  { %v7863_v29 = vld [vmem:[#allocation58_spill] sm:$0xff] }
0x19bb   :  { %v4374_v62 = vadd.f32 %v4373_v26, %v7861_v50 }
0x19bd   :  { %6050 = vtanh.f32 %v4374_v62 }
0x19c0   :  { %v6047_v38 = vpop.eup %6046 }
0x19c1   :  { %v4263_v9 = vmul.f32 %v6047_v38, %v4259_v49  ;;  %v6049_v61 = vpop.eup %6048  ;;  %v7864_v49 = vld [vmem:[#allocation59_spill] sm:$0xff] }
0x19c2   :  { %v4376_v41 = vsub.f32 1.0, %v6049_v61  ;;  %v4378_v18 = vmul.f32 %v6049_v61, %v7518_v10 }
0x19c3   :  { %v4264_v19 = vadd.f32 %v4263_v9, %v4252_v54 }
0x19c5   :  { %v4265_v46 = vadd.f32 1.837877, %v4264_v19 }
0x19c7   :  { %v6051_v17 = vpop.eup %6050  ;;  %v4266_v51 = vsel %vm3205_vm4, %v4265_v46, 0.0 }
0x19c8   :  { %v4377_v43 = vmul.f32 %v6051_v17, %v4376_v41  ;;  %4267 = vadd.xlane.f32.xlu0 %v4266_v51 }
0x19ca   :  { %v7575_v0 = vadd.f32 %v4378_v18, %v4377_v43 }
0x19cc   :  { %v4381_v20 = vpack.c.bf16 %v7575_v0, %v7575_v0 }
0x19ce   :  { %5720 = vmatmul.mubr.msk.bf16.vlgmr.msra.gmra.mrb[164].mxu0 %vm1053_vm3, %v4381_v20 }
0x19cf   :  { %4477 = vmatpush1.bf16.msra.mxu0 %v7292_v2  ;;  %4508 = vmatprep.mubr.bf16.mxu0 %v7818_v56 }
0x19d0   :  { %4478 = vmatprep.subr.bf16.mxu0 %v7295_v16 }
0x19d3   :  { %4479 = vmatpush1.bf16.msra.mxu0 %v7298_v44 }
0x19d4   :  { %5731 = vmatprep.subr.bf16.mxu0 %v7819_v32 }
0x1a55   :  { %v4268_v48 = vpop.xlane.xlu0 %4267 }
0x1a56   :  { %v4269_v22 = vrot.slane %v4268_v48, 4 }
0x1a58   :  { %v4270_v10 = vadd.f32 %v4269_v22, %v4268_v48 }
0x1a5a   :  { %v4271_v27 = vrot.slane %v4270_v10, 2 }
0x1a5c   :  { %v4272_v1 = vadd.f32 %v4271_v27, %v4270_v10 }
0x1a5e   :  { %v4273_v6 = vrot.slane %v4272_v1, 1 }
0x1a60   :  { %v4274_v60 = vadd.f32 %v4273_v6, %v4272_v1 }
0x1a62   :  { %5799 = vpush %v4274_v60 }
0x1aa1   :  { %v4419_v2 = vpop.f32.mrb[164].mxu0 }
0x1aa2   :  { %v4425_v57 = vadd.f32 %v4419_v2, %v4380_v5  ;;  %v5721_v31 = vpop.f32.mrb[165].mxu0 }
0x1aa3   :  { %v4422_v33 = vpop.f32.mrb[166].mxu0 }
0x1aa4   :  { %v4426_v16 = vmax.f32 %v4425_v57, 0.0  ;;  %v5722_v53 = vpop.f32.mrb[167].mxu0  ;;  %v7865_v33 = vld [vmem:[#allocation70_spill] sm:$0xff] }
0x1aa6   :  { %v4427_v44 = vpack.c.bf16 %v4426_v16, %v4426_v16 }
0x1aa8   :  { %5728 = vmatmul.mubr.msk.bf16.vlgmr.msra.gmra.mrb[164].mxu1 %vm1053_vm3, %v4427_v44 }
0x1aa9   :  { %4540 = vmatpush1.bf16.msra.mxu1 %v7588_v15  ;;  %4571 = vmatprep.mubr.bf16.mxu1 %v7818_v56 }
0x1aaa   :  { %4541 = vmatprep.subr.bf16.mxu1 %v7592_v11 }
0x1aad   :  { %4542 = vmatpush1.bf16.msra.mxu1 %v7595_v21 }
0x1aae   :  { %5739 = vmatprep.subr.bf16.mxu1 %v7819_v32 }
0x1ab0   :  { %5290 = vmatmul.mubr.msk.bf16.vlgmr.msra.gmra.mrb[168].mxu1 %vm1053_vm3, %v4381_v20 }
0x1ab1   :  { %5740 = vmatpush3.bf16.msra.mxu1 %v7537_v52  ;;  %5743 = vmatprep.mubr.msk.bf16.mxu1 %vm6210_vm2, %v7819_v32 }
0x1ab2   :  { %5741 = vmatprep.subr.bf16.mxu1 %v7819_v32 }
0x1ab5   :  { %5742 = vmatpush3.bf16.msra.mxu1 %v7543_v47 }
0x1ab6   :  { %4737 = vmatprep.subr.bf16.mxu1 %v7605_v55 }
0x1b7b   :  { %v4465_v3 = vpop.f32.mrb[164].mxu1 }
0x1b7c   :  { %v4466_v54 = vadd.f32 %v7611_v25, %v4465_v3  ;;  %v5729_v14 = vpop.f32.mrb[165].mxu1 }
0x1b7d   :  { %v4468_v42 = vpop.f32.mrb[166].mxu1 }
0x1b7e   :  { %v4471_v37 = vmax.f32 %v4466_v54, 0.0  ;;  %v5730_v45 = vpop.f32.mrb[167].mxu1 }
0x1b80   :  { %v4472_v63 = vpack.c.bf16 %v4471_v37, %v4471_v37 }
0x1b82   :  { %5288 = vmatmul.mubr.msk.bf16.vlgmr.msra.gmra.mrb[168].mxu0 %vm1053_vm3, %v4472_v63 }
0x1b83   :  { %v4573_v7 = vpop.f32.mrb[168].mxu1  ;;  %5732 = vmatpush3.bf16.msra.mxu0 %v7615_v12  ;;  %5735 = vmatprep.mubr.msk.bf16.mxu0 %vm6210_vm2, %v7819_v32 }
0x1b84   :  { %v4575_v40 = vpop.f32.mrb[169].mxu1  ;;  %5733 = vmatprep.subr.bf16.mxu0 %v7819_v32  ;;  %v4574_v26 = vadd.f32 %v4573_v7, %v7330_v58 }
0x1b85   :  { %v4577_v36 = vpop.f32.mrb[170].mxu1  ;;  %v4576_v62 = vadd.f32 %v4575_v40, %v7335_v30 }
0x1b86   :  { %v4578_v24 = vpop.f32.mrb[171].mxu1  ;;  %v4620_v59 = vadd.f32 %v4574_v26, %v7863_v29  ;;  %v7654_v26 = vld [vmem:[#allocation4 + $0x60] sm:$0xff]  ;;  %v7658_v29 = vld [vmem:[#allocation4 + $0x78] sm:$0xff] }
0x1b87   :  { %5734 = vmatpush3.bf16.msra.mxu0 %v7621_v8  ;;  %v4627_v38 = vadd.f32 %v4576_v62, %v7864_v49 }
0x1b88   :  { %5747 = vmatprep.subr.bf16.mxu0 %v7819_v32  ;;  %v5292_v50 = vmul.f32 -1.442695, %v4620_v59  ;;  %v7661_v59 = vld [vmem:[#allocation4 + $0x70] sm:$0xff] }
0x1b89   :  { %v5293_v9 = vmul.f32 -1.442695, %v4627_v38 }
0x1b8a   :  { %5736 = vmatmul.mubr.msk.bf16.vlgmr.msra.gmra.mrb[172].mxu0 %vm1053_vm3, %v4381_v20  ;;  %6052 = vpow2.f32 %v5292_v50 }
0x1b8b   :  { %5748 = vmatpush3.bf16.msra.mxu0 %v7626_v35  ;;  %5751 = vmatprep.mubr.msk.bf16.mxu0 %vm6210_vm2, %v7819_v32  ;;  %6054 = vpow2.f32 %v5293_v9 }
0x1b8c   :  { %5749 = vmatprep.subr.bf16.mxu0 %v7819_v32 }
0x1b8f   :  { %5750 = vmatpush3.bf16.msra.mxu0 %v7632_v13 }
0x1b90   :  { %5755 = vmatprep.subr.bf16.mxu0 %v7819_v32 }
0x1b94   :  { %v6053_v61 = vpop.eup %6052 }
0x1b95   :  { %v4624_v19 = vadd.f32 1.0, %v6053_v61  ;;  %v6055_v18 = vpop.eup %6054 }
0x1b96   :  { %v4631_v22 = vadd.f32 1.0, %v6055_v18 }
0x1b97   :  { %6056 = vrcp.f32 %v4624_v19 }
0x1ba1   :  { %v6057_v60 = vpop.eup %6056 }
0x1c55   :  { %v4510_v46 = vpop.f32.mrb[168].mxu0 }
0x1c56   :  { %v4512_v41 = vpop.f32.mrb[169].mxu0  ;;  %v4511_v27 = vadd.f32 %v4510_v46, %v7347_v28  ;;  %v7866_v46 = vld [vmem:[#allocation73_spill] sm:$0xff] }
0x1c57   :  { %v4513_v17 = vadd.f32 %v4512_v41, %v7343_v34  ;;  %v4514_v51 = vpop.f32.mrb[170].mxu0  ;;  %v4641_v41 = vadd.f32 %v7269_v23, %v7866_v46 }
0x1c58   :  { %v4515_v43 = vpop.f32.mrb[171].mxu0  ;;  %v4519_v31 = vsub.f32 %v5289_v4, %v4511_v27 }
0x1c59   :  { %v4521_v20 = vsub.f32 0.0, %v4513_v17 }
0x1c5a   :  { %v4520_v53 = vmul.f32 %v4519_v31, %v4519_v31  ;;  %v7867_v31 = vld [vmem:[#allocation42_spill] sm:$0xff] }
0x1c5b   :  { %v4522_v48 = vmul.f32 1.442695, %v4521_v20 }
0x1c5d   :  { %6058 = vpow2.f32 %v4522_v48  ;;  %v4614_v10 = vpop.f32.mrb[172].mxu0 }
0x1c5e   :  { %v4615_v1 = vadd.f32 %v4614_v10, %v7350_v39  ;;  %v5737_v6 = vpop.f32.mrb[173].mxu0  ;;  %6060 = vrcp.f32 %v4631_v22 }
0x1c5f   :  { %v4617_v5 = vpop.f32.mrb[174].mxu0 }
0x1c60   :  { %v4634_v2 = vmul.f32 %v6057_v60, %v4615_v1  ;;  %v5738_v57 = vpop.f32.mrb[175].mxu0 }
0x1c62   :  { %v4635_v16 = vadd.f32 %v4634_v2, %v7865_v33  ;;  %v5779_v33 = vadd.f32 %v7330_v58, %v7867_v31 }
0x1c64   :  { %6062 = vtanh.f32 %v4635_v16 }
0x1c67   :  { %v6059_v44 = vpop.eup %6058 }
0x1c68   :  { %v4524_v3 = vmul.f32 %v6059_v44, %v4520_v53  ;;  %v6061_v54 = vpop.eup %6060  ;;  %v7868_v53 = vld [vmem:[#allocation44_spill] sm:$0xff] }
0x1c69   :  { %v4637_v37 = vsub.f32 1.0, %v6061_v54  ;;  %v4639_v40 = vmul.f32 %v6061_v54, %v7575_v0  ;;  %v6104_v0 = vld [vmem:[#allocation2 + $0x68] sm:$0xff]  ;;  %v5781_v44 = vadd.f32 %v7335_v30, %v7868_v53  ;;  %v5297_v54 = vld [vmem:[%s7745_s1 + $0x30] sm:$0xff] }
0x1c6a   :  { %v4525_v14 = vadd.f32 %v4524_v3, %v4513_v17 }
0x1c6c   :  { %v4526_v42 = vadd.f32 1.837877, %v4525_v14 }
0x1c6e   :  { %v6063_v45 = vpop.eup %6062  ;;  %v4527_v63 = vsel %vm3205_vm4, %v4526_v42, 0.0 }
0x1c6f   :  { %v4638_v7 = vmul.f32 %v6063_v45, %v4637_v37  ;;  %4528 = vadd.xlane.f32.xlu1 %v4527_v63 }
0x1c71   :  { %v7649_v36 = vadd.f32 %v4639_v40, %v4638_v7 }
0x1c73   :  { %v4642_v24 = vpack.c.bf16 %v7649_v36, %v7649_v36 }
0x1c75   :  { %5744 = vmatmul.mubr.msk.bf16.vlgmr.msra.gmra.mrb[172].mxu1 %vm1053_vm3, %v4642_v24 }
0x1c76   :  { %4738 = vmatpush1.bf16.msra.mxu1 %v7654_v26  ;;  %4769 = vmatprep.mubr.bf16.mxu1 %v7818_v56 }
0x1c77   :  { %4739 = vmatprep.subr.bf16.mxu1 %v7658_v29 }
0x1c7a   :  { %4740 = vmatpush1.bf16.msra.mxu1 %v7661_v59 }
0x1c7b   :  { %4800 = vmatprep.subr.bf16.mxu1 %v6104_v0 }
0x1cfc   :  { %v4529_v50 = vpop.xlane.xlu1 %4528 }
0x1cfd   :  { %v4530_v62 = vrot.slane %v4529_v50, 4 }
0x1cff   :  { %v4531_v49 = vadd.f32 %v4530_v62, %v4529_v50 }
0x1d01   :  { %v4532_v38 = vrot.slane %v4531_v49, 2 }
0x1d03   :  { %v4533_v9 = vadd.f32 %v4532_v38, %v4531_v49 }
0x1d05   :  { %v4534_v61 = vrot.slane %v4533_v9, 1 }
0x1d07   :  { %v4535_v19 = vadd.f32 %v4534_v61, %v4533_v9 }
0x1d09   :  { %5801 = vpush %v4535_v19 }
0x1d48   :  { %v4680_v17 = vpop.f32.mrb[172].mxu1 }
0x1d49   :  { %v4686_v51 = vadd.f32 %v4680_v17, %v4641_v41  ;;  %v5745_v43 = vpop.f32.mrb[173].mxu1  ;;  %v7869_v41 = vld [vmem:[#allocation72_spill] sm:$0xff] }
0x1d4a   :  { %v4683_v18 = vpop.f32.mrb[174].mxu1 }
0x1d4b   :  { %v4687_v20 = vmax.f32 %v4686_v51, 0.0  ;;  %v5746_v48 = vpop.f32.mrb[175].mxu1 }
0x1d4d   :  { %v4688_v22 = vpack.c.bf16 %v4687_v20, %v4687_v20 }
0x1d4f   :  { %5752 = vmatmul.mubr.msk.bf16.vlgmr.msra.gmra.mrb[176].mxu0 %vm1053_vm3, %v4688_v22 }
0x1d50   :  { %5756 = vmatpush3.bf16.msra.mxu0 %v7615_v12  ;;  %5759 = vmatprep.mubr.msk.bf16.mxu0 %vm6210_vm2, %v7819_v32 }
0x1d51   :  { %5757 = vmatprep.subr.bf16.mxu0 %v7819_v32 }
0x1d54   :  { %5758 = vmatpush3.bf16.msra.mxu0 %v7621_v8 }
0x1d55   :  { %5763 = vmatprep.subr.bf16.mxu0 %v7819_v32 }
0x1d57   :  { %5760 = vmatmul.mubr.msk.bf16.vlgmr.msra.gmra.mrb[180].mxu0 %vm1053_vm3, %v4642_v24 }
0x1d58   :  { %5764 = vmatpush3.bf16.msra.mxu0 %v7537_v52  ;;  %5767 = vmatprep.mubr.msk.bf16.mxu0 %vm6210_vm2, %v7819_v32 }
0x1d59   :  { %5765 = vmatprep.subr.bf16.mxu0 %v7819_v32 }
0x1d5c   :  { %5766 = vmatpush3.bf16.msra.mxu0 %v7543_v47 }
0x1d5d   :  { %4998 = vmatprep.subr.bf16.mxu0 %v7605_v55 }
0x1e22   :  { %v4726_v12 = vpop.f32.mrb[176].mxu0 }
0x1e23   :  { %v4727_v10 = vadd.f32 %v7611_v25, %v4726_v12  ;;  %v5753_v27 = vpop.f32.mrb[177].mxu0 }
0x1e24   :  { %v4729_v8 = vpop.f32.mrb[178].mxu0 }
0x1e25   :  { %v4732_v1 = vmax.f32 %v4727_v10, 0.0  ;;  %v5754_v6 = vpop.f32.mrb[179].mxu0 }
0x1e27   :  { %v4733_v60 = vpack.c.bf16 %v4732_v1, %v4732_v1 }
0x1e29   :  { %5296 = vmatmul.mubr.msk.bf16.vlgmr.msra.gmra.mrb[176].mxu1 %vm1053_vm3, %v4733_v60 }
0x1e2a   :  { %4801 = vmatpush1.bf16.msra.mxu1 %v7588_v15  ;;  %v4875_v52 = vpop.f32.mrb[180].mxu0  ;;  %4832 = vmatprep.mubr.bf16.mxu1 %v7818_v56 }
0x1e2b   :  { %v5761_v4 = vpop.f32.mrb[181].mxu0  ;;  %4802 = vmatprep.subr.bf16.mxu1 %v7592_v11  ;;  %v4876_v61 = vadd.f32 %v4875_v52, %v7350_v39 }
0x1e2c   :  { %v4878_v47 = vpop.f32.mrb[182].mxu0 }
0x1e2d   :  { %v5762_v55 = vpop.f32.mrb[183].mxu0 }
0x1e2e   :  { %4803 = vmatpush1.bf16.msra.mxu1 %v7595_v21 }
0x1e2f   :  { %5771 = vmatprep.subr.bf16.mxu1 %v7819_v32 }
0x1e31   :  { %5298 = vmatmul.mubr.msk.bf16.vlgmr.msra.gmra.mrb[28].mxu1 %vm1053_vm3, %v4642_v24 }
0x1e32   :  { %5772 = vmatpush3.bf16.msra.mxu1 %v7626_v35  ;;  %5775 = vmatprep.mubr.msk.bf16.mxu1 %vm6210_vm2, %v7819_v32 }
0x1e33   :  { %5773 = vmatprep.subr.bf16.mxu1 %v7819_v32 }
0x1e36   :  { %5774 = vmatpush3.bf16.msra.mxu1 %v7632_v13 }
0x1efc   :  { %v4771_v15 = vpop.f32.mrb[176].mxu1 }
0x1efd   :  { %v4773_v5 = vpop.f32.mrb[177].mxu1  ;;  %v4772_v32 = vadd.f32 %v4771_v15, %v7347_v28 }
0x1efe   :  { %v4774_v11 = vadd.f32 %v4773_v5, %v7343_v34  ;;  %v4775_v2 = vpop.f32.mrb[178].mxu1 }
0x1eff   :  { %v4776_v57 = vpop.f32.mrb[179].mxu1  ;;  %v4780_v63 = vsub.f32 %v5297_v54, %v4772_v32 }
0x1f00   :  { %v4782_v21 = vsub.f32 0.0, %v4774_v11 }
0x1f01   :  { %v4781_v7 = vmul.f32 %v4780_v63, %v4780_v63 }
0x1f02   :  { %v4783_v16 = vmul.f32 1.442695, %v4782_v21 }
0x1f04   :  { %6064 = vpow2.f32 %v4783_v16  ;;  %v4834_v35 = vpop.f32.mrb[28].mxu1 }
0x1f05   :  { %v5780_v3 = vadd.f32 %v5779_v33, %v4834_v35  ;;  %v4836_v13 = vpop.f32.mrb[29].mxu1 }
0x1f06   :  { %v4838_v14 = vpop.f32.mrb[30].mxu1  ;;  %v5782_v45 = vadd.f32 %v5781_v44, %v4836_v13 }
0x1f07   :  { %v5300_v42 = vmul.f32 -1.442695, %v5780_v3  ;;  %v4839_v37 = vpop.f32.mrb[31].mxu1 }
0x1f08   :  { %v5301_v58 = vmul.f32 -1.442695, %v5782_v45 }
0x1f09   :  { %6066 = vpow2.f32 %v5300_v42 }
0x1f0a   :  { %6068 = vpow2.f32 %v5301_v58 }
0x1f0e   :  { %v6065_v40 = vpop.eup %6064 }
0x1f0f   :  { %v4785_v24 = vmul.f32 %v6065_v40, %v4781_v7 }
0x1f11   :  { %v4786_v30 = vadd.f32 %v4785_v24, %v4774_v11 }
0x1f13   :  { %v6067_v0 = vpop.eup %6066  ;;  %v4787_v50 = vadd.f32 1.837877, %v4786_v30 }
0x1f14   :  { %v4885_v62 = vadd.f32 1.0, %v6067_v0  ;;  %v6069_v38 = vpop.eup %6068 }
0x1f15   :  { %v4788_v49 = vsel %vm3205_vm4, %v4787_v50, 0.0  ;;  %v4892_v9 = vadd.f32 1.0, %v6069_v38 }
0x1f16   :  { %6070 = vrcp.f32 %v4885_v62  ;;  %4789 = vadd.xlane.f32.xlu0 %v4788_v49 }
0x1f17   :  { %6072 = vrcp.f32 %v4892_v9 }
0x1f20   :  { %v6071_v19 = vpop.eup %6070 }
0x1f21   :  { %v4895_v46 = vmul.f32 %v6071_v19, %v4876_v61  ;;  %v6073_v51 = vpop.eup %6072 }
0x1f22   :  { %v4898_v43 = vsub.f32 1.0, %v6073_v51  ;;  %v4900_v48 = vmul.f32 %v6073_v51, %v7649_v36  ;;  %v7870_v36 = vld [vmem:[#allocation74_spill] sm:$0xff] }
0x1f23   :  { %v4896_v17 = vadd.f32 %v4895_v46, %v7869_v41  ;;  %v4902_v52 = vadd.f32 %v7269_v23, %v7870_v36 }
0x1f25   :  { %6074 = vtanh.f32 %v4896_v17 }
0x1f2f   :  { %v6075_v18 = vpop.eup %6074 }
0x1f30   :  { %v4899_v20 = vmul.f32 %v6075_v18, %v4898_v43 }
0x1f32   :  { %v4901_v22 = vadd.f32 %v4900_v48, %v4899_v20 }
0x1f34   :  { %v4903_v12 = vpack.c.bf16 %v4901_v22, %v4901_v22 }
0x1f36   :  { %5768 = vmatmul.mubr.msk.bf16.vlgmr.msra.gmra.mrb[184].mxu0 %vm1053_vm3, %v4903_v12 }
0x1f37   :  { %4999 = vmatpush1.bf16.msra.mxu0 %v7654_v26  ;;  %5030 = vmatprep.mubr.bf16.mxu0 %v7818_v56 }
0x1f38   :  { %5000 = vmatprep.subr.bf16.mxu0 %v7658_v29 }
0x1f3b   :  { %5001 = vmatpush1.bf16.msra.mxu0 %v7661_v59 }
0x1fa3   :  { %v4790_v39 = vpop.xlane.xlu0 %4789 }
0x1fa4   :  { %v4791_v10 = vrot.slane %v4790_v39, 4 }
0x1fa6   :  { %v4792_v27 = vadd.f32 %v4791_v10, %v4790_v39 }
0x1fa8   :  { %v4793_v8 = vrot.slane %v4792_v27, 2 }
0x1faa   :  { %v4794_v1 = vadd.f32 %v4793_v8, %v4792_v27 }
0x1fac   :  { %v4795_v6 = vrot.slane %v4794_v1, 1 }
0x1fae   :  { %v4796_v60 = vadd.f32 %v4795_v6, %v4794_v1 }
0x1fb0   :  { %5803 = vpush %v4796_v60 }
0x2009   :  { %v4941_v4 = vpop.f32.mrb[184].mxu0 }
0x200a   :  { %v4947_v47 = vadd.f32 %v4941_v4, %v4902_v52  ;;  %v5769_v26 = vpop.f32.mrb[185].mxu0 }
0x200b   :  { %v4944_v55 = vpop.f32.mrb[186].mxu0 }
0x200c   :  { %v4948_v56 = vmax.f32 %v4947_v47, 0.0  ;;  %v5770_v15 = vpop.f32.mrb[187].mxu0 }
0x200e   :  { %v4949_v29 = vpack.c.bf16 %v4948_v56, %v4948_v56 }
0x2010   :  { %5776 = vmatmul.mubr.msk.bf16.vlgmr.msra.gmra.mrb[180].mxu1 %vm1053_vm3, %v4949_v29 }
0x20e3   :  { %v4987_v59 = vpop.f32.mrb[180].mxu1 }
0x20e4   :  { %v4988_v5 = vadd.f32 %v7611_v25, %v4987_v59  ;;  %v5777_v11 = vpop.f32.mrb[181].mxu1  ;;  %v5305_v25 = vld [vmem:[%s7745_s1 + $0x38] sm:$0xff] }
0x20e5   :  { %v4990_v2 = vpop.f32.mrb[182].mxu1 }
0x20e6   :  { %v4993_v57 = vmax.f32 %v4988_v5, 0.0  ;;  %v5778_v21 = vpop.f32.mrb[183].mxu1 }
0x20e8   :  { %v4994_v31 = vpack.c.bf16 %v4993_v57, %v4993_v57 }
0x20ea   :  { %5304 = vmatmul.mubr.msk.bf16.vlgmr.msra.gmra.mrb[188].mxu0 %vm1053_vm3, %v4994_v31 }
0x21bd   :  { %v5032_v23 = vpop.f32.mrb[188].mxu0 }
0x21be   :  { %v5034_v33 = vpop.f32.mrb[189].mxu0  ;;  %v5033_v3 = vadd.f32 %v5032_v23, %v7347_v28 }
0x21bf   :  { %v5035_v16 = vadd.f32 %v5034_v33, %v7343_v34  ;;  %v5036_v35 = vpop.f32.mrb[190].mxu0 }
0x21c0   :  { %v5037_v53 = vpop.f32.mrb[191].mxu0  ;;  %v5041_v13 = vsub.f32 %v5305_v25, %v5033_v3 }
0x21c1   :  { %v5043_v44 = vsub.f32 0.0, %v5035_v16 }
0x21c2   :  { %v5042_v54 = vmul.f32 %v5041_v13, %v5041_v13 }
0x21c3   :  { %v5044_v32 = vmul.f32 1.442695, %v5043_v44 }
0x21c5   :  { %6076 = vpow2.f32 %v5044_v32 }
0x21cf   :  { %v6077_v14 = vpop.eup %6076 }
0x21d0   :  { %v5046_v42 = vmul.f32 %v6077_v14, %v5042_v54 }
0x21d2   :  { %v5047_v37 = vadd.f32 %v5046_v42, %v5035_v16 }
0x21d4   :  { %v5048_v45 = vadd.f32 1.837877, %v5047_v37 }
0x21d6   :  { %v5049_v63 = vsel %vm3205_vm4, %v5048_v45, 0.0 }
0x21d7   :  { %5050 = vadd.xlane.f32.xlu1 %v5049_v63 }
0x21d8   :  { %6182 = shalt.err (!%p6179_p0)
}
0x21d9   :  { %s6183_s2 = scalar_lea.hbm %s7755_s11, 128 }
0x21da   :  { %p6184_p1 = scmp.ne.s32.totalorder %s7755_s11, %s6183_s2  ;;  %p6187_p2 = scmp.lt.u32.totalorder %s6183_s2, %s7755_s11 }
0x21dc   :  { %p6189_p3 = pnand %p6187_p2, %p6184_p1 }
0x21de   :  { %6192 = shalt.err (!%p6189_p3)
}
0x21df   :  { %5084 = dma.vmem_to_hbm [thread:$0]  %s5082_s22, 128, %s7755_s11, [#allocation8]   ;;  %v7871_v0 = vlaneseq }
0x21e0   :  { %s7734_s8 = spop %5787 }
0x21e1   :  { %s7736_s28 = spop %5789  ;;  %v5062_v50 = vand.u32 127, %v7871_v0  ;;  %v5070_v9 = vstv %s7734_s8 }
0x21e2   :  { %s5792_s7 = spop %5791  ;;  %v5068_v49 = vstv %s7736_s28 }
0x21e3   :  { %s5794_s26 = spop %5793  ;;  %s3216_s12 = smul.f32 0.5, %s5792_s7  ;;  %vm5065_vm5 = vcmp.eq.s32.totalorder %v5062_v50, 2  ;;  %vm5064_vm6 = vcmp.eq.s32.totalorder %v5062_v50, 1  ;;  %vm5063_vm7 = vcmp.eq.s32.totalorder %v5062_v50, 0 }
0x21e4   :  { %s5796_s29 = spop %5795  ;;  %s3493_s30 = smul.f32 0.5, %s5794_s26 }
0x21e5   :  { %s5798_s13 = spop %5797  ;;  %s3754_s0 = smul.f32 0.5, %s5796_s29 }
0x21e6   :  { %s5800_s11 = spop %5799  ;;  %s3494_s14 = sadd.f32 %s3493_s30, %s3216_s12 }
0x21e7   :  { %s4015_s15 = smul.f32 0.5, %s5798_s13  ;;  %s5802_s9 = spop %5801 }
0x21e8   :  { %s3755_s16 = sadd.f32 %s3754_s0, %s3494_s14  ;;  %s4276_s17 = smul.f32 0.5, %s5800_s11 }
0x21e9   :  { %s5804_s19 = spop %5803  ;;  %s4537_s3 = smul.f32 0.5, %s5802_s9 }
0x21ea   :  { %s4016_s21 = sadd.f32 %s4015_s15, %s3755_s16  ;;  %s4798_s22 = smul.f32 0.5, %s5804_s19 }
0x21ec   :  { %s4277_s18 = sadd.f32 %s4276_s17, %s4016_s21 }
0x21ee   :  { %s4538_s23 = sadd.f32 %s4537_s3, %s4277_s18 }
0x21f0   :  { %s4799_s24 = sadd.f32 %s4798_s22, %s4538_s23 }
0x2264   :  { %v5051_v34 = vpop.xlane.xlu1 %5050 }
0x2265   :  { %v5052_v28 = vrot.slane %v5051_v34, 4 }
0x2267   :  { %v5053_v58 = vadd.f32 %v5052_v28, %v5051_v34 }
0x2269   :  { %v5054_v7 = vrot.slane %v5053_v58, 2 }
0x226b   :  { %v5055_v40 = vadd.f32 %v5054_v7, %v5053_v58 }
0x226d   :  { %v5056_v24 = vrot.slane %v5055_v40, 1 }
0x226f   :  { %v5057_v30 = vadd.f32 %v5056_v24, %v5055_v40 }
0x2271   :  { %5805 = vpush %v5057_v30 }
0x22a2   :  { %s5806_s1 = spop %5805 }
0x22a3   :  { %s5059_s2 = smul.f32 0.5, %s5806_s1 }
0x22a5   :  { %s5060_s25 = sadd.f32 %s5059_s2, %s4799_s24 }
0x22a7   :  { %v5066_v62 = vstv %s5060_s25 }
0x22a8   :  { %v5067_v38 = vsel %vm5065_vm5, %v5066_v62, 0.0 }
0x22a9   :  { %v5069_v61 = vsel %vm5064_vm6, %v5068_v49, %v5067_v38 }
0x22aa   :  { %v5071_v19 = vsel %vm5063_vm7, %v5070_v9, %v5069_v61 }
0x22ab   :  { %5072 = vst [vmem:[%s7754_s10] sm:$0x1] %v5071_v19 }
0x22ac   :  { %6203 = dma.done.wait [#allocation8], 128  }
0x22ad   :  { %6204 = vsyncadd [#allocation8], 4294967168 }
0x22ae   :  { %5090 = vsyncpa [#allocation7], 1 }
0x22af   :  { %5091 = vsyncpa [#allocation10], 1 }
0x22b0   :  { %5092 = vsyncpa [#allocation8], 1 }
0x22b1   :  { %5093 = vsyncmov [#allocation5] }
0x22b4   :  { %s5094_s6 = vpop.sfrf %5093 }
0x22b5   :  { %p5306_p4 = scmp.ne.s32.totalorder %s5094_s6, 0 }
0x22b7   :  { %5098 = shalt.err (%p5306_p4)  }
0x22b8   :  { %5100 = vsyncmov [#allocation5 + $0x1] }
0x22bb   :  { %s5101_s20 = vpop.sfrf %5100 }
0x22bc   :  { %p5307_p5 = scmp.ne.s32.totalorder %s5101_s20, 0 }
0x22be   :  { %5105 = shalt.err (%p5307_p5)  }
0x22bf   :  { %5107 = vsyncmov [#allocation5 + $0x2] }
0x22c2   :  { %s5108_s5 = vpop.sfrf %5107 }
0x22c3   :  { %p5308_p6 = scmp.ne.s32.totalorder %s5108_s5, 0 }
0x22c5   :  { %5112 = shalt.err (%p5308_p6)  }

</bundles_post_ra>
